<compile_context>
chip_gen: v5e
topology: v5e:2x2
jax: 0.10.0
libtpu: 0.0.40
codegen_flags: <defaults>
</compile_context>

<pallas_src>
import jax
import jax.numpy as jnp
from jax.experimental import pallas as pl
from jax.experimental.pallas import tpu as pltpu

FEAT_DIM = 512
HIDDEN_DIM = 512
OUT_DIM = 128
BN_EPS = 1e-5


# ----------------------------------------------------------------------------
# Fused kernel: backbone (per batch tile) + projection head (last grid step)
# ----------------------------------------------------------------------------
def _simclr_fused_kernel(x_ref, wc_ref, bc_ref, w1_ref, g_ref, be_ref,
                         w2_ref, b2_ref, z_ref, feats_ref):
    i = pl.program_id(0)
    bt, c, hw = x_ref.shape            # (batch tile, Cin, H*W)

    # Resident operands (constant block index -> fetched once by the pipeline).
    wc = wc_ref[...]                   # (C, 512)   bf16
    bc = bc_ref[...]                   # (1, 512)   f32

    # ---- backbone: whole batch tile in one MXU matmul -----------------------
    # x stays (C, HW) per image so the big HW axis was lane-dense in the DMA;
    # each tiny (C, HW) -> (HW, C) flip is done in-register (f32) and the bt
    # images are concatenated into a single matmul operand.
    x_all = x_ref[...].astype(jnp.float32)                       # (bt, C, hw)
    xt2d = jnp.concatenate([x_all[t].T for t in range(bt)],
                           axis=0).astype(jnp.bfloat16)          # (bt*hw, C)
    feat = jnp.dot(xt2d, wc,
                   preferred_element_type=jnp.float32)           # (bt*hw, 512)
    feat = jnp.maximum(feat + bc, 0.0)                           # bias + ReLU

    # Global average pool as a tiny MXU matmul: avg[t, j] = 1/hw iff row j
    # belongs to image t.  Keeps GAP on the (otherwise idle) MXU.
    col = jax.lax.broadcasted_iota(jnp.int32, (bt, bt * hw), 1)
    lo = jax.lax.broadcasted_iota(jnp.int32, (bt, bt * hw), 0) * hw
    avg = jnp.where((col >= lo) & (col < lo + hw),
                    jnp.float32(1.0 / hw), jnp.float32(0.0))     # (bt, bt*hw)
    pooled = jnp.dot(avg, feat,
                     preferred_element_type=jnp.float32)         # (bt, 512)

    row = pl.multiple_of(i * bt, bt)
    feats_ref[pl.ds(row, bt), :] = pooled

    # ---- projection head, once, on the last grid step -----------------------
    @pl.when(i == pl.num_programs(0) - 1)
    def _():
        f = feats_ref[...]                                        # (B, 512) f32
        h = jnp.dot(f.astype(jnp.bfloat16), w1_ref[...],
                    preferred_element_type=jnp.float32)           # (B, 512)
        # BatchNorm1d with training-mode batch statistics (biased variance),
        # folded into a single scale/shift FMA.
        mean = jnp.mean(h, axis=0, keepdims=True)
        var = jnp.mean(jnp.square(h - mean), axis=0, keepdims=True)
        scale = g_ref[...] * jax.lax.rsqrt(var + BN_EPS)          # (1, 512)
        shift = be_ref[...] - mean * scale
        a = jnp.maximum(h * scale + shift, 0.0)                   # BN + ReLU
        z_ref[...] = (jnp.dot(a.astype(jnp.bfloat16), w2_ref[...],
                              preferred_element_type=jnp.float32)
                      + b2_ref[...])                              # (B, 128)


# ----------------------------------------------------------------------------
# Wrapper
# ----------------------------------------------------------------------------
def simclr_forward(x_nchw, params):
    """SimCLR.forward: z = projection_head(backbone(x).flatten(start_dim=1))."""
    B, C, H, W = x_nchw.shape
    HW = H * W
    # NCHW -> (B, C, H*W) is a free reshape (no transpose).  Matmul operands are
    # fed in bf16 to halve DMA bytes; accumulation stays f32.
    x = x_nchw.reshape(B, C, HW).astype(jnp.bfloat16)

    # Largest per-step batch tile that divides B and keeps the in-kernel
    # (bt*HW, 512) f32 activation slab under ~8 MiB.
    act_budget = 8 * 2**20
    bt = 1
    for d in (16, 8, 4, 2, 1):
        if B % d == 0 and d * HW * FEAT_DIM * 4 <= act_budget:
            bt = d
            break
    num_tiles = B // bt

    # Rough VMEM budget: double-buffered x tile + resident bf16 weights +
    # batched f32 activation slab + transposed-x / avg temporaries + feature
    # scratch and head temporaries.  Capped at 64 MiB (valid on v7x as well).
    est = (2 * bt * C * HW * 2
           + 2 * (C * FEAT_DIM + FEAT_DIM * HIDDEN_DIM
                  + HIDDEN_DIM * OUT_DIM) * 2
           + 2 * bt * HW * FEAT_DIM * 4
           + bt * HW * (C * 8 + bt * 4)
           + (B * FEAT_DIM + 2 * B * OUT_DIM
              + 6 * B * HIDDEN_DIM + 16 * HIDDEN_DIM) * 4)
    vmem_limit = int(min(64 * 2**20, max(32 * 2**20, 2 * est)))

    return pl.pallas_call(
        _simclr_fused_kernel,
        out_shape=jax.ShapeDtypeStruct((B, OUT_DIM), jnp.float32),
        grid_spec=pltpu.PrefetchScalarGridSpec(
            num_scalar_prefetch=0,
            grid=(num_tiles,),
            in_specs=[
                pl.BlockSpec((bt, C, HW), lambda i: (i, 0, 0)),          # x tile
                pl.BlockSpec((C, FEAT_DIM), lambda i: (0, 0)),           # w_conv
                pl.BlockSpec((1, FEAT_DIM), lambda i: (0, 0)),           # b_conv
                pl.BlockSpec((FEAT_DIM, HIDDEN_DIM), lambda i: (0, 0)),  # w1
                pl.BlockSpec((1, HIDDEN_DIM), lambda i: (0, 0)),         # gamma
                pl.BlockSpec((1, HIDDEN_DIM), lambda i: (0, 0)),         # beta
                pl.BlockSpec((HIDDEN_DIM, OUT_DIM), lambda i: (0, 0)),   # w2
                pl.BlockSpec((1, OUT_DIM), lambda i: (0, 0)),            # b2
            ],
            out_specs=pl.BlockSpec((B, OUT_DIM), lambda i: (0, 0)),
            scratch_shapes=[pltpu.VMEM((B, FEAT_DIM), jnp.float32)],
        ),
        # The batch-tile axis carries the feature accumulator and the final
        # head, so it must be sequential ("arbitrary").
        compiler_params=pltpu.CompilerParams(
            dimension_semantics=("arbitrary",),
            vmem_limit_bytes=vmem_limit,
        ),
    )(x, params["w_conv"], params["b_conv"], params["w1"], params["gamma"],
      params["beta"], params["w2"], params["b2"])


def init_params(key, c_in):
    ks = jax.random.split(key, 4)
    s = 0.02
    return {
        # Matmul weights stored in bf16 (halves their DMA); vectors stay f32.
        "w_conv": (s * jax.random.normal(ks[0], (c_in, FEAT_DIM), jnp.float32)
                   ).astype(jnp.bfloat16),
        "b_conv": jnp.zeros((1, FEAT_DIM), jnp.float32),
        "w1": (s * jax.random.normal(ks[1], (FEAT_DIM, HIDDEN_DIM), jnp.float32)
               ).astype(jnp.bfloat16),
        "gamma": jnp.ones((1, HIDDEN_DIM), jnp.float32),
        "beta": jnp.zeros((1, HIDDEN_DIM), jnp.float32),
        "w2": (s * jax.random.normal(ks[2], (HIDDEN_DIM, OUT_DIM), jnp.float32)
               ).astype(jnp.bfloat16),
        "b2": s * jax.random.normal(ks[3], (1, OUT_DIM), jnp.float32),
    }


# ----------------------------------------------------------------------------
# Pure-JAX reference (same numerics: bf16 matmul operands, f32 accumulation)
# ----------------------------------------------------------------------------
def simclr_reference(x_nchw, params):
    B, C, H, W = x_nchw.shape
    x = x_nchw.reshape(B, C, H * W).astype(jnp.bfloat16)
    xt = jnp.swapaxes(x, 1, 2)                                   # (B, HW, C)
    feat = jnp.einsum("bsc,cf->bsf", xt, params["w_conv"],
                      preferred_element_type=jnp.float32)        # (B, HW, 512)
    feat = jnp.maximum(feat + params["b_conv"][:, None, :], 0.0)
    f = jnp.mean(feat, axis=1)                                   # (B, 512)
    h = jnp.dot(f.astype(jnp.bfloat16), params["w1"],
                preferred_element_type=jnp.float32)
    mean = jnp.mean(h, axis=0, keepdims=True)
    var = jnp.mean(jnp.square(h - mean), axis=0, keepdims=True)
    hn = (h - mean) * jax.lax.rsqrt(var + BN_EPS)
    a = jnp.maximum(hn * params["gamma"] + params["beta"], 0.0)
    return (jnp.dot(a.astype(jnp.bfloat16), params["w2"],
                    preferred_element_type=jnp.float32) + params["b2"])


if __name__ == "__main__":
    key = jax.random.PRNGKey(0)
    kx, kp = jax.random.split(key)

    B, C, H, W = 2, 4, 16, 16
    x = jax.random.normal(kx, (B, C, H, W), jnp.float32)   # NCHW, as in PyTorch
    params = init_params(kp, C)

    z = jax.jit(simclr_forward)(x, params)
    jax.block_until_ready(z)

    z_ref = simclr_reference(x, params)
    assert z.shape == (B, OUT_DIM), z.shape
    assert bool(jnp.all(jnp.isfinite(z)))
    assert float(jnp.max(jnp.abs(z - z_ref))) < 5e-2
    print("KERNEL_OK")
</pallas_src>

<mosaic_0001>
module attributes {stable_mosaic.version = 11 : i64} {
  func.func @_simclr_fused_kernel(%arg0: i32, %arg1: memref<2x4x256xbf16, #tpu.memory_space<vmem>>, %arg2: memref<4x512xbf16, #tpu.memory_space<vmem>>, %arg3: memref<1x512xf32, #tpu.memory_space<vmem>>, %arg4: memref<512x512xbf16, #tpu.memory_space<vmem>>, %arg5: memref<1x512xf32, #tpu.memory_space<vmem>>, %arg6: memref<1x512xf32, #tpu.memory_space<vmem>>, %arg7: memref<512x128xbf16, #tpu.memory_space<vmem>>, %arg8: memref<1x128xf32, #tpu.memory_space<vmem>>, %arg9: memref<2x128xf32, #tpu.memory_space<vmem>>, %arg10: memref<2x512xf32, #tpu.memory_space<vmem>>) attributes {dimension_semantics = [#tpu.dimension_semantics<arbitrary>], iteration_bounds = array<i64: 1>, scalar_prefetch = 0 : i64, scratch_operands = 1 : i64, tpu.core_type = #tpu.core_type<tc>, window_params = [{transform_indices = @transform_0, window_bounds = array<i64: 2, 4, 256>}, {pipeline_mode = #tpu.pipeline_mode<synchronous>, transform_indices = @transform_1, window_bounds = array<i64: 4, 512>}, {pipeline_mode = #tpu.pipeline_mode<synchronous>, transform_indices = @transform_2, window_bounds = array<i64: 1, 512>}, {pipeline_mode = #tpu.pipeline_mode<synchronous>, transform_indices = @transform_3, window_bounds = array<i64: 512, 512>}, {pipeline_mode = #tpu.pipeline_mode<synchronous>, transform_indices = @transform_4, window_bounds = array<i64: 1, 512>}, {pipeline_mode = #tpu.pipeline_mode<synchronous>, transform_indices = @transform_5, window_bounds = array<i64: 1, 512>}, {pipeline_mode = #tpu.pipeline_mode<synchronous>, transform_indices = @transform_6, window_bounds = array<i64: 512, 128>}, {pipeline_mode = #tpu.pipeline_mode<synchronous>, transform_indices = @transform_7, window_bounds = array<i64: 1, 128>}, {pipeline_mode = #tpu.pipeline_mode<synchronous>, transform_indices = @transform_8, window_bounds = array<i64: 2, 128>}]} {
    %c0 = arith.constant 0 : index
    %c0_0 = arith.constant 0 : index
    %0 = vector.load %arg2[%c0, %c0_0] : memref<4x512xbf16, #tpu.memory_space<vmem>>, vector<4x512xbf16>
    %c0_1 = arith.constant 0 : index
    %c0_2 = arith.constant 0 : index
    %1 = vector.load %arg3[%c0_1, %c0_2] : memref<1x512xf32, #tpu.memory_space<vmem>>, vector<1x512xf32>
    %c0_3 = arith.constant 0 : index
    %c0_4 = arith.constant 0 : index
    %c0_5 = arith.constant 0 : index
    %2 = vector.load %arg1[%c0_3, %c0_4, %c0_5] : memref<2x4x256xbf16, #tpu.memory_space<vmem>>, vector<2x4x256xbf16>
    %3 = arith.extf %2 : vector<2x4x256xbf16> to vector<2x4x256xf32>
    %4 = vector.extract_strided_slice %3 {offsets = [0, 0, 0], sizes = [1, 4, 256], strides = [1, 1, 1]} : vector<2x4x256xf32> to vector<1x4x256xf32>
    %5 = vector.shape_cast %4 : vector<1x4x256xf32> to vector<4x256xf32>
    %6 = tpu.transpose %5, [1, 0] : vector<4x256xf32> -> vector<256x4xf32>
    %7 = vector.extract_strided_slice %3 {offsets = [1, 0, 0], sizes = [1, 4, 256], strides = [1, 1, 1]} : vector<2x4x256xf32> to vector<1x4x256xf32>
    %8 = vector.shape_cast %7 : vector<1x4x256xf32> to vector<4x256xf32>
    %9 = tpu.transpose %8, [1, 0] : vector<4x256xf32> -> vector<256x4xf32>
    %10 = tpu.concatenate %6, %9 in 0 : vector<256x4xf32>, vector<256x4xf32> -> vector<512x4xf32>
    %11 = arith.truncf %10 : vector<512x4xf32> to vector<512x4xbf16>
    %cst = arith.constant dense<0.000000e+00> : vector<512x512xf32>
    %12 = tpu.matmul %11, %0, %cst {dimension_numbers = #tpu.dot_dimension_numbers<[1], [0], [0], [1], [0, 0, 1, 1], [], []>} : vector<512x4xbf16>, vector<4x512xbf16>, vector<512x512xf32> -> vector<512x512xf32>
    %13 = vector.broadcast %1 : vector<1x512xf32> to vector<512x512xf32>
    %14 = arith.addf %12, %13 : vector<512x512xf32>
    %cst_6 = arith.constant 0.000000e+00 : f32
    %15 = vector.broadcast %cst_6 : f32 to vector<512x512xf32>
    %16 = arith.maximumf %14, %15 : vector<512x512xf32>
    %17 = tpu.iota {dimensions = array<i32: 1>} : vector<2x512xi32>
    %18 = tpu.iota {dimensions = array<i32: 0>} : vector<2x512xi32>
    %c256_i32 = arith.constant 256 : i32
    %19 = vector.broadcast %c256_i32 : i32 to vector<2x512xi32>
    %20 = arith.muli %18, %19 : vector<2x512xi32>
    %21 = arith.cmpi sge, %17, %20 : vector<2x512xi32>
    %c256_i32_7 = arith.constant 256 : i32
    %22 = vector.broadcast %c256_i32_7 : i32 to vector<2x512xi32>
    %23 = arith.addi %20, %22 : vector<2x512xi32>
    %24 = arith.cmpi slt, %17, %23 : vector<2x512xi32>
    %25 = arith.andi %21, %24 : vector<2x512xi1>
    %cst_8 = arith.constant 3.906250e-03 : f32
    %cst_9 = arith.constant 0.000000e+00 : f32
    %26 = vector.broadcast %cst_8 : f32 to vector<2x512xf32>
    %27 = vector.broadcast %cst_9 : f32 to vector<2x512xf32>
    %28 = arith.select %25, %26, %27 : vector<2x512xi1>, vector<2x512xf32>
    %cst_10 = arith.constant dense<0.000000e+00> : vector<2x512xf32>
    %29 = tpu.matmul %28, %16, %cst_10 {dimension_numbers = #tpu.dot_dimension_numbers<[1], [0], [0], [1], [0, 0, 1, 1], [], []>} : vector<2x512xf32>, vector<512x512xf32>, vector<2x512xf32> -> vector<2x512xf32>
    %c2_i32 = arith.constant 2 : i32
    %30 = arith.muli %arg0, %c2_i32 : i32
    %31 = tpu.assume_multiple %30, 2 : i32
    %32 = arith.index_cast %31 : i32 to index
    %c0_11 = arith.constant 0 : index
    %33 = vector.load %arg10[%32, %c0_11] : memref<2x512xf32, #tpu.memory_space<vmem>>, vector<2x512xf32>
    tpu.vector_store %arg10[%32, %c0_11], %29 {strides = array<i32>} : memref<2x512xf32, #tpu.memory_space<vmem>>, vector<2x512xf32>,
    %c0_i32 = arith.constant 0 : i32
    %34 = arith.cmpi eq, %arg0, %c0_i32 : i32
    %35 = arith.extui %34 : i1 to i32
    %c0_i32_12 = arith.constant 0 : i32
    %36 = arith.cmpi ne, %35, %c0_i32_12 : i32
    scf.if %36 {
      %c0_13 = arith.constant 0 : index
      %c0_14 = arith.constant 0 : index
      %37 = vector.load %arg10[%c0_13, %c0_14] : memref<2x512xf32, #tpu.memory_space<vmem>>, vector<2x512xf32>
      %38 = arith.truncf %37 : vector<2x512xf32> to vector<2x512xbf16>
      %c0_15 = arith.constant 0 : index
      %c0_16 = arith.constant 0 : index
      %39 = vector.load %arg4[%c0_15, %c0_16] : memref<512x512xbf16, #tpu.memory_space<vmem>>, vector<512x512xbf16>
      %cst_17 = arith.constant dense<0.000000e+00> : vector<2x512xf32>
      %40 = tpu.matmul %38, %39, %cst_17 {dimension_numbers = #tpu.dot_dimension_numbers<[1], [0], [0], [1], [0, 0, 1, 1], [], []>} : vector<2x512xbf16>, vector<512x512xbf16>, vector<2x512xf32> -> vector<2x512xf32>
      %cst_18 = arith.constant dense<0.000000e+00> : vector<512xf32>
      %41 = vector.multi_reduction <add>, %40, %cst_18 [0] : vector<2x512xf32> to vector<512xf32>
      %42 = vector.shape_cast %41 : vector<512xf32> to vector<1x512xf32>
      %cst_19 = arith.constant 2.000000e+00 : f32
      %43 = vector.broadcast %cst_19 : f32 to vector<1x512xf32>
      %44 = arith.divf %42, %43 : vector<1x512xf32>
      %45 = vector.broadcast %44 : vector<1x512xf32> to vector<2x512xf32>
      %46 = arith.subf %40, %45 : vector<2x512xf32>
      %47 = arith.mulf %46, %46 : vector<2x512xf32>
      %cst_20 = arith.constant dense<0.000000e+00> : vector<512xf32>
      %48 = vector.multi_reduction <add>, %47, %cst_20 [0] : vector<2x512xf32> to vector<512xf32>
      %49 = vector.shape_cast %48 : vector<512xf32> to vector<1x512xf32>
      %cst_21 = arith.constant 2.000000e+00 : f32
      %50 = vector.broadcast %cst_21 : f32 to vector<1x512xf32>
      %51 = arith.divf %49, %50 : vector<1x512xf32>
      %c0_22 = arith.constant 0 : index
      %c0_23 = arith.constant 0 : index
      %52 = vector.load %arg5[%c0_22, %c0_23] : memref<1x512xf32, #tpu.memory_space<vmem>>, vector<1x512xf32>
      %cst_24 = arith.constant 9.99999974E-6 : f32
      %53 = vector.broadcast %cst_24 : f32 to vector<1x512xf32>
      %54 = arith.addf %51, %53 : vector<1x512xf32>
      %55 = math.rsqrt %54 : vector<1x512xf32>
      %56 = arith.mulf %52, %55 : vector<1x512xf32>
      %c0_25 = arith.constant 0 : index
      %c0_26 = arith.constant 0 : index
      %57 = vector.load %arg6[%c0_25, %c0_26] : memref<1x512xf32, #tpu.memory_space<vmem>>, vector<1x512xf32>
      %58 = arith.mulf %44, %56 : vector<1x512xf32>
      %59 = arith.subf %57, %58 : vector<1x512xf32>
      %60 = vector.broadcast %56 : vector<1x512xf32> to vector<2x512xf32>
      %61 = arith.mulf %40, %60 : vector<2x512xf32>
      %62 = vector.broadcast %59 : vector<1x512xf32> to vector<2x512xf32>
      %63 = arith.addf %61, %62 : vector<2x512xf32>
      %cst_27 = arith.constant 0.000000e+00 : f32
      %64 = vector.broadcast %cst_27 : f32 to vector<2x512xf32>
      %65 = arith.maximumf %63, %64 : vector<2x512xf32>
      %66 = arith.truncf %65 : vector<2x512xf32> to vector<2x512xbf16>
      %c0_28 = arith.constant 0 : index
      %c0_29 = arith.constant 0 : index
      %67 = vector.load %arg7[%c0_28, %c0_29] : memref<512x128xbf16, #tpu.memory_space<vmem>>, vector<512x128xbf16>
      %cst_30 = arith.constant dense<0.000000e+00> : vector<2x128xf32>
      %68 = tpu.matmul %66, %67, %cst_30 {dimension_numbers = #tpu.dot_dimension_numbers<[1], [0], [0], [1], [0, 0, 1, 1], [], []>} : vector<2x512xbf16>, vector<512x128xbf16>, vector<2x128xf32> -> vector<2x128xf32>
      %c0_31 = arith.constant 0 : index
      %c0_32 = arith.constant 0 : index
      %69 = vector.load %arg8[%c0_31, %c0_32] : memref<1x128xf32, #tpu.memory_space<vmem>>, vector<1x128xf32>
      %70 = vector.broadcast %69 : vector<1x128xf32> to vector<2x128xf32>
      %71 = arith.addf %68, %70 : vector<2x128xf32>
      %c0_33 = arith.constant 0 : index
      %c0_34 = arith.constant 0 : index
      %72 = vector.load %arg9[%c0_33, %c0_34] : memref<2x128xf32, #tpu.memory_space<vmem>>, vector<2x128xf32>
      tpu.vector_store %arg9[%c0_33, %c0_34], %71 {strides = array<i32>} : memref<2x128xf32, #tpu.memory_space<vmem>>, vector<2x128xf32>,
    } else {
    }
    return
  }
  func.func @transform_0(%arg0: i32) -> (i32, i32, i32) {
    %c0_i32 = arith.constant 0 : i32
    %c0_i32_0 = arith.constant 0 : i32
    %c0_i32_1 = arith.constant 0 : i32
    return %arg0, %c0_i32, %c0_i32_0 : i32, i32, i32
  }
  func.func @transform_1(%arg0: i32) -> (i32, i32) {
    %c0_i32 = arith.constant 0 : i32
    %c0_i32_0 = arith.constant 0 : i32
    %c0_i32_1 = arith.constant 0 : i32
    return %c0_i32, %c0_i32_0 : i32, i32
  }
  func.func @transform_2(%arg0: i32) -> (i32, i32) {
    %c0_i32 = arith.constant 0 : i32
    %c0_i32_0 = arith.constant 0 : i32
    %c0_i32_1 = arith.constant 0 : i32
    return %c0_i32, %c0_i32_0 : i32, i32
  }
  func.func @transform_3(%arg0: i32) -> (i32, i32) {
    %c0_i32 = arith.constant 0 : i32
    %c0_i32_0 = arith.constant 0 : i32
    %c0_i32_1 = arith.constant 0 : i32
    return %c0_i32, %c0_i32_0 : i32, i32
  }
  func.func @transform_4(%arg0: i32) -> (i32, i32) {
    %c0_i32 = arith.constant 0 : i32
    %c0_i32_0 = arith.constant 0 : i32
    %c0_i32_1 = arith.constant 0 : i32
    return %c0_i32, %c0_i32_0 : i32, i32
  }
  func.func @transform_5(%arg0: i32) -> (i32, i32) {
    %c0_i32 = arith.constant 0 : i32
    %c0_i32_0 = arith.constant 0 : i32
    %c0_i32_1 = arith.constant 0 : i32
    return %c0_i32, %c0_i32_0 : i32, i32
  }
  func.func @transform_6(%arg0: i32) -> (i32, i32) {
    %c0_i32 = arith.constant 0 : i32
    %c0_i32_0 = arith.constant 0 : i32
    %c0_i32_1 = arith.constant 0 : i32
    return %c0_i32, %c0_i32_0 : i32, i32
  }
  func.func @transform_7(%arg0: i32) -> (i32, i32) {
    %c0_i32 = arith.constant 0 : i32
    %c0_i32_0 = arith.constant 0 : i32
    %c0_i32_1 = arith.constant 0 : i32
    return %c0_i32, %c0_i32_0 : i32, i32
  }
  func.func @transform_8(%arg0: i32) -> (i32, i32) {
    %c0_i32 = arith.constant 0 : i32
    %c0_i32_0 = arith.constant 0 : i32
    %c0_i32_1 = arith.constant 0 : i32
    return %c0_i32, %c0_i32_0 : i32, i32
  }
}

</mosaic_0001>

<bundles_post_ra>
// kernel: simclr_forward.1
= control target key start
LH: loop header
LB: loop body
LE: loop exit
PB: predicated region body
PF: predicated region fallthrough
CT: control target
= control target key end

     0   :  { %13 = vsyncpa [#allocation4], 0  ;;  %s5779_s0 = inlined_call_operand.vmem [shape: bf16[2,4,256], index: 0, kind: input, shape index: {}]   ;;  %s5780_s1 = inlined_call_operand.vmem [shape: bf16[4,512], index: 1, kind: input, shape index: {}]   ;;  %s5781_s2 = inlined_call_operand.vmem [shape: f32[1,512], index: 2, kind: input, shape index: {}]   ;;  %s5782_s3 = inlined_call_operand.hbm [shape: bf16[512,512], index: 3, kind: input, shape index: {}]   ;;  %s5783_s4 = inlined_call_operand.hbm [shape: f32[1,512], index: 4, kind: input, shape index: {}]   ;;  %s5784_s5 = inlined_call_operand.hbm [shape: f32[1,512], index: 5, kind: input, shape index: {}]   ;;  %s5785_s6 = inlined_call_operand.vmem [shape: bf16[512,128], index: 6, kind: input, shape index: {}]   ;;  %s5786_s7 = inlined_call_operand.vmem [shape: f32[1,128], index: 7, kind: input, shape index: {}]   ;;  %s5787_s8 = inlined_call_operand.hbm [shape: f32[2,128], index: 8, kind: output, shape index: {}]  }
   0x1   :  { %14 = vsyncpa [#allocation7], 0  ;;  %s40_s29 = sshll.u32 %s5783_s4, 4  ;;  %s41_s29 = int_to_ptr.hbm [resolvable:$true] %s40_s29 }
   0x2   :  { %15 = vsyncpa [#allocation5], 0  ;;  %s4258_s30 = smov [#allocation6]   ;;  %s26_s12 = sshll.u32 %s5782_s3, 4  ;;  %s27_s12 = int_to_ptr.hbm [resolvable:$true] %s26_s12 }
   0x3   :  { %s42_s9 = sshll.u32 %s4258_s30, 4  ;;  %s4259_s13 = smov [#allocation3]   ;;  %s43_s9 = int_to_ptr.vmem [resolvable:$true] %s42_s9 }
   0x4   :  { %45 = dma.hbm_to_vmem [thread:$0]  %s41_s29, 64, %s43_s9, [#allocation7]  }
   0x5   :  { %s28_s14 = sshll.u32 %s4259_s13, 4  ;;  %s4260_s15 = smov 256   ;;  %s29_s14 = int_to_ptr.vmem [resolvable:$true] %s28_s14 }
   0x6   :  { %s4261_s16 = smov 16   ;;  %s51_s4 = sshll.u32 %s5784_s5, 4  ;;  %s52_s4 = int_to_ptr.hbm [resolvable:$true] %s51_s4 }
   0x7   :  { %34 = dma.hbm_to_vmem [thread:$0]  %s27_s12, 16384, %s29_s14, [#allocation4], %s4260_s15, %s4260_s15, %s4261_s16  }
   0x8   :  { %s4262_s19 = smov [#allocation8]  }
   0x9   :  { %s53_s20 = sshll.u32 %s4262_s19, 4  ;;  %s54_s20 = int_to_ptr.vmem [resolvable:$true] %s53_s20 }
   0xa   :  { %56 = dma.hbm_to_vmem [thread:$0]  %s52_s4, 64, %s54_s20, [#allocation7]  }
   0xb   :  { %4252 = dma.done.wait [#allocation4], 16384  }
   0xc   :  { %4253 = vsyncadd [#allocation4], 4294950912 }
   0xd   :  { %4254 = dma.done.wait [#allocation7], 128  }
   0xe   :  { %4255 = vsyncadd [#allocation7], 4294967168  ;;  %v4132_v0 = vld [vmem:[%s5779_s0] sm:$0xff]   ;;  %vm364_vm0 = vcmask 1041408   ;;  %vm267_vm1 = vcmask 31744   ;;  %vm1659_vm14 = vcmask 1045508  }
   0xf   :  { %v4133_v1 = vunpack.c.l.bf16 %v4132_v0  ;;  %v4134_v2 = vunpack.c.h.bf16 %v4132_v0  ;;  %v74_v5 = vld [vmem:[%s5780_s1] sm:$0xff]  ;;  %vm1661_vm15 = vcmask 1043456   ;;  %s4265_s11 = smov [#allocation9]   ;;  %s3174_s15 = sshll.u32 %s5787_s8, 4  ;;  %s3175_s15 = int_to_ptr.hbm [resolvable:$true] %s3174_s15 }
  0x10   :  { %s3172_s12 = sshll.u32 %s4265_s11, 4  ;;  %s3173_s12 = int_to_ptr.vmem [resolvable:$true] %s3172_s12 }
  0x11   :  { %81 = vst [vmem:[#allocation1] ss:$2 sm:$0xff] %v4133_v1 }
  0x18   :  { %v82_v3 = vld.sshfl [vmem:[#allocation1] sm:$0xff pattern:$0x75316420]  ;;  %v83_v4 = vld.sshfl [vmem:[#allocation1 + $0x8] sm:$0xff pattern:$0x75316420] }
  0x19   :  { %86 = vxpose.xlu0.b32.start.end [1/1] (short) %v82_v3, 128  ;;  %151 = vst [vmem:[#allocation1] ss:$2 sm:$0xff] %v4134_v2 }
  0x20   :  { %v152_v6 = vld.sshfl [vmem:[#allocation1] sm:$0xff pattern:$0x75316420]  ;;  %v153_v7 = vld.sshfl [vmem:[#allocation1 + $0x8] sm:$0xff pattern:$0x75316420] }
  0x21   :  { %156 = vxpose.xlu1.b32.start.end [1/1] (short) %v152_v6, 128  ;;  %262 = vst [vmem:[#allocation1] ss:$4 sm:$0xff] %v74_v5 }
  0x28   :  { %v263_v8 = vld.sshfl [vmem:[#allocation1] sm:$0xff pattern:$0x73625140]  ;;  %v264_v10 = vld.sshfl [vmem:[#allocation1 + $0x8] sm:$0xff pattern:$0x73625140] }
  0x29   :  { %v365_v9 = vsel %vm364_vm0, %v263_v8, 0  ;;  %v367_v11 = vsel %vm364_vm0, %v264_v10, 0  ;;  %v265_v12 = vld.sshfl [vmem:[#allocation1 + $0x10] sm:$0xff pattern:$0x73625140] }
  0x2a   :  { %380 = vmatpush.bf16.msra.mxu0 %v365_v9  ;;  %549 = vmatpush.bf16.msra.mxu1 %v367_v11  ;;  %v369_v13 = vsel %vm364_vm0, %v265_v12, 0  ;;  %v266_v14 = vld.sshfl [vmem:[#allocation1 + $0x18] sm:$0xff pattern:$0x73625140] }
  0x2b   :  { %718 = vmatpush.bf16.msra.mxu2 %v369_v13  ;;  %v371_v15 = vsel %vm364_vm0, %v266_v14, 0 }
  0x2c   :  { %887 = vmatpush.bf16.msra.mxu3 %v371_v15 }
  0x99   :  { %118 = vxpose.xlu0.b32.start.end [1/1] (short) %v83_v4, 128 }
  0xa1   :  { %188 = vxpose.xlu1.b32.start.end [1/1] (short) %v153_v7, 128 }
  0xbd   :  { %v102_v16 = vpop.trf.xlu0 }
  0xc5   :  { %v103_v17 = vpop.trf.xlu0 }
  0xc6   :  { %v220_v18 = vpack.c.bf16 %v103_v17, %v102_v16 }
  0xc8   :  { %3187 = vmatmul.msk.bf16.vlgmr.msra.gmra.mxu0 %vm267_vm1, %v220_v18  ;;  %3219 = vmatmul.msk.bf16.vlgmr.msra.gmra.mxu1 %vm267_vm1, %v220_v18 }
  0xc9   :  { %3251 = vmatmul.msk.bf16.vlgmr.msra.gmra.mxu2 %vm267_vm1, %v220_v18  ;;  %3283 = vmatmul.msk.bf16.vlgmr.msra.gmra.mxu3 %vm267_vm1, %v220_v18 }
  0xcd   :  { %v104_v19 = vpop.trf.xlu0 }
  0xd5   :  { %v105_v20 = vpop.trf.xlu0 }
  0xd6   :  { %v221_v21 = vpack.c.bf16 %v105_v20, %v104_v19 }
  0xd8   :  { %3188 = vmatmul.msk.bf16.gmra.mxu0 %vm267_vm1, %v221_v21  ;;  %3220 = vmatmul.msk.bf16.gmra.mxu1 %vm267_vm1, %v221_v21 }
  0xd9   :  { %3252 = vmatmul.msk.bf16.gmra.mxu2 %vm267_vm1, %v221_v21  ;;  %3284 = vmatmul.msk.bf16.gmra.mxu3 %vm267_vm1, %v221_v21 }
  0xdd   :  { %v106_v22 = vpop.trf.xlu0 }
  0xe5   :  { %v107_v23 = vpop.trf.xlu0 }
  0xe6   :  { %v222_v24 = vpack.c.bf16 %v107_v23, %v106_v22 }
  0xe8   :  { %3189 = vmatmul.msk.bf16.gmra.mxu0 %vm267_vm1, %v222_v24  ;;  %3221 = vmatmul.msk.bf16.gmra.mxu1 %vm267_vm1, %v222_v24 }
  0xe9   :  { %3253 = vmatmul.msk.bf16.gmra.mxu2 %vm267_vm1, %v222_v24  ;;  %3285 = vmatmul.msk.bf16.gmra.mxu3 %vm267_vm1, %v222_v24 }
  0xed   :  { %v108_v25 = vpop.trf.xlu0 }
  0xf5   :  { %v109_v26 = vpop.trf.xlu0 }
  0xf6   :  { %v223_v27 = vpack.c.bf16 %v109_v26, %v108_v25 }
  0xf8   :  { %3190 = vmatmul.msk.bf16.gmra.mxu0 %vm267_vm1, %v223_v27  ;;  %3222 = vmatmul.msk.bf16.gmra.mxu1 %vm267_vm1, %v223_v27 }
  0xf9   :  { %3254 = vmatmul.msk.bf16.gmra.mxu2 %vm267_vm1, %v223_v27  ;;  %3286 = vmatmul.msk.bf16.gmra.mxu3 %vm267_vm1, %v223_v27 }
  0xfd   :  { %v110_v28 = vpop.trf.xlu0 }
 0x105   :  { %v111_v29 = vpop.trf.xlu0 }
 0x106   :  { %v224_v30 = vpack.c.bf16 %v111_v29, %v110_v28 }
 0x108   :  { %3191 = vmatmul.msk.bf16.gmra.mxu0 %vm267_vm1, %v224_v30  ;;  %3223 = vmatmul.msk.bf16.gmra.mxu1 %vm267_vm1, %v224_v30 }
 0x109   :  { %3255 = vmatmul.msk.bf16.gmra.mxu2 %vm267_vm1, %v224_v30  ;;  %3287 = vmatmul.msk.bf16.gmra.mxu3 %vm267_vm1, %v224_v30 }
 0x10d   :  { %v112_v31 = vpop.trf.xlu0 }
 0x115   :  { %v113_v32 = vpop.trf.xlu0 }
 0x116   :  { %v225_v33 = vpack.c.bf16 %v113_v32, %v112_v31 }
 0x118   :  { %3192 = vmatmul.msk.bf16.gmra.mxu0 %vm267_vm1, %v225_v33  ;;  %3224 = vmatmul.msk.bf16.gmra.mxu1 %vm267_vm1, %v225_v33 }
 0x119   :  { %3256 = vmatmul.msk.bf16.gmra.mxu2 %vm267_vm1, %v225_v33  ;;  %3288 = vmatmul.msk.bf16.gmra.mxu3 %vm267_vm1, %v225_v33 }
 0x11d   :  { %v114_v34 = vpop.trf.xlu0 }
 0x125   :  { %v115_v35 = vpop.trf.xlu0 }
 0x126   :  { %v226_v36 = vpack.c.bf16 %v115_v35, %v114_v34 }
 0x128   :  { %3193 = vmatmul.msk.bf16.gmra.mxu0 %vm267_vm1, %v226_v36  ;;  %3225 = vmatmul.msk.bf16.gmra.mxu1 %vm267_vm1, %v226_v36 }
 0x129   :  { %3257 = vmatmul.msk.bf16.gmra.mxu2 %vm267_vm1, %v226_v36  ;;  %3289 = vmatmul.msk.bf16.gmra.mxu3 %vm267_vm1, %v226_v36  ;;  %v172_v36 = vpop.trf.xlu1 }
 0x12d   :  { %v116_v37 = vpop.trf.xlu0 }
 0x135   :  { %v117_v38 = vpop.trf.xlu0 }
 0x136   :  { %v227_v39 = vpack.c.bf16 %v117_v38, %v116_v37 }
 0x138   :  { %3194 = vmatmul.msk.bf16.gmra.mxu0 %vm267_vm1, %v227_v39  ;;  %3226 = vmatmul.msk.bf16.gmra.mxu1 %vm267_vm1, %v227_v39 }
 0x139   :  { %3258 = vmatmul.msk.bf16.gmra.mxu2 %vm267_vm1, %v227_v39  ;;  %3290 = vmatmul.msk.bf16.gmra.mxu3 %vm267_vm1, %v227_v39 }
 0x13d   :  { %v134_v40 = vpop.trf.xlu0 }
 0x145   :  { %v135_v41 = vpop.trf.xlu0  ;;  %v4362_v42 = vpop.f32.mrf.mxu0 }
 0x146   :  { %v228_v43 = vpack.c.bf16 %v135_v41, %v134_v40  ;;  %v4364_v44 = vpop.f32.mrf.mxu1 }
 0x148   :  { %3195 = vmatmul.msk.bf16.gmra.mxu0 %vm267_vm1, %v228_v43  ;;  %3227 = vmatmul.msk.bf16.gmra.mxu1 %vm267_vm1, %v228_v43 }
 0x149   :  { %3259 = vmatmul.msk.bf16.gmra.mxu2 %vm267_vm1, %v228_v43  ;;  %3291 = vmatmul.msk.bf16.gmra.mxu3 %vm267_vm1, %v228_v43  ;;  %v173_v43 = vpop.trf.xlu1 }
 0x14c   :  { %v4370_v45 = vpop.f32.mrf.mxu2  ;;  %v4372_v46 = vpop.f32.mrf.mxu3 }
 0x14d   :  { %5790 = vst [vmem:[#allocation13_spill] sm:$0xff] %v4370_v45  ;;  %v136_v47 = vpop.trf.xlu0  ;;  %v4374_v48 = vpop.f32.mrf.mxu0  ;;  %v236_v45 = vpack.c.bf16 %v173_v43, %v172_v36 }
 0x14e   :  { %5791 = vst [vmem:[#allocation14_spill] sm:$0xff] %v4372_v46  ;;  %v4376_v49 = vpop.f32.mrf.mxu1 }
 0x154   :  { %v4378_v50 = vpop.f32.mrf.mxu2  ;;  %v4380_v51 = vpop.f32.mrf.mxu3 }
 0x155   :  { %5792 = vst [vmem:[#allocation15_spill] sm:$0xff] %v4378_v50  ;;  %v137_v52 = vpop.trf.xlu0  ;;  %v4382_v53 = vpop.f32.mrf.mxu0 }
 0x156   :  { %5793 = vst [vmem:[#allocation16_spill] sm:$0xff] %v4380_v51  ;;  %v229_v54 = vpack.c.bf16 %v137_v52, %v136_v47  ;;  %v4384_v55 = vpop.f32.mrf.mxu1 }
 0x158   :  { %3196 = vmatmul.msk.bf16.gmra.mxu0 %vm267_vm1, %v229_v54  ;;  %3228 = vmatmul.msk.bf16.gmra.mxu1 %vm267_vm1, %v229_v54 }
 0x159   :  { %3260 = vmatmul.msk.bf16.gmra.mxu2 %vm267_vm1, %v229_v54  ;;  %3292 = vmatmul.msk.bf16.gmra.mxu3 %vm267_vm1, %v229_v54 }
 0x15c   :  { %v4390_v56 = vpop.f32.mrf.mxu2  ;;  %v4392_v57 = vpop.f32.mrf.mxu3 }
 0x15d   :  { %5794 = vst [vmem:[#allocation17_spill] sm:$0xff] %v4390_v56  ;;  %v138_v58 = vpop.trf.xlu0  ;;  %v4394_v59 = vpop.f32.mrf.mxu0 }
 0x15e   :  { %5795 = vst [vmem:[#allocation18_spill] sm:$0xff] %v4392_v57  ;;  %v4396_v60 = vpop.f32.mrf.mxu1  ;;  %v4509_v57 = vld [vmem:[%s5781_s2] sm:$0xf] }
 0x164   :  { %v4398_v61 = vpop.f32.mrf.mxu2  ;;  %v4400_v62 = vpop.f32.mrf.mxu3 }
 0x165   :  { %5796 = vst [vmem:[#allocation19_spill] sm:$0xff] %v4398_v61  ;;  %v139_v63 = vpop.trf.xlu0  ;;  %v4402_v0 = vpop.f32.mrf.mxu0 }
 0x166   :  { %5797 = vst [vmem:[#allocation20_spill] sm:$0xff] %v4400_v62  ;;  %v230_v1 = vpack.c.bf16 %v139_v63, %v138_v58  ;;  %v4404_v2 = vpop.f32.mrf.mxu1  ;;  %v4514_v62 = vperm.slane %v4509_v57, 0 }
 0x168   :  { %3197 = vmatmul.msk.bf16.gmra.mxu0 %vm267_vm1, %v230_v1  ;;  %3229 = vmatmul.msk.bf16.gmra.mxu1 %vm267_vm1, %v230_v1 }
 0x169   :  { %3261 = vmatmul.msk.bf16.gmra.mxu2 %vm267_vm1, %v230_v1  ;;  %3293 = vmatmul.msk.bf16.gmra.mxu3 %vm267_vm1, %v230_v1 }
 0x16c   :  { %v4410_v3 = vpop.f32.mrf.mxu2  ;;  %v4412_v4 = vpop.f32.mrf.mxu3 }
 0x16d   :  { %5798 = vst [vmem:[#allocation21_spill] sm:$0xff] %v4410_v3  ;;  %v140_v5 = vpop.trf.xlu0  ;;  %v4414_v6 = vpop.f32.mrf.mxu0 }
 0x16e   :  { %5799 = vst [vmem:[#allocation22_spill] sm:$0xff] %v4412_v4  ;;  %v4416_v7 = vpop.f32.mrf.mxu1 }
 0x174   :  { %v4418_v8 = vpop.f32.mrf.mxu2  ;;  %v4420_v9 = vpop.f32.mrf.mxu3 }
 0x175   :  { %5800 = vst [vmem:[#allocation23_spill] sm:$0xff] %v4418_v8  ;;  %v141_v10 = vpop.trf.xlu0  ;;  %v4422_v11 = vpop.f32.mrf.mxu0 }
 0x176   :  { %5801 = vst [vmem:[#allocation24_spill] sm:$0xff] %v4420_v9  ;;  %v231_v12 = vpack.c.bf16 %v141_v10, %v140_v5  ;;  %v4424_v13 = vpop.f32.mrf.mxu1  ;;  %v4482_v5 = vpop.trf.xlu1 }
 0x178   :  { %3198 = vmatmul.msk.bf16.gmra.mxu0 %vm267_vm1, %v231_v12  ;;  %3230 = vmatmul.msk.bf16.gmra.mxu1 %vm267_vm1, %v231_v12 }
 0x179   :  { %3262 = vmatmul.msk.bf16.gmra.mxu2 %vm267_vm1, %v231_v12  ;;  %3294 = vmatmul.msk.bf16.gmra.mxu3 %vm267_vm1, %v231_v12 }
 0x17c   :  { %v4430_v14 = vpop.f32.mrf.mxu2  ;;  %v4432_v15 = vpop.f32.mrf.mxu3 }
 0x17d   :  { %5802 = vst [vmem:[#allocation25_spill] sm:$0xff] %v4430_v14  ;;  %v142_v16 = vpop.trf.xlu0  ;;  %v4434_v17 = vpop.f32.mrf.mxu0 }
 0x17e   :  { %5803 = vst [vmem:[#allocation26_spill] sm:$0xff] %v4432_v15  ;;  %v4436_v18 = vpop.f32.mrf.mxu1 }
 0x184   :  { %v4438_v19 = vpop.f32.mrf.mxu2  ;;  %v4440_v20 = vpop.f32.mrf.mxu3 }
 0x185   :  { %5804 = vst [vmem:[#allocation27_spill] sm:$0xff] %v4438_v19  ;;  %v143_v21 = vpop.trf.xlu0  ;;  %v4442_v22 = vpop.f32.mrf.mxu0 }
 0x186   :  { %5805 = vst [vmem:[#allocation28_spill] sm:$0xff] %v4440_v20  ;;  %v232_v23 = vpack.c.bf16 %v143_v21, %v142_v16  ;;  %v4444_v24 = vpop.f32.mrf.mxu1 }
 0x188   :  { %3199 = vmatmul.msk.bf16.gmra.mxu0 %vm267_vm1, %v232_v23  ;;  %3231 = vmatmul.msk.bf16.gmra.mxu1 %vm267_vm1, %v232_v23 }
 0x189   :  { %3263 = vmatmul.msk.bf16.gmra.mxu2 %vm267_vm1, %v232_v23  ;;  %3295 = vmatmul.msk.bf16.gmra.mxu3 %vm267_vm1, %v232_v23 }
 0x18c   :  { %v4450_v25 = vpop.f32.mrf.mxu2  ;;  %v4452_v26 = vpop.f32.mrf.mxu3 }
 0x18d   :  { %5806 = vst [vmem:[#allocation29_spill] sm:$0xff] %v4452_v26  ;;  %v144_v27 = vpop.trf.xlu0  ;;  %v4454_v28 = vpop.f32.mrf.mxu0 }
 0x18e   :  { %v4456_v29 = vpop.f32.mrf.mxu1 }
 0x194   :  { %v4458_v30 = vpop.f32.mrf.mxu2  ;;  %v4460_v31 = vpop.f32.mrf.mxu3 }
 0x195   :  { %5807 = vst [vmem:[#allocation30_spill] sm:$0xff] %v4460_v31  ;;  %v145_v32 = vpop.trf.xlu0  ;;  %v4462_v33 = vpop.f32.mrf.mxu0 }
 0x196   :  { %v233_v34 = vpack.c.bf16 %v145_v32, %v144_v27  ;;  %v4464_v35 = vpop.f32.mrf.mxu1  ;;  %v4494_v27 = vpop.trf.xlu1 }
 0x198   :  { %3200 = vmatmul.msk.bf16.gmra.mxu0 %vm267_vm1, %v233_v34  ;;  %3232 = vmatmul.msk.bf16.gmra.mxu1 %vm267_vm1, %v233_v34 }
 0x199   :  { %3264 = vmatmul.msk.bf16.gmra.mxu2 %vm267_vm1, %v233_v34  ;;  %3296 = vmatmul.msk.bf16.gmra.mxu3 %vm267_vm1, %v233_v34 }
 0x19c   :  { %v4470_v37 = vpop.f32.mrf.mxu2  ;;  %v4472_v38 = vpop.f32.mrf.mxu3 }
 0x19d   :  { %5808 = vst [vmem:[#allocation31_spill] sm:$0xff] %v4472_v38  ;;  %v146_v39 = vpop.trf.xlu0  ;;  %v409_v40 = vpop.f32.mrf.mxu0 }
 0x19e   :  { %v4474_v41 = vpop.f32.mrf.mxu1 }
 0x1a4   :  { %v4476_v47 = vpop.f32.mrf.mxu2  ;;  %v4478_v52 = vpop.f32.mrf.mxu3 }
 0x1a5   :  { %5809 = vst [vmem:[#allocation32_spill] sm:$0xff] %v4478_v52  ;;  %v147_v54 = vpop.trf.xlu0  ;;  %v412_v58 = vpop.f32.mrf.mxu0 }
 0x1a6   :  { %v234_v63 = vpack.c.bf16 %v147_v54, %v146_v39  ;;  %v4480_v1 = vpop.f32.mrf.mxu1  ;;  %v413_v52 = vadd.f32 %v412_v58, %v4514_v62  ;;  %v400_v58 = vadd.f32 %v4434_v17, %v4514_v62 }
 0x1a8   :  { %3201 = vmatmul.msk.bf16.gmra.mxu0 %vm267_vm1, %v234_v63  ;;  %3233 = vmatmul.msk.bf16.gmra.mxu1 %vm267_vm1, %v234_v63 }
 0x1a9   :  { %3265 = vmatmul.msk.bf16.gmra.mxu2 %vm267_vm1, %v234_v63  ;;  %3297 = vmatmul.msk.bf16.gmra.mxu3 %vm267_vm1, %v234_v63  ;;  %v4502_v63 = vpop.trf.xlu1 }
 0x1ac   :  { %v4488_v10 = vpop.f32.mrf.mxu2  ;;  %v4490_v12 = vpop.f32.mrf.mxu3 }
 0x1ad   :  { %5810 = vst [vmem:[#allocation33_spill] sm:$0xff] %v4490_v12  ;;  %v148_v16 = vpop.trf.xlu0  ;;  %v414_v21 = vpop.f32.mrf.mxu0 }
 0x1ae   :  { %v4492_v23 = vpop.f32.mrf.mxu1  ;;  %v415_v31 = vadd.f32 %v414_v21, %v4514_v62 }
 0x1b1   :  { %v4524_v26 = vpop.trf.xlu1 }
 0x1b4   :  { %v4496_v32 = vpop.f32.mrf.mxu2  ;;  %v4498_v34 = vpop.f32.mrf.mxu3 }
 0x1b5   :  { %5811 = vst [vmem:[#allocation34_spill] sm:$0xff] %v4498_v34  ;;  %v149_v39 = vpop.trf.xlu0  ;;  %v417_v54 = vpop.f32.mrf.mxu0 }
 0x1b6   :  { %v235_v46 = vpack.c.bf16 %v149_v39, %v148_v16  ;;  %v4500_v51 = vpop.f32.mrf.mxu1  ;;  %v418_v9 = vadd.f32 %v417_v54, %v4514_v62 }
 0x1b8   :  { %3202 = vmatmul.msk.bf16.gmra.mxu0 %vm267_vm1, %v235_v46  ;;  %3234 = vmatmul.msk.bf16.gmra.mxu1 %vm267_vm1, %v235_v46 }
 0x1b9   :  { %3266 = vmatmul.msk.bf16.gmra.mxu2 %vm267_vm1, %v235_v46  ;;  %3298 = vmatmul.msk.bf16.gmra.mxu3 %vm267_vm1, %v235_v46  ;;  %v1105_v46 = vmax.f32 %v418_v9, 0.0  ;;  %v4537_v21 = vpop.trf.xlu1  ;;  %v408_v9 = vadd.f32 %v4462_v33, %v4514_v62 }
 0x1bc   :  { %v4516_v16 = vpop.f32.mrf.mxu2  ;;  %v4518_v39 = vpop.f32.mrf.mxu3 }
 0x1bd   :  { %5812 = vst [vmem:[#allocation35_spill] sm:$0xff] %v4518_v39  ;;  %v419_v4 = vpop.f32.mrf.mxu0  ;;  %v1101_v39 = vmax.f32 %v415_v31, 0.0  ;;  %v405_v31 = vadd.f32 %v4454_v28, %v4514_v62 }
 0x1be   :  { %v420_v15 = vadd.f32 %v419_v4, %v4514_v62  ;;  %v4522_v20 = vpop.f32.mrf.mxu1  ;;  %v410_v4 = vadd.f32 %v409_v40, %v4514_v62  ;;  %v1089_v40 = vmax.f32 %v408_v9, 0.0  ;;  %v1077_v9 = vmax.f32 %v400_v58, 0.0 }
 0x1bf   :  { %v1085_v28 = vmax.f32 %v405_v31, 0.0 }
 0x1c0   :  { %v1109_v38 = vmax.f32 %v420_v15, 0.0  ;;  %v1097_v15 = vmax.f32 %v413_v52, 0.0  ;;  %v1093_v36 = vmax.f32 %v410_v4, 0.0  ;;  %v395_v4 = vadd.f32 %v4414_v6, %v4514_v62 }
 0x1c2   :  { %1330 = vmatpush.msrb.mxu0 %v1109_v38  ;;  %v403_v38 = vadd.f32 %v4442_v22, %v4514_v62  ;;  %v398_v22 = vadd.f32 %v4422_v11, %v4514_v62  ;;  %v390_v11 = vadd.f32 %v4394_v59, %v4514_v62  ;;  %v1069_v58 = vmax.f32 %v395_v4, 0.0 }
 0x1c3   :  { %v385_v59 = vadd.f32 %v4374_v48, %v4514_v62 }
 0x1c4   :  { %v4528_v12 = vpop.f32.mrf.mxu2  ;;  %v4530_v34 = vpop.f32.mrf.mxu3  ;;  %1331 = vmatpush.msrb.mxu0 %v1105_v46  ;;  %v1081_v46 = vmax.f32 %v403_v38, 0.0  ;;  %v1073_v17 = vmax.f32 %v398_v22, 0.0  ;;  %v237_v38 = vpack.c.bf16 %v4494_v27, %v4482_v5  ;;  %v1061_v5 = vmax.f32 %v390_v11, 0.0 }
 0x1c5   :  { %5813 = vst [vmem:[#allocation36_spill] sm:$0xff] %v4530_v34  ;;  %v4532_v54 = vpop.f32.mrf.mxu0  ;;  %v4590_v27 = vperm.slane %v4509_v57, 1  ;;  %v1053_v11 = vmax.f32 %v385_v59, 0.0 }
 0x1c6   :  { %v4535_v56 = vpop.f32.mrf.mxu1  ;;  %1332 = vmatpush.msrb.mxu0 %v1101_v39  ;;  %v4559_v39 = vpop.trf.xlu1 }
 0x1c8   :  { %3203 = vmatmul.msk.bf16.gmra.mxu0 %vm267_vm1, %v236_v45  ;;  %3235 = vmatmul.msk.bf16.gmra.mxu1 %vm267_vm1, %v236_v45 }
 0x1c9   :  { %3267 = vmatmul.msk.bf16.gmra.mxu2 %vm267_vm1, %v236_v45  ;;  %3299 = vmatmul.msk.bf16.gmra.mxu3 %vm267_vm1, %v236_v45 }
 0x1ca   :  { %1333 = vmatpush.msrb.mxu0 %v1097_v15  ;;  %v393_v15 = vadd.f32 %v4402_v0, %v4514_v62  ;;  %v388_v0 = vadd.f32 %v4382_v53, %v4514_v62  ;;  %v383_v53 = vadd.f32 %v4362_v42, %v4514_v62 }
 0x1cc   :  { %1334 = vmatpush.msrb.mxu0 %v1093_v36  ;;  %v4549_v33 = vpop.f32.mrf.mxu2  ;;  %v4551_v43 = vpop.f32.mrf.mxu3  ;;  %v1065_v22 = vmax.f32 %v393_v15, 0.0  ;;  %v589_v15 = vadd.f32 %v4522_v20, %v4590_v27  ;;  %v1049_v42 = vmax.f32 %v383_v53, 0.0  ;;  %v582_v20 = vadd.f32 %v4480_v1, %v4590_v27 }
 0x1cd   :  { %5814 = vst [vmem:[#allocation37_spill] sm:$0xff] %v4549_v33  ;;  %v4553_v52 = vpop.f32.mrf.mxu0  ;;  %v577_v1 = vadd.f32 %v4464_v35, %v4590_v27 }
 0x1ce   :  { %5815 = vst [vmem:[#allocation38_spill] sm:$0xff] %v4551_v43  ;;  %1335 = vmatpush.msrb.mxu0 %v1089_v40  ;;  %v4557_v45 = vpop.f32.mrf.mxu1 }
 0x1cf   :  { %v1090_v35 = vmax.f32 %v577_v1, 0.0 }
 0x1d0   :  { %1336 = vmatpush.msrb.mxu0 %v1085_v28  ;;  %v4579_v28 = vpop.trf.xlu1 }
 0x1d2   :  { %1337 = vmatpush.msrb.mxu0 %v1081_v46  ;;  %v1057_v46 = vmax.f32 %v388_v0, 0.0  ;;  %v584_v0 = vadd.f32 %v4492_v23, %v4590_v27  ;;  %v238_v23 = vpack.c.bf16 %v4524_v26, %v4502_v63  ;;  %v572_v26 = vadd.f32 %v4444_v24, %v4590_v27 }
 0x1d4   :  { %1338 = vmatpush.msrb.mxu0 %v1077_v9  ;;  %v4567_v36 = vpop.f32.mrf.mxu2  ;;  %v4569_v31 = vpop.f32.mrf.mxu3  ;;  %v1102_v43 = vmax.f32 %v584_v0, 0.0 }
 0x1d5   :  { %5816 = vst [vmem:[#allocation39_spill] sm:$0xff] %v4567_v36  ;;  %v4571_v40 = vpop.f32.mrf.mxu0 }
 0x1d6   :  { %5817 = vst [vmem:[#allocation40_spill] sm:$0xff] %v4569_v31  ;;  %1339 = vmatpush.msrb.mxu0 %v1073_v17  ;;  %v4577_v6 = vpop.f32.mrf.mxu1 }
 0x1d8   :  { %1340 = vmatpush.msrb.mxu0 %v1069_v58  ;;  %3236 = vmatmul.msk.bf16.gmra.mxu1 %vm267_vm1, %v237_v38  ;;  %v4606_v58 = vpop.trf.xlu1 }
 0x1d9   :  { %3204 = vmatmul.msk.bf16.gmra.mxu0 %vm267_vm1, %v237_v38  ;;  %3268 = vmatmul.msk.bf16.gmra.mxu2 %vm267_vm1, %v237_v38 }
 0x1da   :  { %3300 = vmatmul.msk.bf16.gmra.mxu3 %vm267_vm1, %v237_v38  ;;  %1341 = vmatpush.msrb.mxu0 %v1065_v22  ;;  %v587_v38 = vadd.f32 %v4500_v51, %v4590_v27  ;;  %v1110_v22 = vmax.f32 %v589_v15, 0.0  ;;  %v579_v51 = vadd.f32 %v4474_v41, %v4590_v27  ;;  %v574_v41 = vadd.f32 %v4456_v29, %v4590_v27 }
 0x1db   :  { %v569_v29 = vadd.f32 %v4436_v18, %v4590_v27  ;;  %v562_v18 = vadd.f32 %v4404_v2, %v4590_v27  ;;  %v557_v2 = vadd.f32 %v4384_v55, %v4590_v27 }
 0x1dc   :  { %1342 = vmatpush.msrb.mxu0 %v1061_v5  ;;  %v4594_v4 = vpop.f32.mrf.mxu2  ;;  %v4596_v9 = vpop.f32.mrf.mxu3  ;;  %v1106_v5 = vmax.f32 %v587_v38, 0.0  ;;  %v1086_v0 = vmax.f32 %v574_v41, 0.0 }
 0x1dd   :  { %5818 = vst [vmem:[#allocation41_spill] sm:$0xff] %v4594_v4  ;;  %v4600_v48 = vpop.f32.mrf.mxu0  ;;  %v1078_v1 = vmax.f32 %v569_v29, 0.0  ;;  %v1058_v55 = vmax.f32 %v557_v2, 0.0 }
 0x1de   :  { %5819 = vst [vmem:[#allocation42_spill] sm:$0xff] %v4596_v9  ;;  %1343 = vmatpush.msrb.mxu0 %v1057_v46  ;;  %v4602_v17 = vpop.f32.mrf.mxu1 }
 0x1e0   :  { %1344 = vmatpush.msrb.mxu0 %v1053_v11  ;;  %v1098_v11 = vmax.f32 %v582_v20, 0.0  ;;  %v4626_v38 = vpop.trf.xlu1 }
 0x1e2   :  { %1345 = vmatpush.msrb.mxu0 %v1049_v42  ;;  %v1094_v42 = vmax.f32 %v579_v51, 0.0  ;;  %v1082_v51 = vmax.f32 %v572_v26, 0.0 }
 0x1e4   :  { %1410 = vmatpush.msra.mxu0 %v1110_v22  ;;  %v4612_v46 = vpop.f32.mrf.mxu2  ;;  %v4614_v59 = vpop.f32.mrf.mxu3 }
 0x1e5   :  { %5820 = vst [vmem:[#allocation43_spill] sm:$0xff] %v4612_v46  ;;  %v4618_v53 = vpop.f32.mrf.mxu0 }
 0x1e6   :  { %5821 = vst [vmem:[#allocation44_spill] sm:$0xff] %v4614_v59  ;;  %1411 = vmatpush.msra.mxu0 %v1106_v5  ;;  %v4622_v15 = vpop.f32.mrf.mxu1  ;;  %v567_v5 = vadd.f32 %v4424_v13, %v4590_v27  ;;  %v559_v13 = vadd.f32 %v4396_v60, %v4590_v27  ;;  %v554_v60 = vadd.f32 %v4376_v49, %v4590_v27 }
 0x1e8   :  { %1412 = vmatpush.msra.mxu0 %v1102_v43  ;;  %3237 = vmatmul.msk.bf16.gmra.mxu1 %vm267_vm1, %v238_v23  ;;  %v183_v24 = vpop.trf.xlu1 }
 0x1e9   :  { %3269 = vmatmul.msk.bf16.gmra.mxu2 %vm267_vm1, %v238_v23  ;;  %3205 = vmatmul.msk.bf16.gmra.mxu0 %vm267_vm1, %v238_v23  ;;  %v241_v31 = vpack.c.bf16 %v183_v24, %v4626_v38 }
 0x1ea   :  { %1413 = vmatpush.msra.mxu0 %v1098_v11  ;;  %3301 = vmatmul.msk.bf16.gmra.mxu3 %vm267_vm1, %v238_v23  ;;  %v564_v23 = vadd.f32 %v4416_v7, %v4590_v27  ;;  %v1074_v11 = vmax.f32 %v567_v5, 0.0  ;;  %v239_v7 = vpack.c.bf16 %v4559_v39, %v4537_v21  ;;  %v552_v21 = vadd.f32 %v4364_v44, %v4590_v27 }
 0x1eb   :  { %v240_v44 = vpack.c.bf16 %v4606_v58, %v4579_v28 }
 0x1ec   :  { %1414 = vmatpush.msra.mxu0 %v1094_v42  ;;  %v4636_v63 = vpop.f32.mrf.mxu2  ;;  %v4638_v43 = vpop.f32.mrf.mxu3  ;;  %v1070_v26 = vmax.f32 %v564_v23, 0.0  ;;  %v1054_v23 = vmax.f32 %v554_v60, 0.0 }
 0x1ed   :  { %5822 = vst [vmem:[#allocation45_spill] sm:$0xff] %v4636_v63  ;;  %v4642_v22 = vpop.f32.mrf.mxu0 }
 0x1ee   :  { %5823 = vst [vmem:[#allocation46_spill] sm:$0xff] %v4638_v43  ;;  %1415 = vmatpush.msra.mxu0 %v1090_v35  ;;  %v4644_v20 = vpop.f32.mrf.mxu1 }
 0x1f0   :  { %1416 = vmatpush.msra.mxu0 %v1086_v0  ;;  %v1066_v0 = vmax.f32 %v562_v18, 0.0  ;;  %v184_v5 = vpop.trf.xlu1 }
 0x1f2   :  { %1417 = vmatpush.msra.mxu0 %v1082_v51  ;;  %v1062_v51 = vmax.f32 %v559_v13, 0.0 }
 0x1f4   :  { %1418 = vmatpush.msra.mxu0 %v1078_v1  ;;  %v4652_v41 = vpop.f32.mrf.mxu2  ;;  %v4654_v42 = vpop.f32.mrf.mxu3 }
 0x1f5   :  { %5824 = vst [vmem:[#allocation47_spill] sm:$0xff] %v4652_v41  ;;  %v4658_v35 = vpop.f32.mrf.mxu0 }
 0x1f6   :  { %5825 = vst [vmem:[#allocation48_spill] sm:$0xff] %v4654_v42  ;;  %1419 = vmatpush.msra.mxu0 %v1074_v11  ;;  %v4662_v29 = vpop.f32.mrf.mxu1  ;;  %v1050_v11 = vmax.f32 %v552_v21, 0.0 }
 0x1f8   :  { %1420 = vmatpush.msra.mxu0 %v1070_v26  ;;  %3238 = vmatmul.msk.bf16.gmra.mxu1 %vm267_vm1, %v239_v7  ;;  %v185_v13 = vpop.trf.xlu1 }
 0x1f9   :  { %3270 = vmatmul.msk.bf16.gmra.mxu2 %vm267_vm1, %v239_v7  ;;  %3206 = vmatmul.msk.bf16.gmra.mxu0 %vm267_vm1, %v239_v7 }
 0x1fa   :  { %1421 = vmatpush.msra.mxu0 %v1066_v0  ;;  %3302 = vmatmul.msk.bf16.gmra.mxu3 %vm267_vm1, %v239_v7 }
 0x1fc   :  { %1422 = vmatpush.msra.mxu0 %v1062_v51  ;;  %v4674_v39 = vpop.f32.mrf.mxu2  ;;  %v4678_v49 = vpop.f32.mrf.mxu3 }
 0x1fd   :  { %5826 = vst [vmem:[#allocation49_spill] sm:$0xff] %v4674_v39  ;;  %v4676_v1 = vpop.f32.mrf.mxu0 }
 0x1fe   :  { %1423 = vmatpush.msra.mxu0 %v1058_v55  ;;  %5827 = vst [vmem:[#allocation50_spill] sm:$0xff] %v4678_v49  ;;  %v4680_v18 = vpop.f32.mrf.mxu1 }
 0x200   :  { %1424 = vmatpush.msra.mxu0 %v1054_v23  ;;  %v186_v60 = vpop.trf.xlu1 }
 0x202   :  { %1425 = vmatpush.msra.mxu0 %v1050_v11 }
 0x204   :  { %v4682_v26 = vpop.f32.mrf.mxu2  ;;  %v4690_v0 = vpop.f32.mrf.mxu3 }
 0x205   :  { %5828 = vst [vmem:[#allocation51_spill] sm:$0xff] %v4682_v26  ;;  %v4684_v7 = vpop.f32.mrf.mxu0 }
 0x206   :  { %v4688_v2 = vpop.f32.mrf.mxu1  ;;  %5829 = vst [vmem:[#allocation52_spill] sm:$0xff] %v4690_v0 }
 0x208   :  { %3239 = vmatmul.msk.bf16.gmra.mxu1 %vm267_vm1, %v240_v44  ;;  %v187_v23 = vpop.trf.xlu1 }
 0x209   :  { %3271 = vmatmul.msk.bf16.gmra.mxu2 %vm267_vm1, %v240_v44  ;;  %3207 = vmatmul.msk.bf16.gmra.mxu0 %vm267_vm1, %v240_v44  ;;  %v243_v50 = vpack.c.bf16 %v187_v23, %v186_v60 }
 0x20a   :  { %3303 = vmatmul.msk.bf16.gmra.mxu3 %vm267_vm1, %v240_v44 }
 0x20c   :  { %v4696_v51 = vpop.f32.mrf.mxu2  ;;  %v4702_v28 = vpop.f32.mrf.mxu3 }
 0x20d   :  { %5830 = vst [vmem:[#allocation53_spill] sm:$0xff] %v4696_v51  ;;  %v4698_v21 = vpop.f32.mrf.mxu0 }
 0x20e   :  { %v4700_v55 = vpop.f32.mrf.mxu1  ;;  %5831 = vst [vmem:[#allocation54_spill] sm:$0xff] %v4702_v28  ;;  %v242_v28 = vpack.c.bf16 %v185_v13, %v184_v5 }
 0x210   :  { %v204_v49 = vpop.trf.xlu1 }
 0x214   :  { %v4704_v58 = vpop.f32.mrf.mxu2  ;;  %v4713_v44 = vpop.f32.mrf.mxu3 }
 0x215   :  { %v447_v11 = vpop.f32.mrf.mxu0  ;;  %5832 = vst [vmem:[#allocation55_spill] sm:$0xff] %v4713_v44 }
 0x216   :  { %v4707_v9 = vpop.f32.mrf.mxu1 }
 0x218   :  { %3240 = vmatmul.msk.bf16.gmra.mxu1 %vm267_vm1, %v241_v31  ;;  %v205_v33 = vpop.trf.xlu1 }
 0x219   :  { %3272 = vmatmul.msk.bf16.gmra.mxu2 %vm267_vm1, %v241_v31  ;;  %3208 = vmatmul.msk.bf16.gmra.mxu0 %vm267_vm1, %v241_v31 }
 0x21a   :  { %3304 = vmatmul.msk.bf16.gmra.mxu3 %vm267_vm1, %v241_v31 }
 0x21c   :  { %v4715_v59 = vpop.f32.mrf.mxu2  ;;  %v4721_v24 = vpop.f32.mrf.mxu3 }
 0x21d   :  { %v449_v43 = vpop.f32.mrf.mxu0  ;;  %5833 = vst [vmem:[#allocation56_spill] sm:$0xff] %v4721_v24 }
 0x21e   :  { %v4717_v42 = vpop.f32.mrf.mxu1  ;;  %v450_v19 = vadd.f32 %v449_v43, %v4514_v62 }
 0x220   :  { %v4735_v24 = vpop.trf.xlu1  ;;  %v1157_v43 = vmax.f32 %v450_v19, 0.0 }
 0x224   :  { %v4719_v0 = vpop.f32.mrf.mxu2  ;;  %v4733_v4 = vpop.f32.mrf.mxu3 }
 0x225   :  { %v452_v38 = vpop.f32.mrf.mxu0  ;;  %5834 = vst [vmem:[#allocation57_spill] sm:$0xff] %v4733_v4 }
 0x226   :  { %v4723_v34 = vpop.f32.mrf.mxu1 }
 0x228   :  { %3241 = vmatmul.msk.bf16.gmra.mxu1 %vm267_vm1, %v242_v28  ;;  %v207_v4 = vpop.trf.xlu1 }
 0x229   :  { %3273 = vmatmul.msk.bf16.gmra.mxu2 %vm267_vm1, %v242_v28  ;;  %3209 = vmatmul.msk.bf16.gmra.mxu0 %vm267_vm1, %v242_v28 }
 0x22a   :  { %3305 = vmatmul.msk.bf16.gmra.mxu3 %vm267_vm1, %v242_v28 }
 0x22c   :  { %v4729_v31 = vpop.f32.mrf.mxu2  ;;  %v4743_v28 = vpop.f32.mrf.mxu3 }
 0x22d   :  { %v454_v44 = vpop.f32.mrf.mxu0  ;;  %5835 = vst [vmem:[#allocation58_spill] sm:$0xff] %v4743_v28  ;;  %v453_v28 = vadd.f32 %v452_v38, %v4514_v62  ;;  %v445_v38 = vadd.f32 %v4698_v21, %v4514_v62 }
 0x22e   :  { %v4731_v36 = vpop.f32.mrf.mxu1  ;;  %v455_v41 = vadd.f32 %v454_v44, %v4514_v62 }
 0x22f   :  { %v1149_v21 = vmax.f32 %v445_v38, 0.0 }
 0x230   :  { %v1165_v26 = vmax.f32 %v455_v41, 0.0  ;;  %v4764_v44 = vpop.trf.xlu1 }
 0x234   :  { %v4737_v5 = vpop.f32.mrf.mxu2  ;;  %v4755_v14 = vpop.f32.mrf.mxu3 }
 0x235   :  { %v457_v13 = vpop.f32.mrf.mxu0 }
 0x236   :  { %v4739_v46 = vpop.f32.mrf.mxu1  ;;  %v458_v3 = vadd.f32 %v457_v13, %v4514_v62 }
 0x238   :  { %3242 = vmatmul.msk.bf16.gmra.mxu1 %vm267_vm1, %v243_v50  ;;  %v1169_v39 = vmax.f32 %v458_v3, 0.0  ;;  %v448_v3 = vadd.f32 %v447_v11, %v4514_v62 }
 0x239   :  { %3274 = vmatmul.msk.bf16.gmra.mxu2 %vm267_vm1, %v243_v50  ;;  %3210 = vmatmul.msk.bf16.gmra.mxu0 %vm267_vm1, %v243_v50 }
 0x23a   :  { %3306 = vmatmul.msk.bf16.gmra.mxu3 %vm267_vm1, %v243_v50  ;;  %v1153_v41 = vmax.f32 %v448_v3, 0.0 }
 0x23c   :  { %v4747_v63 = vpop.f32.mrf.mxu2  ;;  %v4781_v11 = vpop.f32.mrf.mxu3 }
 0x23d   :  { %v459_v61 = vpop.f32.mrf.mxu0 }
 0x23e   :  { %v460_v60 = vadd.f32 %v459_v61, %v4514_v62  ;;  %v4751_v23 = vpop.f32.mrf.mxu1  ;;  %v244_v61 = vpack.c.bf16 %v205_v33, %v204_v49  ;;  %v443_v33 = vadd.f32 %v4684_v7, %v4514_v62  ;;  %v440_v49 = vadd.f32 %v4676_v1, %v4514_v62  ;;  %v209_v7 = vpop.trf.xlu1 }
 0x23f   :  { %v433_v1 = vadd.f32 %v4618_v53, %v4514_v62 }
 0x240   :  { %v1173_v8 = vmax.f32 %v460_v60, 0.0  ;;  %v1145_v60 = vmax.f32 %v443_v33, 0.0  ;;  %v1141_v3 = vmax.f32 %v440_v49, 0.0  ;;  %v245_v33 = vpack.c.bf16 %v207_v4, %v4735_v24 }
 0x241   :  { %v1129_v49 = vmax.f32 %v433_v1, 0.0 }
 0x242   :  { %1350 = vmatpush.msrb.mxu1 %v1173_v8  ;;  %v1161_v8 = vmax.f32 %v453_v28, 0.0  ;;  %v438_v28 = vadd.f32 %v4658_v35, %v4514_v62 }
 0x244   :  { %v4757_v50 = vpop.f32.mrf.mxu2  ;;  %1351 = vmatpush.msrb.mxu1 %v1169_v39  ;;  %v4802_v53 = vpop.f32.mrf.mxu3 }
 0x245   :  { %v4760_v13 = vpop.f32.mrf.mxu0 }
 0x246   :  { %v4762_v51 = vpop.f32.mrf.mxu1  ;;  %1352 = vmatpush.msrb.mxu1 %v1165_v26  ;;  %v4810_v24 = vpop.trf.xlu1 }
 0x248   :  { %3243 = vmatmul.msk.bf16.gmra.mxu1 %vm267_vm1, %v244_v61 }
 0x249   :  { %3275 = vmatmul.msk.bf16.gmra.mxu2 %vm267_vm1, %v244_v61  ;;  %1353 = vmatpush.msrb.mxu1 %v1161_v8  ;;  %v1137_v8 = vmax.f32 %v438_v28, 0.0 }
 0x24a   :  { %3211 = vmatmul.msk.bf16.gmra.mxu0 %vm267_vm1, %v244_v61  ;;  %3307 = vmatmul.msk.bf16.gmra.mxu3 %vm267_vm1, %v244_v61  ;;  %v435_v61 = vadd.f32 %v4642_v22, %v4514_v62  ;;  %v428_v22 = vadd.f32 %v4571_v40, %v4514_v62  ;;  %v423_v40 = vadd.f32 %v4532_v54, %v4514_v62 }
 0x24b   :  { %1354 = vmatpush.msrb.mxu1 %v1157_v43  ;;  %v430_v43 = vadd.f32 %v4600_v48, %v4514_v62  ;;  %v425_v48 = vadd.f32 %v4553_v52, %v4514_v62  ;;  %v624_v54 = vadd.f32 %v4731_v36, %v4590_v27  ;;  %v617_v36 = vadd.f32 %v4707_v9, %v4590_v27 }
 0x24c   :  { %v4775_v39 = vpop.f32.mrf.mxu2  ;;  %v1133_v35 = vmax.f32 %v435_v61, 0.0  ;;  %v1121_v28 = vmax.f32 %v428_v22, 0.0  ;;  %v4828_v22 = vpop.f32.mrf.mxu3  ;;  %v612_v9 = vadd.f32 %v4688_v2, %v4590_v27  ;;  %v604_v2 = vadd.f32 %v4644_v20, %v4590_v27 }
 0x24d   :  { %5836 = vst [vmem:[#allocation59_spill] sm:$0xff] %v4775_v39  ;;  %1355 = vmatpush.msrb.mxu1 %v1153_v41  ;;  %v4779_v26 = vpop.f32.mrf.mxu0  ;;  %v1125_v4 = vmax.f32 %v430_v43, 0.0  ;;  %v1117_v52 = vmax.f32 %v425_v48, 0.0  ;;  %v1113_v43 = vmax.f32 %v423_v40, 0.0  ;;  %v597_v20 = vadd.f32 %v4577_v6, %v4590_v27 }
 0x24e   :  { %v4783_v19 = vpop.f32.mrf.mxu1  ;;  %5839 = vst [vmem:[#allocation62_spill] sm:$0xff] %v4828_v22  ;;  %v211_v48 = vpop.trf.xlu1  ;;  %v592_v6 = vadd.f32 %v4535_v56, %v4590_v27 }
 0x24f   :  { %1356 = vmatpush.msrb.mxu1 %v1149_v21 }
 0x251   :  { %1357 = vmatpush.msrb.mxu1 %v1145_v60  ;;  %v629_v60 = vadd.f32 %v4751_v23, %v4590_v27  ;;  %v622_v23 = vadd.f32 %v4723_v34, %v4590_v27  ;;  %v246_v34 = vpack.c.bf16 %v209_v7, %v4764_v44 }
 0x253   :  { %1358 = vmatpush.msrb.mxu1 %v1141_v3  ;;  %v627_v3 = vadd.f32 %v4739_v46, %v4590_v27  ;;  %v1162_v40 = vmax.f32 %v622_v23, 0.0  ;;  %v607_v23 = vadd.f32 %v4662_v29, %v4590_v27 }
 0x254   :  { %v4791_v38 = vpop.f32.mrf.mxu2  ;;  %v4849_v44 = vpop.f32.mrf.mxu3 }
 0x255   :  { %5837 = vst [vmem:[#allocation60_spill] sm:$0xff] %v4791_v38  ;;  %1359 = vmatpush.msrb.mxu1 %v1137_v8 }
 0x256   :  { %v4796_v41 = vpop.f32.mrf.mxu0  ;;  %v4798_v21 = vpop.f32.mrf.mxu1  ;;  %5841 = vst [vmem:[#allocation64_spill] sm:$0xff] %v4849_v44 }
 0x257   :  { %1360 = vmatpush.msrb.mxu1 %v1133_v35  ;;  %v1174_v35 = vmax.f32 %v629_v60, 0.0 }
 0x258   :  { %3244 = vmatmul.msk.bf16.gmra.mxu1 %vm267_vm1, %v245_v33 }
 0x259   :  { %3276 = vmatmul.msk.bf16.gmra.mxu2 %vm267_vm1, %v245_v33  ;;  %1361 = vmatpush.msrb.mxu1 %v1129_v49  ;;  %v1166_v49 = vmax.f32 %v624_v54, 0.0 }
 0x25a   :  { %3212 = vmatmul.msk.bf16.gmra.mxu0 %vm267_vm1, %v245_v33  ;;  %3308 = vmatmul.msk.bf16.gmra.mxu3 %vm267_vm1, %v245_v33  ;;  %v1170_v33 = vmax.f32 %v627_v3, 0.0 }
 0x25b   :  { %1362 = vmatpush.msrb.mxu1 %v1125_v4  ;;  %v619_v4 = vadd.f32 %v4717_v42, %v4590_v27  ;;  %v1154_v42 = vmax.f32 %v617_v36, 0.0  ;;  %v599_v36 = vadd.f32 %v4602_v17, %v4590_v27  ;;  %v594_v17 = vadd.f32 %v4557_v45, %v4590_v27 }
 0x25c   :  { %v4816_v61 = vpop.f32.mrf.mxu2  ;;  %v1114_v45 = vmax.f32 %v592_v6, 0.0 }
 0x25d   :  { %5838 = vst [vmem:[#allocation61_spill] sm:$0xff] %v4816_v61  ;;  %1363 = vmatpush.msrb.mxu1 %v1121_v28  ;;  %v1158_v3 = vmax.f32 %v619_v4, 0.0  ;;  %v4869_v29 = vpop.f32.mrf.mxu3 }
 0x25e   :  { %v4820_v1 = vpop.f32.mrf.mxu0  ;;  %v4822_v8 = vpop.f32.mrf.mxu1  ;;  %5844 = vst [vmem:[#allocation67_spill] sm:$0xff] %v4869_v29 }
 0x25f   :  { %1364 = vmatpush.msrb.mxu1 %v1117_v52  ;;  %v614_v52 = vadd.f32 %v4700_v55, %v4590_v27  ;;  %v609_v55 = vadd.f32 %v4680_v18, %v4590_v27  ;;  %v602_v18 = vadd.f32 %v4622_v15, %v4590_v27 }
 0x261   :  { %1365 = vmatpush.msrb.mxu1 %v1113_v43  ;;  %v1150_v43 = vmax.f32 %v614_v52, 0.0  ;;  %v1142_v4 = vmax.f32 %v609_v55, 0.0 }
 0x263   :  { %1430 = vmatpush.msra.mxu1 %v1174_v35  ;;  %v212_v35 = vpop.trf.xlu1 }
 0x264   :  { %v4830_v46 = vpop.f32.mrf.mxu2 }
 0x265   :  { %5840 = vst [vmem:[#allocation63_spill] sm:$0xff] %v4830_v46  ;;  %1431 = vmatpush.msra.mxu1 %v1170_v33  ;;  %v1146_v33 = vmax.f32 %v612_v9, 0.0  ;;  %v1130_v9 = vmax.f32 %v602_v18, 0.0 }
 0x266   :  { %v4834_v28 = vpop.f32.mrf.mxu1  ;;  %v4839_v60 = vpop.f32.mrf.mxu0 }
 0x267   :  { %1432 = vmatpush.msra.mxu1 %v1166_v49 }
 0x268   :  { %3245 = vmatmul.msk.bf16.gmra.mxu1 %vm267_vm1, %v246_v34 }
 0x269   :  { %1433 = vmatpush.msra.mxu1 %v1162_v40  ;;  %3277 = vmatmul.msk.bf16.gmra.mxu2 %vm267_vm1, %v246_v34  ;;  %v1138_v40 = vmax.f32 %v607_v23, 0.0  ;;  %v1122_v23 = vmax.f32 %v597_v20, 0.0 }
 0x26a   :  { %3213 = vmatmul.msk.bf16.gmra.mxu0 %vm267_vm1, %v246_v34  ;;  %3309 = vmatmul.msk.bf16.gmra.mxu3 %vm267_vm1, %v246_v34  ;;  %v1134_v34 = vmax.f32 %v604_v2, 0.0 }
 0x26b   :  { %1434 = vmatpush.msra.mxu1 %v1158_v3  ;;  %v213_v55 = vpop.trf.xlu1 }
 0x26c   :  { %v4851_v7 = vpop.f32.mrf.mxu2  ;;  %v248_v56 = vpack.c.bf16 %v213_v55, %v212_v35 }
 0x26d   :  { %5842 = vst [vmem:[#allocation65_spill] sm:$0xff] %v4851_v7  ;;  %1435 = vmatpush.msra.mxu1 %v1154_v42  ;;  %v247_v42 = vpack.c.bf16 %v211_v48, %v4810_v24  ;;  %v1118_v24 = vmax.f32 %v594_v17, 0.0 }
 0x26e   :  { %v4855_v54 = vpop.f32.mrf.mxu1  ;;  %v4859_v49 = vpop.f32.mrf.mxu0 }
 0x26f   :  { %1436 = vmatpush.msra.mxu1 %v1150_v43  ;;  %v1126_v43 = vmax.f32 %v599_v36, 0.0 }
 0x271   :  { %1437 = vmatpush.msra.mxu1 %v1146_v33 }
 0x273   :  { %1438 = vmatpush.msra.mxu1 %v1142_v4  ;;  %v4892_v4 = vpop.f32.mrf.mxu3  ;;  %v214_v18 = vpop.trf.xlu1 }
 0x274   :  { %v4867_v52 = vpop.f32.mrf.mxu2  ;;  %5846 = vst [vmem:[#allocation69_spill] sm:$0xff] %v4892_v4 }
 0x275   :  { %5843 = vst [vmem:[#allocation66_spill] sm:$0xff] %v4867_v52  ;;  %1439 = vmatpush.msra.mxu1 %v1138_v40 }
 0x276   :  { %v4871_v3 = vpop.f32.mrf.mxu1  ;;  %v4876_v15 = vpop.f32.mrf.mxu0 }
 0x277   :  { %1440 = vmatpush.msra.mxu1 %v1134_v34 }
 0x278   :  { %3246 = vmatmul.msk.bf16.gmra.mxu1 %vm267_vm1, %v247_v42 }
 0x279   :  { %1441 = vmatpush.msra.mxu1 %v1130_v9  ;;  %3278 = vmatmul.msk.bf16.gmra.mxu2 %vm267_vm1, %v247_v42 }
 0x27a   :  { %3214 = vmatmul.msk.bf16.gmra.mxu0 %vm267_vm1, %v247_v42  ;;  %3310 = vmatmul.msk.bf16.gmra.mxu3 %vm267_vm1, %v247_v42 }
 0x27b   :  { %1442 = vmatpush.msra.mxu1 %v1126_v43  ;;  %v4901_v20 = vpop.f32.mrf.mxu3  ;;  %v215_v9 = vpop.trf.xlu1 }
 0x27c   :  { %v4888_v33 = vpop.f32.mrf.mxu2  ;;  %5848 = vst [vmem:[#allocation71_spill] sm:$0xff] %v4901_v20 }
 0x27d   :  { %1443 = vmatpush.msra.mxu1 %v1122_v23  ;;  %5845 = vst [vmem:[#allocation68_spill] sm:$0xff] %v4888_v33  ;;  %v249_v23 = vpack.c.bf16 %v215_v9, %v214_v18 }
 0x27e   :  { %v4886_v48 = vpop.f32.mrf.mxu1  ;;  %v4890_v2 = vpop.f32.mrf.mxu0 }
 0x27f   :  { %1444 = vmatpush.msra.mxu1 %v1118_v24 }
 0x281   :  { %1445 = vmatpush.msra.mxu1 %v1114_v45 }
 0x283   :  { %v4912_v55 = vpop.f32.mrf.mxu3  ;;  %v216_v43 = vpop.trf.xlu1 }
 0x284   :  { %v4898_v34 = vpop.f32.mrf.mxu2  ;;  %5850 = vst [vmem:[#allocation73_spill] sm:$0xff] %v4912_v55 }
 0x285   :  { %5847 = vst [vmem:[#allocation70_spill] sm:$0xff] %v4898_v34 }
 0x286   :  { %v4894_v40 = vpop.f32.mrf.mxu1  ;;  %v4896_v36 = vpop.f32.mrf.mxu0 }
 0x288   :  { %3247 = vmatmul.msk.bf16.gmra.mxu1 %vm267_vm1, %v248_v56 }
 0x289   :  { %3279 = vmatmul.msk.bf16.gmra.mxu2 %vm267_vm1, %v248_v56 }
 0x28a   :  { %3215 = vmatmul.msk.bf16.gmra.mxu0 %vm267_vm1, %v248_v56  ;;  %3311 = vmatmul.msk.bf16.gmra.mxu3 %vm267_vm1, %v248_v56 }
 0x28b   :  { %v4924_v56 = vpop.f32.mrf.mxu3  ;;  %v217_v29 = vpop.trf.xlu1 }
 0x28c   :  { %v4910_v35 = vpop.f32.mrf.mxu2  ;;  %5852 = vst [vmem:[#allocation75_spill] sm:$0xff] %v4924_v56  ;;  %v250_v9 = vpack.c.bf16 %v217_v29, %v216_v43  ;;  %v1305_v29 = vlaneseq }
 0x28d   :  { %5849 = vst [vmem:[#allocation72_spill] sm:$0xff] %v4910_v35 }
 0x28e   :  { %v4906_v42 = vpop.f32.mrf.mxu1  ;;  %v4908_v17 = vpop.f32.mrf.mxu0  ;;  %v1311_v52 = vshrl.u32 %v1305_v29, 7  ;;  %v4956_v34 = vand.u32 127, %v1305_v29 }
 0x290   :  { %v4952_v33 = vmul.u32 256, %v1311_v52 }
 0x292   :  { %vm1313_vm2 = vcmp.ge.s32.totalorder %v4956_v34, %v4952_v33 }
 0x293   :  { %v4932_v55 = vpop.f32.mrf.mxu3  ;;  %v218_v39 = vpop.trf.xlu1 }
 0x294   :  { %v4922_v45 = vpop.f32.mrf.mxu2  ;;  %5854 = vst [vmem:[#allocation77_spill] sm:$0xff] %v4932_v55 }
 0x295   :  { %5851 = vst [vmem:[#allocation74_spill] sm:$0xff] %v4922_v45 }
 0x296   :  { %v4914_v6 = vpop.f32.mrf.mxu1  ;;  %v4916_v24 = vpop.f32.mrf.mxu0 }
 0x298   :  { %3248 = vmatmul.msk.bf16.gmra.mxu1 %vm267_vm1, %v249_v23 }
 0x299   :  { %3280 = vmatmul.msk.bf16.gmra.mxu2 %vm267_vm1, %v249_v23 }
 0x29a   :  { %3216 = vmatmul.msk.bf16.gmra.mxu0 %vm267_vm1, %v249_v23  ;;  %3312 = vmatmul.msk.bf16.gmra.mxu3 %vm267_vm1, %v249_v23 }
 0x29b   :  { %v4942_v61 = vpop.f32.mrf.mxu3  ;;  %v219_v43 = vpop.trf.xlu1 }
 0x29c   :  { %v4930_v18 = vpop.f32.mrf.mxu2  ;;  %5856 = vst [vmem:[#allocation79_spill] sm:$0xff] %v4942_v61  ;;  %v251_v55 = vpack.c.bf16 %v219_v43, %v218_v39  ;;  %v4961_v43 = vadd.s32 256, %v4952_v33 }
 0x29d   :  { %5853 = vst [vmem:[#allocation76_spill] sm:$0xff] %v4930_v18 }
 0x29e   :  { %v4926_v22 = vpop.f32.mrf.mxu1  ;;  %v489_v44 = vpop.f32.mrf.mxu0  ;;  %vm1318_vm3 = vcmp.lt.s32.totalorder %v4956_v34, %v4961_v43 }
 0x29f   :  { %vm4987_vm6 = vmand %vm1313_vm2, %vm1318_vm3 }
 0x2a3   :  { %v4954_v61 = vpop.f32.mrf.mxu3 }
 0x2a4   :  { %v4940_v38 = vpop.f32.mrf.mxu2  ;;  %5858 = vst [vmem:[#allocation81_spill] sm:$0xff] %v4954_v61 }
 0x2a5   :  { %5855 = vst [vmem:[#allocation78_spill] sm:$0xff] %v4940_v38  ;;  %v1307_v38 = vadd.s32 128, %v4956_v34 }
 0x2a6   :  { %v4928_v4 = vpop.f32.mrf.mxu1  ;;  %v492_v20 = vpop.f32.mrf.mxu0 }
 0x2a7   :  { %vm1314_vm4 = vcmp.ge.s32.totalorder %v1307_v38, %v4952_v33  ;;  %vm1319_vm5 = vcmp.lt.s32.totalorder %v1307_v38, %v4961_v43  ;;  %v490_v38 = vadd.f32 %v489_v44, %v4514_v62 }
 0x2a8   :  { %3249 = vmatmul.msk.bf16.gmra.mxu1 %vm267_vm1, %v250_v9  ;;  %vm4996_vm7 = vmand %vm1314_vm4, %vm1319_vm5 }
 0x2a9   :  { %3281 = vmatmul.msk.bf16.gmra.mxu2 %vm267_vm1, %v250_v9 }
 0x2aa   :  { %3217 = vmatmul.msk.bf16.gmra.mxu0 %vm267_vm1, %v250_v9  ;;  %3313 = vmatmul.msk.bf16.gmra.mxu3 %vm267_vm1, %v250_v9 }
 0x2ac   :  { %v4949_v9 = vpop.f32.mrf.mxu2 }
 0x2ad   :  { %5857 = vst [vmem:[#allocation80_spill] sm:$0xff] %v4949_v9  ;;  %v4968_v9 = vperm.slane %v4509_v57, 2 }
 0x2ae   :  { %v4938_v23 = vpop.f32.mrf.mxu1  ;;  %v494_v56 = vpop.f32.mrf.mxu0 }
 0x2af   :  { %v798_v57 = vadd.f32 %v4757_v50, %v4968_v9  ;;  %v796_v50 = vadd.f32 %v4747_v63, %v4968_v9  ;;  %v793_v44 = vadd.f32 %v4737_v5, %v4968_v9  ;;  %v1221_v5 = vmax.f32 %v490_v38, 0.0 }
 0x2b6   :  { %v4944_v46 = vpop.f32.mrf.mxu1  ;;  %v497_v7 = vpop.f32.mrf.mxu0 }
 0x2b7   :  { %v498_v45 = vadd.f32 %v497_v7, %v4514_v62  ;;  %v758_v7 = vadd.f32 %v4528_v12, %v4968_v9  ;;  %v756_v12 = vadd.f32 %v4516_v16, %v4968_v9 }
 0x2b8   :  { %3250 = vmatmul.msk.bf16.gmra.mxu1 %vm267_vm1, %v251_v55 }
 0x2b9   :  { %3282 = vmatmul.msk.bf16.gmra.mxu2 %vm267_vm1, %v251_v55  ;;  %v1233_v29 = vmax.f32 %v498_v45, 0.0  ;;  %v1107_v63 = vmax.f32 %v756_v12, 0.0  ;;  %v1167_v12 = vmax.f32 %v793_v44, 0.0 }
 0x2ba   :  { %3218 = vmatmul.msk.bf16.gmra.mxu0 %vm267_vm1, %v251_v55  ;;  %3314 = vmatmul.msk.bf16.gmra.mxu3 %vm267_vm1, %v251_v55  ;;  %v495_v55 = vadd.f32 %v494_v56, %v4514_v62  ;;  %v493_v56 = vadd.f32 %v492_v20, %v4514_v62 }
 0x2bc   :  { %v1229_v45 = vmax.f32 %v495_v55, 0.0  ;;  %v753_v55 = vadd.f32 %v4496_v32, %v4968_v9  ;;  %v1225_v16 = vmax.f32 %v493_v56, 0.0  ;;  %v751_v32 = vadd.f32 %v4488_v10, %v4968_v9 }
 0x2bd   :  { %v1171_v56 = vmax.f32 %v796_v50, 0.0 }
 0x2be   :  { %v4958_v35 = vpop.f32.mrf.mxu1  ;;  %v499_v39 = vpop.f32.mrf.mxu0 }
 0x2bf   :  { %v500_v18 = vadd.f32 %v499_v39, %v4514_v62  ;;  %v4983_v39 = vpop.f32.mrf.mxu3 }
 0x2c0   :  { %5860 = vst [vmem:[#allocation83_spill] sm:$0xff] %v4983_v39  ;;  %v5788_v39 = vmov 0.00390625  }
 0x2c1   :  { %v1237_v52 = vmax.f32 %v500_v18, 0.0  ;;  %v4979_v18 = vpop.f32.mrf.mxu2 }
 0x2c2   :  { %5859 = vst [vmem:[#allocation82_spill] sm:$0xff] %v4979_v18  ;;  %v5925_v18 = vld [vmem:[#allocation66_spill] sm:$0xff] }
 0x2c3   :  { %1370 = vmatpush.msrb.mxu2 %v1237_v52  ;;  %v5923_v52 = vld [vmem:[#allocation70_spill] sm:$0xff] }
 0x2c5   :  { %1371 = vmatpush.msrb.mxu2 %v1233_v29  ;;  %v1111_v29 = vmax.f32 %v758_v7, 0.0  ;;  %v791_v7 = vadd.f32 %v4729_v31, %v4968_v9  ;;  %v746_v31 = vadd.f32 %v4470_v37, %v4968_v9  ;;  %v743_v37 = vadd.f32 %v4458_v30, %v4968_v9 }
 0x2c6   :  { %v4985_v61 = vpop.f32.mrf.mxu1 }
 0x2c7   :  { %5861 = vst [vmem:[#allocation84_spill] sm:$0xff] %v4985_v61  ;;  %v4994_v20 = vpop.f32.mrf.mxu0  ;;  %1372 = vmatpush.msrb.mxu2 %v1229_v45  ;;  %v488_v61 = vadd.f32 %v4916_v24, %v4514_v62  ;;  %v485_v24 = vadd.f32 %v4908_v17, %v4514_v62  ;;  %v1103_v45 = vmax.f32 %v753_v55, 0.0  ;;  %v788_v17 = vadd.f32 %v4719_v0, %v4968_v9 }
 0x2c8   :  { %5864 = vst [vmem:[#allocation85_spill] sm:$0xff] %v4994_v20  ;;  %v1175_v20 = vmax.f32 %v798_v57, 0.0  ;;  %3316 = vmatmul.msk.f32.vlgmr.msrb.gmra.mxu1 %vm4996_vm7, %v5788_v39  ;;  %v748_v57 = vadd.f32 %v4476_v47, %v4968_v9  ;;  %v480_v47 = vadd.f32 %v4890_v2, %v4514_v62  ;;  %v786_v0 = vadd.f32 %v4715_v59, %v4968_v9 }
 0x2c9   :  { %1373 = vmatpush.msrb.mxu2 %v1225_v16  ;;  %v1217_v10 = vmax.f32 %v488_v61, 0.0  ;;  %v5032_v50 = vpop.f32.mrf.mxu2  ;;  %v1213_v61 = vmax.f32 %v485_v24, 0.0  ;;  %v1163_v55 = vmax.f32 %v791_v7, 0.0  ;;  %v478_v2 = vadd.f32 %v4876_v15, %v4514_v62 }
 0x2ca   :  { %3315 = vmatmul.msk.f32.vlgmr.msrb.gmra.mxu0 %vm4987_vm6, %v5788_v39  ;;  %1510 = vmatpush.msrb.mxu1 %v1175_v20  ;;  %v483_v39 = vadd.f32 %v4896_v36, %v4514_v62  ;;  %v1099_v20 = vmax.f32 %v751_v32, 0.0  ;;  %v1095_v16 = vmax.f32 %v748_v57, 0.0  ;;  %v783_v32 = vadd.f32 %v4704_v58, %v4968_v9 }
 0x2cb   :  { %1490 = vmatpush.msrb.mxu0 %v1111_v29  ;;  %1374 = vmatpush.msrb.mxu2 %v1221_v5  ;;  %v5038_v29 = vpop.f32.mrf.mxu3  ;;  %v5867_v59 = vmov 0.00390625   ;;  %v741_v24 = vadd.f32 %v4450_v25, %v4968_v9  ;;  %v1091_v30 = vmax.f32 %v746_v31, 0.0  ;;  %v475_v5 = vadd.f32 %v4859_v49, %v4514_v62  ;;  %v5870_v49 = vld [vmem:[#allocation51_spill] sm:$0xff]  ;;  %v5871_v31 = vld [vmem:[#allocation25_spill] sm:$0xff] }
 0x2cc   :  { %1511 = vmatpush.msrb.mxu1 %v1171_v56  ;;  %v1209_v44 = vmax.f32 %v483_v39, 0.0  ;;  %v1205_v15 = vmax.f32 %v480_v47, 0.0  ;;  %v5868_v39 = vld [vmem:[#allocation53_spill] sm:$0xff]  ;;  %v1155_v58 = vmax.f32 %v786_v0, 0.0  ;;  %v5869_v56 = vld [vmem:[#allocation27_spill] sm:$0xff]  ;;  %v1201_v25 = vmax.f32 %v478_v2, 0.0 }
 0x2cd   :  { %1491 = vmatpush.msrb.mxu0 %v1107_v63  ;;  %1375 = vmatpush.msrb.mxu2 %v1217_v10  ;;  %v1159_v63 = vmax.f32 %v788_v17, 0.0  ;;  %v781_v7 = vadd.f32 %v5868_v39, %v4968_v9  ;;  %v738_v57 = vadd.f32 %v5869_v56, %v4968_v9  ;;  %v473_v10 = vadd.f32 %v4839_v60, %v4514_v62 }
 0x2ce   :  { %v5026_v38 = vpop.f32.mrf.mxu1  ;;  %1512 = vmatpush.msrb.mxu1 %v1167_v12  ;;  %v778_v17 = vadd.f32 %v5870_v49, %v4968_v9  ;;  %v1151_v12 = vmax.f32 %v783_v32, 0.0  ;;  %v1083_v47 = vmax.f32 %v741_v24, 0.0  ;;  %v1197_v60 = vmax.f32 %v475_v5, 0.0  ;;  %v5874_v5 = vld [vmem:[#allocation47_spill] sm:$0xff]  ;;  %v5877_v49 = vld [vmem:[#allocation45_spill] sm:$0xff] }
 0x2cf   :  { %1492 = vmatpush.msrb.mxu0 %v1103_v45  ;;  %v5034_v36 = vpop.f32.mrf.mxu0  ;;  %1376 = vmatpush.msrb.mxu2 %v1213_v61  ;;  %v1087_v45 = vmax.f32 %v743_v37, 0.0  ;;  %v470_v61 = vadd.f32 %v4820_v1, %v4514_v62  ;;  %v468_v24 = vadd.f32 %v4796_v41, %v4514_v62  ;;  %v1193_v1 = vmax.f32 %v473_v10, 0.0  ;;  %v5876_v10 = vld [vmem:[#allocation19_spill] sm:$0xff] }
 0x2d0   :  { %1513 = vmatpush.msrb.mxu1 %v1163_v55  ;;  %v5872_v55 = vld [vmem:[#allocation49_spill] sm:$0xff]  ;;  %v1143_v39 = vmax.f32 %v778_v17, 0.0 }
 0x2d1   :  { %1493 = vmatpush.msrb.mxu0 %v1099_v20  ;;  %1377 = vmatpush.msrb.mxu2 %v1209_v44  ;;  %v736_v20 = vadd.f32 %v5871_v31, %v4968_v9  ;;  %v776_v37 = vadd.f32 %v5872_v55, %v4968_v9  ;;  %v5873_v44 = vld [vmem:[#allocation23_spill] sm:$0xff]  ;;  %v1189_v41 = vmax.f32 %v470_v61, 0.0  ;;  %v1185_v55 = vmax.f32 %v468_v24, 0.0  ;;  %v5881_v24 = vld [vmem:[#allocation41_spill] sm:$0xff] }
 0x2d2   :  { %3319 = vmatmul.msk.f32.vlgmr.msra.gmra.mxu0 %vm4987_vm6, %v5867_v59  ;;  %1514 = vmatpush.msrb.mxu1 %v1159_v63  ;;  %v733_v32 = vadd.f32 %v5873_v44, %v4968_v9  ;;  %v1079_v63 = vmax.f32 %v738_v57, 0.0  ;;  %v465_v57 = vadd.f32 %v4779_v26, %v4514_v62  ;;  %v669_v61 = vadd.f32 %v4958_v35, %v4590_v27 }
 0x2d3   :  { %1494 = vmatpush.msrb.mxu0 %v1095_v16  ;;  %1378 = vmatpush.msrb.mxu2 %v1205_v15  ;;  %v1147_v16 = vmax.f32 %v781_v7, 0.0  ;;  %v773_v15 = vadd.f32 %v5874_v5, %v4968_v9  ;;  %v5079_v7 = vpop.f32.mrf.mxu3  ;;  %v1139_v17 = vmax.f32 %v776_v37, 0.0  ;;  %v5880_v37 = vld [vmem:[#allocation17_spill] sm:$0xff]  ;;  %v766_v5 = vadd.f32 %v5881_v24, %v4968_v9 }
 0x2d4   :  { %1515 = vmatpush.msrb.mxu1 %v1155_v58  ;;  %v5875_v58 = vld [vmem:[#allocation21_spill] sm:$0xff]  ;;  %v1071_v31 = vmax.f32 %v733_v32, 0.0  ;;  %v726_v32 = vadd.f32 %v5880_v37, %v4968_v9  ;;  %v667_v35 = vadd.f32 %v4944_v46, %v4590_v27 }
 0x2d5   :  { %1495 = vmatpush.msrb.mxu0 %v1091_v30  ;;  %1379 = vmatpush.msrb.mxu2 %v1201_v25  ;;  %v5075_v30 = vpop.f32.mrf.mxu2  ;;  %v731_v56 = vadd.f32 %v5875_v58, %v4968_v9  ;;  %v728_v25 = vadd.f32 %v5876_v10, %v4968_v9  ;;  %v1135_v26 = vmax.f32 %v773_v15, 0.0  ;;  %v5883_v46 = vld [vmem:[#allocation13_spill] sm:$0xff] }
 0x2d6   :  { %1516 = vmatpush.msrb.mxu1 %v1151_v12  ;;  %v5069_v2 = vpop.f32.mrf.mxu1  ;;  %v771_v12 = vadd.f32 %v5877_v49, %v4968_v9  ;;  %v1238_v49 = vmax.f32 %v669_v61, 0.0 }
 0x2d7   :  { %1496 = vmatpush.msrb.mxu0 %v1087_v45  ;;  %v5065_v0 = vpop.f32.mrf.mxu0  ;;  %1380 = vmatpush.msrb.mxu2 %v1197_v60  ;;  %v1075_v45 = vmax.f32 %v736_v20, 0.0  ;;  %v463_v20 = vadd.f32 %v4760_v13, %v4514_v62  ;;  %v1181_v13 = vmax.f32 %v465_v57, 0.0  ;;  %v1063_v58 = vmax.f32 %v728_v25, 0.0 }
 0x2d8   :  { %1517 = vmatpush.msrb.mxu1 %v1147_v16  ;;  %v5879_v16 = vld [vmem:[#allocation15_spill] sm:$0xff]  ;;  %v1131_v15 = vmax.f32 %v771_v12, 0.0  ;;  %v664_v57 = vadd.f32 %v4938_v23, %v4590_v27  ;;  %v721_v25 = vadd.f32 %v5883_v46, %v4968_v9  ;;  %v5884_v23 = vld [vmem:[#allocation37_spill] sm:$0xff]  ;;  %v654_v46 = vadd.f32 %v4906_v42, %v4590_v27  ;;  %v5892_v42 = vld [vmem:[#allocation32_spill] sm:$0xff] }
 0x2d9   :  { %1497 = vmatpush.msrb.mxu0 %v1083_v47  ;;  %1381 = vmatpush.msrb.mxu2 %v1193_v1  ;;  %v5878_v47 = vld [vmem:[#allocation43_spill] sm:$0xff]  ;;  %v723_v44 = vadd.f32 %v5879_v16, %v4968_v9  ;;  %v1177_v10 = vmax.f32 %v463_v20, 0.0  ;;  %v761_v20 = vadd.f32 %v5884_v23, %v4968_v9  ;;  %v1234_v16 = vmax.f32 %v667_v35, 0.0  ;;  %v5891_v23 = vld [vmem:[#allocation58_spill] sm:$0xff] }
 0x2da   :  { %1518 = vmatpush.msrb.mxu1 %v1143_v39  ;;  %v768_v60 = vadd.f32 %v5878_v47, %v4968_v9  ;;  %v1308_v39 = vadd.s32 256, %v4956_v34  ;;  %v4155_v12 = vld [vmem:[%s5781_s2] sm:$0xf]  ;;  %v1059_v47 = vmax.f32 %v726_v32, 0.0  ;;  %v1051_v35 = vmax.f32 %v721_v25, 0.0 }
 0x2db   :  { %1498 = vmatpush.msrb.mxu0 %v1079_v63  ;;  %1382 = vmatpush.msrb.mxu2 %v1189_v41  ;;  %v1067_v63 = vmax.f32 %v731_v56, 0.0  ;;  %v5127_v61 = vpop.f32.mrf.mxu3  ;;  %v1055_v32 = vmax.f32 %v723_v44, 0.0  ;;  %v5888_v44 = vld [vmem:[#allocation35_spill] sm:$0xff] }
 0x2dc   :  { %1519 = vmatpush.msrb.mxu1 %v1139_v17  ;;  %v1127_v56 = vmax.f32 %v768_v60, 0.0  ;;  %vm1315_vm8 = vcmp.ge.s32.totalorder %v1308_v39, %v4952_v33  ;;  %vm1320_vm9 = vcmp.lt.s32.totalorder %v1308_v39, %v4961_v43 }
 0x2dd   :  { %1499 = vmatpush.msrb.mxu0 %v1075_v45  ;;  %1383 = vmatpush.msrb.mxu2 %v1185_v55  ;;  %v5882_v45 = vld [vmem:[#allocation39_spill] sm:$0xff]  ;;  %v5121_v60 = vpop.f32.mrf.mxu2  ;;  %v1123_v55 = vmax.f32 %v766_v5, 0.0  ;;  %vm5133_vm10 = vmand %vm1315_vm8, %vm1320_vm9  ;;  %v659_v5 = vadd.f32 %v4926_v22, %v4590_v27  ;;  %v657_v22 = vadd.f32 %v4914_v6, %v4590_v27  ;;  %v5890_v6 = vld [vmem:[#allocation33_spill] sm:$0xff] }
 0x2de   :  { %1520 = vmatpush.msrb.mxu1 %v1135_v26  ;;  %v763_v41 = vadd.f32 %v5882_v45, %v4968_v9  ;;  %v5110_v17 = vpop.f32.mrf.mxu1  ;;  %v662_v26 = vadd.f32 %v4928_v4, %v4590_v27  ;;  %v1115_v45 = vmax.f32 %v761_v20, 0.0 }
 0x2df   :  { %1500 = vmatpush.msrb.mxu0 %v1071_v31  ;;  %v5099_v1 = vpop.f32.mrf.mxu0  ;;  %1384 = vmatpush.msrb.mxu2 %v1181_v13  ;;  %v5119_v31 = vperm.slane %v4155_v12, 3  ;;  %v1222_v25 = vmax.f32 %v659_v5, 0.0 }
 0x2e0   :  { %1521 = vmatpush.msrb.mxu1 %v1131_v15  ;;  %v1119_v24 = vmax.f32 %v763_v41, 0.0  ;;  %v1230_v15 = vmax.f32 %v664_v57, 0.0  ;;  %v1226_v41 = vmax.f32 %v662_v26, 0.0  ;;  %v1218_v26 = vmax.f32 %v657_v22, 0.0 }
 0x2e1   :  { %1501 = vmatpush.msrb.mxu0 %v1067_v63  ;;  %1385 = vmatpush.msrb.mxu2 %v1177_v10  ;;  %v5887_v63 = vld [vmem:[#allocation36_spill] sm:$0xff]  ;;  %v967_v4 = vadd.f32 %v4802_v53, %v5119_v31  ;;  %v925_v39 = vadd.f32 %v5888_v44, %v5119_v31  ;;  %v920_v12 = vadd.f32 %v5890_v6, %v5119_v31  ;;  %v5894_v44 = vld [vmem:[#allocation31_spill] sm:$0xff] }
 0x2e2   :  { %1522 = vmatpush.msrb.mxu1 %v1127_v56  ;;  %v927_v13 = vadd.f32 %v5887_v63, %v5119_v31  ;;  %3317 = vmatmul.msk.f32.vlgmr.msrb.gmra.mxu2 %vm5133_vm10, %v5867_v59  ;;  %v5889_v56 = vld [vmem:[#allocation34_spill] sm:$0xff]  ;;  %v960_v20 = vadd.f32 %v5891_v23, %v5119_v31  ;;  %v5898_v23 = vld [vmem:[#allocation29_spill] sm:$0xff] }
 0x2e3   :  { %1502 = vmatpush.msrb.mxu0 %v1063_v58  ;;  %1450 = vmatpush.msra.mxu2 %v1238_v49  ;;  %v965_v58 = vadd.f32 %v4781_v11, %v5119_v31  ;;  %v922_v10 = vadd.f32 %v5889_v56, %v5119_v31  ;;  %v962_v11 = vadd.f32 %v4755_v14, %v5119_v31  ;;  %v1176_v49 = vmax.f32 %v967_v4, 0.0 }
 0x2e4   :  { %3320 = vmatmul.msk.f32.vlgmr.msra.gmra.mxu1 %vm4996_vm7, %v5867_v59  ;;  %v1112_v57 = vmax.f32 %v927_v13, 0.0  ;;  %v652_v14 = vadd.f32 %v4894_v40, %v4590_v27  ;;  %v5893_v13 = vld [vmem:[#allocation57_spill] sm:$0xff]  ;;  %v649_v40 = vadd.f32 %v4886_v48, %v4590_v27  ;;  %v647_v48 = vadd.f32 %v4871_v3, %v4590_v27 }
 0x2e5   :  { %1503 = vmatpush.msrb.mxu0 %v1059_v47  ;;  %1523 = vmatpush.msrb.mxu1 %v1123_v55  ;;  %v1108_v47 = vmax.f32 %v925_v39, 0.0  ;;  %v1172_v55 = vmax.f32 %v965_v58, 0.0  ;;  %v1104_v63 = vmax.f32 %v922_v10, 0.0  ;;  %v957_v4 = vadd.f32 %v5893_v13, %v5119_v31  ;;  %v5178_v5 = vpop.f32.mrf.mxu2 }
 0x2e6   :  { %1451 = vmatpush.msra.mxu2 %v1234_v16  ;;  %v5169_v16 = vpop.f32.mrf.mxu1  ;;  %v915_v39 = vadd.f32 %v5894_v44, %v5119_v31  ;;  %v1100_v58 = vmax.f32 %v920_v12, 0.0  ;;  %v1210_v10 = vmax.f32 %v652_v14, 0.0  ;;  %v644_v12 = vadd.f32 %v4855_v54, %v4590_v27 }
 0x2e7   :  { %1504 = vmatpush.msrb.mxu0 %v1055_v32  ;;  %v5150_v53 = vpop.f32.mrf.mxu0  ;;  %1524 = vmatpush.msrb.mxu1 %v1119_v24  ;;  %v917_v32 = vadd.f32 %v5892_v42, %v5119_v31  ;;  %v1168_v24 = vmax.f32 %v962_v11, 0.0  ;;  %v1160_v6 = vmax.f32 %v957_v4, 0.0  ;;  %v910_v3 = vadd.f32 %v5898_v23, %v5119_v31  ;;  %v5901_v4 = vld [vmem:[#allocation52_spill] sm:$0xff] }
 0x2e8   :  { %1452 = vmatpush.msra.mxu2 %v1230_v15  ;;  %v1214_v15 = vmax.f32 %v654_v46, 0.0  ;;  %v5897_v46 = vld [vmem:[#allocation55_spill] sm:$0xff]  ;;  %v642_v42 = vadd.f32 %v4834_v28, %v4590_v27  ;;  %v1198_v44 = vmax.f32 %v644_v12, 0.0  ;;  %v5902_v28 = vld [vmem:[#allocation26_spill] sm:$0xff]  ;;  %v5905_v12 = vld [vmem:[#allocation48_spill] sm:$0xff] }
 0x2e9   :  { %1505 = vmatpush.msrb.mxu0 %v1051_v35  ;;  %1525 = vmatpush.msrb.mxu1 %v1115_v45  ;;  %v5182_v35 = vpop.f32.mrf.mxu3  ;;  %v5895_v45 = vld [vmem:[#allocation56_spill] sm:$0xff] }
 0x2ea   :  { %1453 = vmatpush.msra.mxu2 %v1226_v41  ;;  %3323 = vmatmul.msk.f32.vlgmr.msrb.gmra.mxu0 %vm4987_vm6, %v5867_v59  ;;  %v955_v22 = vadd.f32 %v5895_v45, %v5119_v31  ;;  %v1164_v41 = vmax.f32 %v960_v20, 0.0  ;;  %v1092_v20 = vmax.f32 %v915_v39, 0.0  ;;  %v1084_v45 = vmax.f32 %v910_v3, 0.0 }
 0x2eb   :  { %1570 = vmatpush.msra.mxu0 %v1112_v57  ;;  %1590 = vmatpush.msra.mxu1 %v1176_v49  ;;  %v5896_v57 = vld [vmem:[#allocation30_spill] sm:$0xff]  ;;  %v1096_v49 = vmax.f32 %v917_v32, 0.0  ;;  %v1202_v32 = vmax.f32 %v647_v48, 0.0  ;;  %v634_v3 = vadd.f32 %v4783_v19, %v4590_v27 }
 0x2ec   :  { %1454 = vmatpush.msra.mxu2 %v1222_v25  ;;  %3324 = vmatmul.msk.f32.vlgmr.msrb.gmra.mxu1 %vm4996_vm7, %v5867_v59  ;;  %v912_v11 = vadd.f32 %v5896_v57, %v5119_v31  ;;  %v952_v25 = vadd.f32 %v5897_v46, %v5119_v31  ;;  %v5904_v46 = vld [vmem:[#allocation24_spill] sm:$0xff] }
 0x2ed   :  { %1571 = vmatpush.msra.mxu0 %v1108_v47  ;;  %1591 = vmatpush.msra.mxu1 %v1172_v55  ;;  %v1206_v47 = vmax.f32 %v649_v40, 0.0  ;;  %v5899_v55 = vld [vmem:[#allocation54_spill] sm:$0xff] }
 0x2ee   :  { %1455 = vmatpush.msra.mxu2 %v1218_v26  ;;  %v950_v14 = vadd.f32 %v5899_v55, %v5119_v31  ;;  %v1156_v26 = vmax.f32 %v955_v22, 0.0  ;;  %v1088_v13 = vmax.f32 %v912_v11, 0.0  ;;  %v1152_v40 = vmax.f32 %v952_v25, 0.0  ;;  %v5213_v39 = vpop.f32.mrf.mxu1  ;;  %v5903_v22 = vld [vmem:[#allocation50_spill] sm:$0xff] }
 0x2ef   :  { %1572 = vmatpush.msra.mxu0 %v1104_v63  ;;  %1592 = vmatpush.msra.mxu1 %v1168_v24  ;;  %v5191_v56 = vpop.f32.mrf.mxu0  ;;  %v5900_v63 = vld [vmem:[#allocation28_spill] sm:$0xff]  ;;  %v947_v24 = vadd.f32 %v5901_v4, %v5119_v31  ;;  %v1194_v11 = vmax.f32 %v642_v42, 0.0  ;;  %v902_v25 = vadd.f32 %v5904_v46, %v5119_v31  ;;  %v836_v46 = vadd.f32 %v5032_v50, %v4968_v9 }
 0x2f0   :  { %1456 = vmatpush.msra.mxu2 %v1214_v15  ;;  %v907_v54 = vadd.f32 %v5900_v63, %v5119_v31  ;;  %v639_v15 = vadd.f32 %v4822_v8, %v4590_v27  ;;  %v1148_v48 = vmax.f32 %v950_v14, 0.0  ;;  %v637_v8 = vadd.f32 %v4798_v21, %v4590_v27  ;;  %v5906_v21 = vld [vmem:[#allocation22_spill] sm:$0xff] }
 0x2f1   :  { %1573 = vmatpush.msra.mxu0 %v1100_v58  ;;  %1593 = vmatpush.msra.mxu1 %v1164_v41  ;;  %v905_v58 = vadd.f32 %v5902_v28, %v5119_v31  ;;  %v945_v41 = vadd.f32 %v5903_v22, %v5119_v31  ;;  %v1144_v23 = vmax.f32 %v947_v24, 0.0  ;;  %v900_v55 = vadd.f32 %v5906_v21, %v5119_v31  ;;  %v5909_v24 = vld [vmem:[#allocation44_spill] sm:$0xff]  ;;  %v5911_v22 = vld [vmem:[#allocation42_spill] sm:$0xff] }
 0x2f2   :  { %1457 = vmatpush.msra.mxu2 %v1210_v10  ;;  %v5219_v10 = vpop.f32.mrf.mxu2  ;;  %v632_v63 = vadd.f32 %v4762_v51, %v4590_v27  ;;  %v1072_v4 = vmax.f32 %v902_v25, 0.0  ;;  %v838_v28 = vadd.f32 %v5075_v30, %v4968_v9  ;;  %v5912_v30 = vld [vmem:[#allocation16_spill] sm:$0xff]  ;;  %v5914_v21 = vld [vmem:[#allocation82_spill] sm:$0xff] }
 0x2f3   :  { %1574 = vmatpush.msra.mxu0 %v1096_v49  ;;  %1594 = vmatpush.msra.mxu1 %v1160_v6  ;;  %v5225_v49 = vpop.f32.mrf.mxu3  ;;  %v1080_v6 = vmax.f32 %v907_v54, 0.0  ;;  %v1076_v14 = vmax.f32 %v905_v58, 0.0  ;;  %v1186_v54 = vmax.f32 %v637_v8, 0.0  ;;  %v5910_v58 = vld [vmem:[#allocation18_spill] sm:$0xff] }
 0x2f4   :  { %1458 = vmatpush.msra.mxu2 %v1206_v47  ;;  %v942_v47 = vadd.f32 %v5905_v12, %v5119_v31  ;;  %v895_v51 = vadd.f32 %v5910_v58, %v5119_v31 }
 0x2f5   :  { %1575 = vmatpush.msra.mxu0 %v1092_v20  ;;  %1595 = vmatpush.msra.mxu1 %v1156_v26  ;;  %v1190_v20 = vmax.f32 %v639_v15, 0.0  ;;  %v5907_v26 = vld [vmem:[#allocation46_spill] sm:$0xff] }
 0x2f6   :  { %1459 = vmatpush.msra.mxu2 %v1202_v32  ;;  %v940_v42 = vadd.f32 %v5907_v26, %v5119_v31  ;;  %v1140_v32 = vmax.f32 %v945_v41, 0.0  ;;  %v1136_v15 = vmax.f32 %v942_v47, 0.0  ;;  %v935_v41 = vadd.f32 %v5911_v22, %v5119_v31  ;;  %v5253_v25 = vpop.f32.mrf.mxu1  ;;  %v5913_v47 = vld [vmem:[#allocation40_spill] sm:$0xff]  ;;  %v5916_v26 = vld [vmem:[#allocation14_spill] sm:$0xff] }
 0x2f7   :  { %1576 = vmatpush.msra.mxu0 %v1088_v13  ;;  %1596 = vmatpush.msra.mxu1 %v1152_v40  ;;  %v5221_v57 = vpop.f32.mrf.mxu0  ;;  %v5908_v13 = vld [vmem:[#allocation20_spill] sm:$0xff]  ;;  %v937_v40 = vadd.f32 %v5909_v24, %v5119_v31  ;;  %v1235_v24 = vmax.f32 %v836_v46, 0.0  ;;  %v5921_v46 = vld [vmem:[#allocation74_spill] sm:$0xff] }
 0x2f8   :  { %1460 = vmatpush.msra.mxu2 %v1198_v44  ;;  %v897_v19 = vadd.f32 %v5908_v13, %v5119_v31  ;;  %v1182_v44 = vmax.f32 %v634_v3, 0.0  ;;  %v1124_v13 = vmax.f32 %v935_v41, 0.0  ;;  %v5920_v41 = vld [vmem:[#allocation76_spill] sm:$0xff] }
 0x2f9   :  { %1577 = vmatpush.msra.mxu0 %v1084_v45  ;;  %1597 = vmatpush.msra.mxu1 %v1148_v48  ;;  %v1068_v45 = vmax.f32 %v900_v55, 0.0  ;;  %v1132_v48 = vmax.f32 %v940_v42, 0.0  ;;  %v1128_v3 = vmax.f32 %v937_v40, 0.0  ;;  %v833_v55 = vadd.f32 %v5914_v21, %v4968_v9 }
 0x2fa   :  { %1461 = vmatpush.msra.mxu2 %v1194_v11  ;;  %v1178_v11 = vmax.f32 %v632_v63, 0.0  ;;  %v1064_v12 = vmax.f32 %v897_v19, 0.0  ;;  %v890_v42 = vadd.f32 %v5916_v26, %v5119_v31  ;;  %v5917_v63 = vld [vmem:[#allocation38_spill] sm:$0xff]  ;;  %v5918_v19 = vld [vmem:[#allocation80_spill] sm:$0xff] }
 0x2fb   :  { %1578 = vmatpush.msra.mxu0 %v1080_v6  ;;  %1598 = vmatpush.msra.mxu1 %v1144_v23  ;;  %v892_v6 = vadd.f32 %v5912_v30, %v5119_v31  ;;  %v932_v23 = vadd.f32 %v5913_v47, %v5119_v31  ;;  %v5263_v50 = vpop.f32.mrf.mxu3  ;;  %v1231_v58 = vmax.f32 %v833_v55, 0.0  ;;  %v823_v30 = vadd.f32 %v5921_v46, %v4968_v9 }
 0x2fc   :  { %1462 = vmatpush.msra.mxu2 %v1190_v20  ;;  %v5259_v20 = vpop.f32.mrf.mxu2  ;;  %5915 = vst [vmem:[#allocation53_spill] sm:$0xff] %v5263_v50 }
 0x2fd   :  { %1579 = vmatpush.msra.mxu0 %v1076_v14  ;;  %1599 = vmatpush.msra.mxu1 %v1140_v32  ;;  %v1239_v14 = vmax.f32 %v838_v28, 0.0  ;;  %v1060_v32 = vmax.f32 %v895_v51, 0.0  ;;  %v1056_v40 = vmax.f32 %v892_v6, 0.0  ;;  %v1052_v51 = vmax.f32 %v890_v42, 0.0 }
 0x2fe   :  { %1463 = vmatpush.msra.mxu2 %v1186_v54  ;;  %v930_v54 = vadd.f32 %v5917_v63, %v5119_v31  ;;  %v1215_v26 = vmax.f32 %v823_v30, 0.0  ;;  %v5929_v30 = vld [vmem:[#allocation60_spill] sm:$0xff] }
 0x2ff   :  { %1580 = vmatpush.msra.mxu0 %v1072_v4  ;;  %1600 = vmatpush.msra.mxu1 %v1136_v15  ;;  %v5249_v8 = vpop.f32.mrf.mxu0  ;;  %v831_v4 = vadd.f32 %v5918_v19, %v4968_v9  ;;  %v1120_v15 = vmax.f32 %v932_v23, 0.0  ;;  %v5922_v23 = vld [vmem:[#allocation72_spill] sm:$0xff] }
 0x300   :  { %1464 = vmatpush.msra.mxu2 %v1182_v44  ;;  %v5919_v44 = vld [vmem:[#allocation78_spill] sm:$0xff] }
 0x301   :  { %1581 = vmatpush.msra.mxu0 %v1068_v45  ;;  %1601 = vmatpush.msra.mxu1 %v1132_v48  ;;  %v828_v28 = vadd.f32 %v5919_v44, %v4968_v9  ;;  %v1116_v45 = vmax.f32 %v930_v54, 0.0  ;;  %v826_v48 = vadd.f32 %v5920_v41, %v4968_v9 }
 0x302   :  { %1465 = vmatpush.msra.mxu2 %v1178_v11  ;;  %v1227_v11 = vmax.f32 %v831_v4, 0.0  ;;  %v5926_v4 = vld [vmem:[#allocation65_spill] sm:$0xff] }
 0x303   :  { %1582 = vmatpush.msra.mxu0 %v1064_v12  ;;  %1602 = vmatpush.msra.mxu1 %v1128_v3  ;;  %v1223_v6 = vmax.f32 %v828_v28, 0.0  ;;  %v5279_v12 = vpop.f32.mrf.mxu1  ;;  %v821_v3 = vadd.f32 %v5922_v23, %v4968_v9  ;;  %v1219_v21 = vmax.f32 %v826_v48, 0.0  ;;  %v5294_v55 = vpop.f32.mrf.mxu3  ;;  %v5927_v28 = vld [vmem:[#allocation63_spill] sm:$0xff]  ;;  %v5928_v48 = vld [vmem:[#allocation61_spill] sm:$0xff] }
 0x304   :  { %1530 = vmatpush.msrb.mxu2 %v1239_v14  ;;  %v5284_v47 = vpop.f32.mrf.mxu2  ;;  %v818_v14 = vadd.f32 %v5923_v52, %v4968_v9 }
 0x305   :  { %1583 = vmatpush.msra.mxu0 %v1060_v32  ;;  %1603 = vmatpush.msra.mxu1 %v1124_v13  ;;  %v5924_v32 = vld [vmem:[#allocation68_spill] sm:$0xff]  ;;  %v1211_v54 = vmax.f32 %v821_v3, 0.0  ;;  %v813_v13 = vadd.f32 %v5925_v18, %v4968_v9  ;;  %v5930_v3 = vld [vmem:[#allocation59_spill] sm:$0xff] }
 0x306   :  { %1531 = vmatpush.msrb.mxu2 %v1235_v24  ;;  %v816_v63 = vadd.f32 %v5924_v32, %v4968_v9  ;;  %v1207_v19 = vmax.f32 %v818_v14, 0.0  ;;  %v811_v24 = vadd.f32 %v5926_v4, %v4968_v9  ;;  %v1007_v14 = vadd.f32 %v5225_v49, %v5119_v31 }
 0x307   :  { %1584 = vmatpush.msra.mxu0 %v1056_v40  ;;  %1604 = vmatpush.msra.mxu1 %v1120_v15  ;;  %v5273_v22 = vpop.f32.mrf.mxu0  ;;  %v1002_v4 = vadd.f32 %v5127_v61, %v5119_v31  ;;  %v1000_v49 = vadd.f32 %v5079_v7, %v5119_v31  ;;  %v5932_v7 = vld [vmem:[#allocation81_spill] sm:$0xff] }
 0x308   :  { %1532 = vmatpush.msrb.mxu2 %v1231_v58  ;;  %v1203_v40 = vmax.f32 %v816_v63, 0.0  ;;  %v808_v58 = vadd.f32 %v5927_v28, %v4968_v9  ;;  %v1195_v46 = vmax.f32 %v811_v24, 0.0  ;;  %v1005_v63 = vadd.f32 %v5182_v35, %v5119_v31 }
 0x309   :  { %1585 = vmatpush.msra.mxu0 %v1052_v51  ;;  %1605 = vmatpush.msra.mxu1 %v1116_v45  ;;  %v1199_v51 = vmax.f32 %v813_v13, 0.0  ;;  %v1240_v24 = vmax.f32 %v1007_v14, 0.0  ;;  %v997_v35 = vadd.f32 %v5038_v29, %v5119_v31  ;;  %v1232_v28 = vmax.f32 %v1002_v4, 0.0  ;;  %v5933_v29 = vld [vmem:[#allocation79_spill] sm:$0xff] }
 0x30a   :  { %1533 = vmatpush.msrb.mxu2 %v1227_v11  ;;  %3327 = vmatmul.msk.f32.vlgmr.msra.gmra.mxu0 %vm4987_vm6, %v5867_v59  ;;  %v806_v11 = vadd.f32 %v5928_v48, %v4968_v9  ;;  %v1191_v23 = vmax.f32 %v808_v58, 0.0  ;;  %v5931_v58 = vld [vmem:[#allocation83_spill] sm:$0xff]  ;;  %v1228_v61 = vmax.f32 %v1000_v49, 0.0  ;;  %v5936_v49 = vld [vmem:[#allocation73_spill] sm:$0xff] }
 0x30b   :  { %3321 = vmatmul.msk.f32.vlgmr.msra.gmra.mxu2 %vm5133_vm10, %v5867_v59  ;;  %3328 = vmatmul.msk.f32.vlgmr.msra.gmra.mxu1 %vm4996_vm7, %v5867_v59  ;;  %v5306_v15 = vpop.f32.mrf.mxu1  ;;  %v5312_v45 = vpop.f32.mrf.mxu3 }
 0x30c   :  { %1534 = vmatpush.msrb.mxu2 %v1223_v6  ;;  %v5308_v44 = vpop.f32.mrf.mxu2  ;;  %v803_v6 = vadd.f32 %v5929_v30, %v4968_v9  ;;  %v1187_v52 = vmax.f32 %v806_v11, 0.0  ;;  %v1224_v30 = vmax.f32 %v997_v35, 0.0 }
 0x30e   :  { %1535 = vmatpush.msrb.mxu2 %v1219_v21  ;;  %v801_v21 = vadd.f32 %v5930_v3, %v4968_v9  ;;  %v990_v3 = vadd.f32 %v5933_v29, %v5119_v31 }
 0x30f   :  { %v5298_v42 = vpop.f32.mrf.mxu0 }
 0x310   :  { %1536 = vmatpush.msrb.mxu2 %v1215_v26  ;;  %v1183_v26 = vmax.f32 %v803_v6, 0.0  ;;  %v1179_v13 = vmax.f32 %v801_v21, 0.0  ;;  %v1212_v4 = vmax.f32 %v990_v3, 0.0  ;;  %v525_v37 = vadd.f32 %v5298_v42, %v4514_v62 }
 0x311   :  { %v515_v42 = vadd.f32 %v5191_v56, %v4514_v62  ;;  %v505_v56 = vadd.f32 %v5034_v36, %v4514_v62 }
 0x312   :  { %1537 = vmatpush.msrb.mxu2 %v1211_v54 }
 0x313   :  { %v5324_v32 = vpop.f32.mrf.mxu1 }
 0x314   :  { %1538 = vmatpush.msrb.mxu2 %v1207_v19  ;;  %v5328_v54 = vpop.f32.mrf.mxu2  ;;  %v5332_v19 = vpop.f32.mrf.mxu3 }
 0x316   :  { %1539 = vmatpush.msrb.mxu2 %v1203_v40  ;;  %v1236_v40 = vmax.f32 %v1005_v63, 0.0  ;;  %v5935_v63 = vld [vmem:[#allocation75_spill] sm:$0xff] }
 0x317   :  { %v5314_v41 = vpop.f32.mrf.mxu0 }
 0x318   :  { %1540 = vmatpush.msrb.mxu2 %v1199_v51  ;;  %v995_v51 = vadd.f32 %v5931_v58, %v5119_v31  ;;  %v5937_v58 = vld [vmem:[#allocation71_spill] sm:$0xff] }
 0x31a   :  { %1541 = vmatpush.msrb.mxu2 %v1195_v46  ;;  %v992_v46 = vadd.f32 %v5932_v7, %v5119_v31  ;;  %v1220_v21 = vmax.f32 %v995_v51, 0.0  ;;  %v980_v51 = vadd.f32 %v5937_v58, %v5119_v31 }
 0x31b   :  { %v5345_v11 = vpop.f32.mrf.mxu1 }
 0x31c   :  { %1542 = vmatpush.msrb.mxu2 %v1191_v23  ;;  %v5349_v6 = vpop.f32.mrf.mxu2  ;;  %v5351_v23 = vpop.f32.mrf.mxu3 }
 0x31e   :  { %1543 = vmatpush.msrb.mxu2 %v1187_v52  ;;  %v5934_v52 = vld [vmem:[#allocation77_spill] sm:$0xff] }
 0x31f   :  { %v5330_v18 = vpop.f32.mrf.mxu0  ;;  %v987_v14 = vadd.f32 %v5934_v52, %v5119_v31 }
 0x320   :  { %1544 = vmatpush.msrb.mxu2 %v1183_v26  ;;  %v1216_v26 = vmax.f32 %v992_v46, 0.0 }
 0x321   :  { %v1208_v35 = vmax.f32 %v987_v14, 0.0  ;;  %v1196_v14 = vmax.f32 %v980_v51, 0.0 }
 0x322   :  { %1545 = vmatpush.msrb.mxu2 %v1179_v13  ;;  %v985_v13 = vadd.f32 %v5935_v63, %v5119_v31  ;;  %v5940_v63 = vld [vmem:[#allocation64_spill] sm:$0xff] }
 0x323   :  { %3325 = vmatmul.msk.f32.vlgmr.msrb.gmra.mxu2 %vm5133_vm10, %v5867_v59 }
 0x324   :  { %1610 = vmatpush.msra.mxu2 %v1240_v24  ;;  %v5365_v7 = vpop.f32.mrf.mxu2  ;;  %v5367_v46 = vpop.f32.mrf.mxu3 }
 0x326   :  { %1611 = vmatpush.msra.mxu2 %v1236_v40  ;;  %v982_v40 = vadd.f32 %v5936_v49, %v5119_v31  ;;  %v5941_v49 = vld [vmem:[#allocation62_spill] sm:$0xff] }
 0x327   :  { %v532_v48 = vpop.f32.mrf.mxu0 }
 0x328   :  { %1612 = vmatpush.msra.mxu2 %v1232_v28  ;;  %v5361_v28 = vpop.f32.mrf.mxu1  ;;  %v1200_v3 = vmax.f32 %v982_v40, 0.0 }
 0x32a   :  { %1613 = vmatpush.msra.mxu2 %v1228_v61  ;;  %v1204_v61 = vmax.f32 %v985_v13, 0.0 }
 0x32c   :  { %1614 = vmatpush.msra.mxu2 %v1224_v30  ;;  %v5938_v30 = vld [vmem:[#allocation69_spill] sm:$0xff] }
 0x32d   :  { %v977_v29 = vadd.f32 %v5938_v30, %v5119_v31  ;;  %v5381_v30 = vpop.f32.mrf.mxu3 }
 0x32e   :  { %1615 = vmatpush.msra.mxu2 %v1220_v21  ;;  %v5939_v21 = vld [vmem:[#allocation67_spill] sm:$0xff] }
 0x32f   :  { %v534_v24 = vpop.f32.mrf.mxu0  ;;  %v975_v52 = vadd.f32 %v5939_v21, %v5119_v31  ;;  %v1192_v13 = vmax.f32 %v977_v29, 0.0 }
 0x330   :  { %1616 = vmatpush.msra.mxu2 %v1216_v26  ;;  %v5377_v50 = vpop.f32.mrf.mxu1 }
 0x331   :  { %v1188_v58 = vmax.f32 %v975_v52, 0.0 }
 0x332   :  { %1617 = vmatpush.msra.mxu2 %v1212_v4  ;;  %v972_v4 = vadd.f32 %v5940_v63, %v5119_v31  ;;  %v533_v63 = vadd.f32 %v532_v48, %v4514_v62 }
 0x334   :  { %1618 = vmatpush.msra.mxu2 %v1208_v35  ;;  %v970_v35 = vadd.f32 %v5941_v49, %v5119_v31  ;;  %v1184_v40 = vmax.f32 %v972_v4, 0.0 }
 0x336   :  { %1619 = vmatpush.msra.mxu2 %v1204_v61  ;;  %v5379_v61 = vpop.f32.mrf.mxu2  ;;  %v1180_v51 = vmax.f32 %v970_v35, 0.0 }
 0x337   :  { %v537_v26 = vpop.f32.mrf.mxu0 }
 0x338   :  { %1620 = vmatpush.msra.mxu2 %v1200_v3  ;;  %v538_v21 = vadd.f32 %v537_v26, %v4514_v62  ;;  %v703_v35 = vpop.f32.mrf.mxu1 }
 0x33a   :  { %1621 = vmatpush.msra.mxu2 %v1196_v14  ;;  %v535_v14 = vadd.f32 %v534_v24, %v4514_v62  ;;  %v1297_v4 = vmax.f32 %v538_v21, 0.0  ;;  %v528_v24 = vadd.f32 %v5314_v41, %v4514_v62  ;;  %v1277_v21 = vmax.f32 %v525_v37, 0.0 }
 0x33b   :  { %v518_v41 = vadd.f32 %v5221_v57, %v4514_v62  ;;  %v510_v57 = vadd.f32 %v5099_v1, %v4514_v62 }
 0x33c   :  { %1622 = vmatpush.msra.mxu2 %v1192_v13  ;;  %v530_v13 = vadd.f32 %v5330_v18, %v4514_v62  ;;  %v1293_v49 = vmax.f32 %v535_v14, 0.0  ;;  %v523_v18 = vadd.f32 %v5273_v22, %v4514_v62 }
 0x33d   :  { %v1253_v37 = vmax.f32 %v510_v57, 0.0 }
 0x33e   :  { %1623 = vmatpush.msra.mxu2 %v1188_v58  ;;  %v5392_v26 = vpop.f32.mrf.mxu2  ;;  %v5394_v58 = vpop.f32.mrf.mxu3  ;;  %v1285_v48 = vmax.f32 %v530_v13, 0.0  ;;  %v1261_v13 = vmax.f32 %v515_v42, 0.0  ;;  %v702_v42 = vadd.f32 %v5377_v50, %v4590_v27  ;;  %v694_v50 = vadd.f32 %v5324_v32, %v4590_v27 }
 0x33f   :  { %v539_v3 = vpop.f32.mrf.mxu0  ;;  %v684_v32 = vadd.f32 %v5213_v39, %v4590_v27  ;;  %v674_v39 = vadd.f32 %v5026_v38, %v4590_v27 }
 0x340   :  { %1624 = vmatpush.msra.mxu2 %v1184_v40  ;;  %v540_v29 = vadd.f32 %v539_v3, %v4514_v62  ;;  %v1289_v40 = vmax.f32 %v533_v63, 0.0  ;;  %v520_v3 = vadd.f32 %v5249_v8, %v4514_v62  ;;  %v706_v14 = vpop.f32.mrf.mxu1  ;;  %v513_v8 = vadd.f32 %v5150_v53, %v4514_v62 }
 0x341   :  { %v1309_v53 = vadd.s32 384, %v4956_v34  ;;  %v707_v36 = vadd.f32 %v706_v14, %v4590_v27 }
 0x342   :  { %1625 = vmatpush.msra.mxu2 %v1180_v51  ;;  %v1301_v52 = vmax.f32 %v540_v29, 0.0  ;;  %v1281_v51 = vmax.f32 %v528_v24, 0.0  ;;  %v1273_v29 = vmax.f32 %v523_v18, 0.0  ;;  %v1269_v63 = vmax.f32 %v520_v3, 0.0  ;;  %v5942_v18 = vld [vmem:[#allocation85_spill] sm:$0xff] }
 0x343   :  { %3329 = vmatmul.msk.f32.vlgmr.msra.gmra.mxu2 %vm5133_vm10, %v5867_v59  ;;  %v1257_v24 = vmax.f32 %v513_v8, 0.0  ;;  %v503_v1 = vadd.f32 %v5942_v18, %v4514_v62  ;;  %vm1316_vm11 = vcmp.ge.s32.totalorder %v1309_v53, %v4952_v33  ;;  %vm1321_vm12 = vcmp.lt.s32.totalorder %v1309_v53, %v4961_v43 }
 0x344   :  { %1390 = vmatpush.msrb.mxu3 %v1301_v52  ;;  %vm5432_vm13 = vmand %vm1316_vm11, %vm1321_vm12  ;;  %v699_v33 = vadd.f32 %v5361_v28, %v4590_v27  ;;  %v697_v8 = vadd.f32 %v5345_v11, %v4590_v27  ;;  %v689_v28 = vadd.f32 %v5279_v12, %v4590_v27  ;;  %v687_v11 = vadd.f32 %v5253_v25, %v4590_v27 }
 0x345   :  { %v1241_v34 = vmax.f32 %v503_v1, 0.0  ;;  %v679_v12 = vadd.f32 %v5110_v17, %v4590_v27  ;;  %v1262_v1 = vmax.f32 %v684_v32, 0.0  ;;  %v677_v25 = vadd.f32 %v5069_v2, %v4590_v27 }
 0x346   :  { %1391 = vmatpush.msrb.mxu3 %v1297_v4  ;;  %v5406_v52 = vpop.f32.mrf.mxu2  ;;  %v5410_v22 = vpop.f32.mrf.mxu3  ;;  %v1265_v4 = vmax.f32 %v518_v41, 0.0  ;;  %v704_v41 = vadd.f32 %v703_v35, %v4590_v27  ;;  %v1286_v57 = vmax.f32 %v699_v33, 0.0  ;;  %v1270_v53 = vmax.f32 %v689_v28, 0.0 }
 0x347   :  { %v1266_v18 = vmax.f32 %v687_v11, 0.0 }
 0x348   :  { %1392 = vmatpush.msrb.mxu3 %v1293_v49  ;;  %v508_v49 = vadd.f32 %v5065_v0, %v4514_v62  ;;  %v1294_v43 = vmax.f32 %v704_v41, 0.0  ;;  %v1250_v41 = vmax.f32 %v677_v25, 0.0  ;;  %v3621_v62 = vld [vmem:[#allocation3 + $0x240] sm:$0xf] }
 0x34a   :  { %1393 = vmatpush.msrb.mxu3 %v1289_v40  ;;  %v708_v40 = vpop.f32.mrf.mxu1 }
 0x34b   :  { %v709_v0 = vadd.f32 %v708_v40, %v4590_v27 }
 0x34c   :  { %1394 = vmatpush.msrb.mxu3 %v1285_v48 }
 0x34e   :  { %1395 = vmatpush.msrb.mxu3 %v1281_v51  ;;  %v5421_v48 = vpop.f32.mrf.mxu2  ;;  %v1249_v51 = vmax.f32 %v508_v49, 0.0  ;;  %v5425_v3 = vpop.f32.mrf.mxu3  ;;  %v1282_v49 = vmax.f32 %v697_v8, 0.0 }
 0x34f   :  { %v871_v33 = vadd.f32 %v5421_v48, %v4968_v9  ;;  %v863_v48 = vadd.f32 %v5379_v61, %v4968_v9  ;;  %v853_v61 = vadd.f32 %v5308_v44, %v4968_v9  ;;  %v843_v44 = vadd.f32 %v5178_v5, %v4968_v9 }
 0x350   :  { %1396 = vmatpush.msrb.mxu3 %v1277_v21  ;;  %v1245_v21 = vmax.f32 %v505_v56, 0.0 }
 0x351   :  { %v1279_v28 = vmax.f32 %v863_v48, 0.0  ;;  %v1263_v32 = vmax.f32 %v853_v61, 0.0  ;;  %v4029_v48 = vld [vmem:[#allocation3 + $0x1cc] sm:$0xf0]  ;;  %v3541_v61 = vld [vmem:[#allocation3 + $0x1a0] sm:$0xf] }
 0x352   :  { %1397 = vmatpush.msrb.mxu3 %v1273_v29  ;;  %v1302_v29 = vmax.f32 %v709_v0, 0.0  ;;  %v1254_v0 = vmax.f32 %v679_v12, 0.0 }
 0x354   :  { %1398 = vmatpush.msrb.mxu3 %v1269_v63  ;;  %v1298_v63 = vmax.f32 %v707_v36, 0.0 }
 0x356   :  { %1399 = vmatpush.msrb.mxu3 %v1265_v4  ;;  %v872_v35 = vpop.f32.mrf.mxu2  ;;  %v5443_v14 = vpop.f32.mrf.mxu3  ;;  %v1290_v4 = vmax.f32 %v702_v42, 0.0 }
 0x357   :  { %v873_v38 = vadd.f32 %v872_v35, %v4968_v9  ;;  %v866_v35 = vadd.f32 %v5392_v26, %v4968_v9  ;;  %v856_v26 = vadd.f32 %v5328_v54, %v4968_v9  ;;  %v846_v54 = vadd.f32 %v5219_v10, %v4968_v9 }
 0x358   :  { %1400 = vmatpush.msrb.mxu3 %v1261_v13  ;;  %v692_v13 = vadd.f32 %v5306_v15, %v4590_v27  ;;  %v682_v15 = vadd.f32 %v5169_v16, %v4590_v27  ;;  %v5945_v16 = vld [vmem:[#allocation84_spill] sm:$0xff] }
 0x359   :  { %v1295_v8 = vmax.f32 %v873_v38, 0.0  ;;  %v1251_v12 = vmax.f32 %v846_v54, 0.0 }
 0x35a   :  { %1401 = vmatpush.msrb.mxu3 %v1257_v24  ;;  %v1278_v24 = vmax.f32 %v694_v50, 0.0  ;;  %v1274_v56 = vmax.f32 %v692_v13, 0.0  ;;  %v1291_v50 = vmax.f32 %v871_v33, 0.0  ;;  %v861_v13 = vadd.f32 %v5365_v7, %v4968_v9 }
 0x35b   :  { %v851_v7 = vadd.f32 %v5284_v47, %v4968_v9  ;;  %v841_v47 = vadd.f32 %v5121_v60, %v4968_v9  ;;  %v1035_v33 = vadd.f32 %v5443_v14, %v5119_v31 }
 0x35c   :  { %1402 = vmatpush.msrb.mxu3 %v1253_v37 }
 0x35d   :  { %v1243_v10 = vmax.f32 %v841_v47, 0.0  ;;  %v3525_v47 = vld [vmem:[#allocation3 + $0x180] sm:$0xf] }
 0x35e   :  { %1403 = vmatpush.msrb.mxu3 %v1249_v51  ;;  %v875_v40 = vpop.f32.mrf.mxu2  ;;  %v5455_v37 = vpop.f32.mrf.mxu3  ;;  %v1258_v51 = vmax.f32 %v682_v15, 0.0 }
 0x35f   :  { %v876_v2 = vadd.f32 %v875_v40, %v4968_v9  ;;  %v1267_v40 = vmax.f32 %v856_v26, 0.0  ;;  %v1284_v26 = vmax.f32 %v1035_v33, 0.0  ;;  %v3781_v33 = vld [vmem:[#allocation3 + $0x380] sm:$0xf] }
 0x360   :  { %1404 = vmatpush.msrb.mxu3 %v1245_v21 }
 0x362   :  { %1405 = vmatpush.msrb.mxu3 %v1241_v34  ;;  %v672_v34 = vadd.f32 %v5945_v16, %v4590_v27  ;;  %v868_v27 = vadd.f32 %v5406_v52, %v4968_v9  ;;  %v858_v52 = vadd.f32 %v5349_v6, %v4968_v9  ;;  %v848_v6 = vadd.f32 %v5259_v20, %v4968_v9  ;;  %v3445_v16 = vld [vmem:[#allocation3 + $0xe0] sm:$0xf] }
 0x363   :  { %3318 = vmatmul.msk.f32.vlgmr.msrb.gmra.mxu3 %vm5432_vm13, %v5867_v59 }
 0x364   :  { %1470 = vmatpush.msra.mxu3 %v1302_v29  ;;  %v1246_v29 = vmax.f32 %v674_v39, 0.0  ;;  %v1242_v42 = vmax.f32 %v672_v34, 0.0  ;;  %v1255_v15 = vmax.f32 %v848_v6, 0.0  ;;  %v4001_v34 = vld [vmem:[#allocation3 + $0xec] sm:$0xf0] }
 0x365   :  { %v4053_v6 = vld [vmem:[#allocation3 + $0x28c] sm:$0xf0] }
 0x366   :  { %1471 = vmatpush.msra.mxu3 %v1298_v63  ;;  %v877_v21 = vpop.f32.mrf.mxu2  ;;  %v5467_v36 = vpop.f32.mrf.mxu3 }
 0x367   :  { %v878_v17 = vadd.f32 %v877_v21, %v4968_v9  ;;  %v1040_v5 = vadd.f32 %v5467_v36, %v5119_v31  ;;  %v4065_v21 = vld [vmem:[#allocation3 + $0x2ec] sm:$0xf0] }
 0x368   :  { %1472 = vmatpush.msra.mxu3 %v1294_v43  ;;  %v1299_v43 = vmax.f32 %v876_v2, 0.0  ;;  %v3685_v2 = vld [vmem:[#allocation3 + $0x2c0] sm:$0xf] }
 0x369   :  { %v1303_v63 = vmax.f32 %v878_v17, 0.0  ;;  %v3573_v17 = vld [vmem:[#allocation3 + $0x1e0] sm:$0xf] }
 0x36a   :  { %1473 = vmatpush.msra.mxu3 %v1290_v4 }
 0x36c   :  { %1474 = vmatpush.msra.mxu3 %v1286_v57  ;;  %v1287_v57 = vmax.f32 %v868_v27, 0.0 }
 0x36e   :  { %1475 = vmatpush.msra.mxu3 %v1282_v49  ;;  %v1041_v4 = vpop.f32.mrf.mxu3  ;;  %v1283_v49 = vmax.f32 %v866_v35, 0.0  ;;  %v3557_v35 = vld [vmem:[#allocation3 + $0x1c0] sm:$0xf] }
 0x370   :  { %1476 = vmatpush.msra.mxu3 %v1278_v24  ;;  %v1275_v24 = vmax.f32 %v861_v13, 0.0  ;;  %v1032_v13 = vadd.f32 %v5425_v3, %v5119_v31  ;;  %v1027_v3 = vadd.f32 %v5394_v58, %v5119_v31  ;;  %v1022_v58 = vadd.f32 %v5367_v46, %v5119_v31 }
 0x371   :  { %v1015_v46 = vadd.f32 %v5312_v45, %v5119_v31  ;;  %v3813_v45 = vld [vmem:[#allocation3 + $0x3c0] sm:$0xf] }
 0x372   :  { %1477 = vmatpush.msra.mxu3 %v1274_v56  ;;  %v1271_v56 = vmax.f32 %v858_v52, 0.0  ;;  %v3558_v52 = vor.u32 %v4029_v48, %v3557_v35  ;;  %v3985_v35 = vld [vmem:[#allocation3 + $0x6c] sm:$0xf0] }
 0x373   :  { %v4017_v48 = vld [vmem:[#allocation3 + $0x16c] sm:$0xf0] }
 0x374   :  { %1478 = vmatpush.msra.mxu3 %v1270_v53  ;;  %v1259_v53 = vmax.f32 %v851_v7, 0.0  ;;  %v4025_v7 = vld [vmem:[#allocation3 + $0x1ac] sm:$0xf0] }
 0x375   :  { %v3542_v54 = vor.u32 %v4025_v7, %v3541_v61  ;;  %v4041_v7 = vld [vmem:[#allocation3 + $0x22c] sm:$0xf0] }
 0x376   :  { %1479 = vmatpush.msra.mxu3 %v1266_v18  ;;  %v1044_v11 = vpop.f32.mrf.mxu3 }
 0x377   :  { %v1045_v25 = vadd.f32 %v1044_v11, %v5119_v31  ;;  %v3993_v11 = vld [vmem:[#allocation3 + $0xac] sm:$0xf0] }
 0x378   :  { %1480 = vmatpush.msra.mxu3 %v1262_v1  ;;  %v1247_v1 = vmax.f32 %v843_v44, 0.0  ;;  %v1025_v44 = vadd.f32 %v5381_v30, %v5119_v31  ;;  %v1020_v30 = vadd.f32 %v5351_v23, %v5119_v31  ;;  %v5946_v23 = vld [vmem:[#allocation53_spill] sm:$0xff] }
 0x379   :  { %v1300_v9 = vmax.f32 %v1045_v25, 0.0  ;;  %v4049_v25 = vld [vmem:[#allocation3 + $0x26c] sm:$0xf0] }
 0x37a   :  { %1481 = vmatpush.msra.mxu3 %v1258_v51  ;;  %v1042_v51 = vadd.f32 %v1041_v4, %v5119_v31  ;;  %v3997_v4 = vld [vmem:[#allocation3 + $0xcc] sm:$0xf0] }
 0x37c   :  { %1482 = vmatpush.msra.mxu3 %v1254_v0  ;;  %v3701_v0 = vld [vmem:[#allocation3 + $0x2e0] sm:$0xf]  ;;  %v1296_v36 = vmax.f32 %v1042_v51, 0.0 }
 0x37d   :  { %v3702_v60 = vor.u32 %v4065_v21, %v3701_v0  ;;  %v1017_v0 = vadd.f32 %v5332_v19, %v5119_v31  ;;  %v1264_v21 = vmax.f32 %v1022_v58, 0.0  ;;  %v4097_v19 = vld [vmem:[#allocation3 + $0x3ec] sm:$0xf0]  ;;  %v4063_v58 = vld [vmem:[#allocation3 + $0x2e4] sm:$0xf] }
 0x37e   :  { %1483 = vmatpush.msra.mxu3 %v1250_v41  ;;  %v1046_v18 = vpop.f32.mrf.mxu3  ;;  %v3446_v41 = vor.u32 %v4001_v34, %v3445_v16  ;;  %v1010_v34 = vadd.f32 %v5946_v23, %v5119_v31  ;;  %v3461_v23 = vld [vmem:[#allocation3 + $0x100] sm:$0xf] }
 0x37f   :  { %v1047_v20 = vadd.f32 %v1046_v18, %v5119_v31  ;;  %2483 = vmatpush.bf16.msrb.mxu2 %v3702_v60  ;;  %v3989_v18 = vld [vmem:[#allocation3 + $0x8c] sm:$0xf0]  ;;  %v1012_v60 = vadd.f32 %v5294_v55, %v5119_v31  ;;  %v1256_v16 = vmax.f32 %v1017_v0, 0.0 }
 0x380   :  { %1484 = vmatpush.msra.mxu3 %v1246_v29  ;;  %v4033_v29 = vld [vmem:[#allocation3 + $0x1ec] sm:$0xf0]  ;;  %2457 = vmatpush.bf16.msrb.mxu0 %v3446_v41  ;;  %v1252_v41 = vmax.f32 %v1015_v46, 0.0  ;;  %v3831_v46 = vld [vmem:[#allocation3 + $0x3f0] sm:$0xf0] }
 0x381   :  { %v1304_v39 = vmax.f32 %v1047_v20, 0.0  ;;  %v3574_v38 = vor.u32 %v4033_v29, %v3573_v17  ;;  %v4021_v20 = vld [vmem:[#allocation3 + $0x18c] sm:$0xf0]  ;;  %v3829_v17 = vld [vmem:[#allocation3 + $0x3e0] sm:$0xf]  ;;  %v1248_v29 = vmax.f32 %v1012_v60, 0.0 }
 0x382   :  { %1485 = vmatpush.msra.mxu3 %v1242_v42  ;;  %v1037_v42 = vadd.f32 %v5455_v37, %v5119_v31  ;;  %v4057_v37 = vld [vmem:[#allocation3 + $0x2ac] sm:$0xf0]  ;;  %v3526_v51 = vor.u32 %v4021_v20, %v3525_v47 }
 0x383   :  { %3322 = vmatmul.msk.f32.vlgmr.msra.gmra.mxu3 %vm5432_vm13, %v5867_v59  ;;  %2470 = vmatpush.bf16.msrb.mxu1 %v3574_v38  ;;  %v3797_v38 = vld [vmem:[#allocation3 + $0x3a0] sm:$0xf]  ;;  %v4009_v47 = vld [vmem:[#allocation3 + $0x12c] sm:$0xf0] }
 0x384   :  { %1550 = vmatpush.msrb.mxu3 %v1303_v63  ;;  %v4061_v63 = vld [vmem:[#allocation3 + $0x2cc] sm:$0xf0] }
 0x385   :  { %v3686_v27 = vor.u32 %v4061_v63, %v3685_v2  ;;  %v1244_v2 = vmax.f32 %v1010_v34, 0.0  ;;  %v4005_v34 = vld [vmem:[#allocation3 + $0x10c] sm:$0xf0] }
 0x386   :  { %1551 = vmatpush.msrb.mxu3 %v1299_v43  ;;  %v1292_v43 = vmax.f32 %v1040_v5, 0.0  ;;  %v1268_v5 = vmax.f32 %v1025_v44, 0.0 }
 0x387   :  { %2484 = vmatpush.bf16.msrb.mxu2 %v3686_v27  ;;  %2471 = vmatpush.bf16.msrb.mxu1 %v3558_v52  ;;  %v3765_v27 = vld [vmem:[#allocation3 + $0x360] sm:$0xf] }
 0x388   :  { %1552 = vmatpush.msrb.mxu3 %v1295_v8  ;;  %v3429_v8 = vld [vmem:[#allocation3 + $0xc0] sm:$0xf] }
 0x389   :  { %v3365_v52 = vld [vmem:[#allocation3 + $0x40] sm:$0xf] }
 0x38a   :  { %1553 = vmatpush.msrb.mxu3 %v1291_v50  ;;  %v3430_v50 = vor.u32 %v3997_v4, %v3429_v8  ;;  %v3381_v8 = vld [vmem:[#allocation3 + $0x60] sm:$0xf] }
 0x38b   :  { %2472 = vmatpush.bf16.msrb.mxu1 %v3542_v54  ;;  %v3733_v54 = vld [vmem:[#allocation3 + $0x320] sm:$0xf] }
 0x38c   :  { %1554 = vmatpush.msrb.mxu3 %v1287_v57  ;;  %v3669_v57 = vld [vmem:[#allocation3 + $0x2a0] sm:$0xf]  ;;  %2458 = vmatpush.bf16.msrb.mxu0 %v3430_v50 }
 0x38d   :  { %v3670_v14 = vor.u32 %v4057_v37, %v3669_v57  ;;  %v3509_v50 = vld [vmem:[#allocation3 + $0x160] sm:$0xf]  ;;  %v4081_v57 = vld [vmem:[#allocation3 + $0x36c] sm:$0xf0]  ;;  %v3382_v37 = vor.u32 %v3985_v35, %v3381_v8  ;;  %v3431_v8 = vld [vmem:[#allocation3 + $0xd0] sm:$0xf0] }
 0x38e   :  { %1555 = vmatpush.msrb.mxu3 %v1283_v49  ;;  %v1288_v49 = vmax.f32 %v1037_v42, 0.0  ;;  %v3830_v42 = vor.u32 %v4097_v19, %v3829_v17  ;;  %v3766_v61 = vor.u32 %v4081_v57, %v3765_v27  ;;  %v3462_v17 = vor.u32 %v4005_v34, %v3461_v23  ;;  %v3999_v19 = vld [vmem:[#allocation3 + $0xe4] sm:$0xf]  ;;  %v3671_v57 = vld [vmem:[#allocation3 + $0x2b0] sm:$0xf0] }
 0x38f   :  { %2485 = vmatpush.bf16.msrb.mxu2 %v3670_v14  ;;  %2473 = vmatpush.bf16.msrb.mxu1 %v3526_v51  ;;  %v3981_v14 = vld [vmem:[#allocation3 + $0x4c] sm:$0xf0]  ;;  %v3703_v51 = vld [vmem:[#allocation3 + $0x2f0] sm:$0xf0]  ;;  %v3995_v27 = vld [vmem:[#allocation3 + $0xc4] sm:$0xf] }
 0x390   :  { %1556 = vmatpush.msrb.mxu3 %v1279_v28  ;;  %v1030_v28 = vadd.f32 %v5410_v22, %v5119_v31  ;;  %v4089_v31 = vld [vmem:[#allocation3 + $0x3ac] sm:$0xf0]  ;;  %v3434_v35 = vor.u32 %v3995_v27, %v3431_v8  ;;  %v4043_v23 = vld [vmem:[#allocation3 + $0x244] sm:$0xf]  ;;  %v3623_v34 = vld [vmem:[#allocation3 + $0x250] sm:$0xf0] }
 0x391   :  { %v3798_v63 = vor.u32 %v4089_v31, %v3797_v38  ;;  %v3687_v38 = vld [vmem:[#allocation3 + $0x2d0] sm:$0xf0]  ;;  %v4091_v31 = vld [vmem:[#allocation3 + $0x3c4] sm:$0xf] }
 0x392   :  { %1557 = vmatpush.msrb.mxu3 %v1275_v24  ;;  %v3413_v24 = vld [vmem:[#allocation3 + $0xa0] sm:$0xf]  ;;  %v1276_v22 = vmax.f32 %v1030_v28, 0.0  ;;  %v3366_v28 = vor.u32 %v3981_v14, %v3365_v52  ;;  %v5538_v52 = vpop.f32.mrf.mxu0  ;;  %v5540_v14 = vpop.f32.mrf.mxu1  ;;  %v3735_v27 = vld [vmem:[#allocation3 + $0x330] sm:$0xf0] }
 0x394   :  { %1558 = vmatpush.msrb.mxu3 %v1271_v56  ;;  %v3414_v56 = vor.u32 %v3993_v11, %v3413_v24  ;;  %v4013_v24 = vld [vmem:[#allocation3 + $0x14c] sm:$0xf0]  ;;  %v3605_v11 = vld [vmem:[#allocation3 + $0x220] sm:$0xf] }
 0x396   :  { %1559 = vmatpush.msrb.mxu3 %v1267_v40  ;;  %v3653_v40 = vld [vmem:[#allocation3 + $0x280] sm:$0xf]  ;;  %2459 = vmatpush.bf16.msrb.mxu0 %v3414_v56 }
 0x398   :  { %1560 = vmatpush.msrb.mxu3 %v1263_v32  ;;  %v1280_v32 = vmax.f32 %v1032_v13, 0.0  ;;  %v3510_v13 = vor.u32 %v4017_v48, %v3509_v50  ;;  %v3559_v50 = vld [vmem:[#allocation3 + $0x1d0] sm:$0xf0]  ;;  %v4055_v48 = vld [vmem:[#allocation3 + $0x2a4] sm:$0xf] }
 0x39a   :  { %1561 = vmatpush.msrb.mxu3 %v1259_v53  ;;  %v3654_v53 = vor.u32 %v4053_v6, %v3653_v40  ;;  %2474 = vmatpush.bf16.msrb.mxu1 %v3510_v13  ;;  %v3749_v40 = vld [vmem:[#allocation3 + $0x340] sm:$0xf]  ;;  %v4077_v6 = vld [vmem:[#allocation3 + $0x34c] sm:$0xf0]  ;;  %v3674_v13 = vor.u32 %v4055_v48, %v3671_v57  ;;  %v3351_v48 = vld [vmem:[#allocation3 + $0x30] sm:$0xf0] }
 0x39b   :  { %v4007_v57 = vld [vmem:[#allocation3 + $0x124] sm:$0xf] }
 0x39c   :  { %1562 = vmatpush.msrb.mxu3 %v1255_v15  ;;  %v3397_v15 = vld [vmem:[#allocation3 + $0x80] sm:$0xf]  ;;  %2486 = vmatpush.bf16.msrb.mxu2 %v3654_v53  ;;  %v4073_v53 = vld [vmem:[#allocation3 + $0x32c] sm:$0xf0] }
 0x39d   :  { %v3734_v44 = vor.u32 %v4073_v53, %v3733_v54  ;;  %v3783_v54 = vld [vmem:[#allocation3 + $0x390] sm:$0xf0]  ;;  %v3987_v53 = vld [vmem:[#allocation3 + $0x84] sm:$0xf] }
 0x39e   :  { %1563 = vmatpush.msrb.mxu3 %v1251_v12  ;;  %v3398_v12 = vor.u32 %v3989_v18, %v3397_v15  ;;  %v3977_v15 = vld [vmem:[#allocation3 + $0x2c] sm:$0xf0]  ;;  %v3477_v18 = vld [vmem:[#allocation3 + $0x120] sm:$0xf] }
 0x39f   :  { %v3478_v20 = vor.u32 %v4009_v47, %v3477_v18  ;;  %v4019_v18 = vld [vmem:[#allocation3 + $0x184] sm:$0xf]  ;;  %v3527_v47 = vld [vmem:[#allocation3 + $0x190] sm:$0xf0] }
 0x3a0   :  { %1564 = vmatpush.msrb.mxu3 %v1247_v1  ;;  %v3637_v1 = vld [vmem:[#allocation3 + $0x260] sm:$0xf]  ;;  %2460 = vmatpush.bf16.msrb.mxu0 %v3398_v12 }
 0x3a2   :  { %1565 = vmatpush.msrb.mxu3 %v1243_v10  ;;  %v1272_v10 = vmax.f32 %v1027_v3, 0.0  ;;  %v3606_v3 = vor.u32 %v4041_v7, %v3605_v11  ;;  %v5542_v7 = vpop.f32.mrf.mxu2 }
 0x3a3   :  { %3326 = vmatmul.msk.f32.vlgmr.msrb.gmra.mxu3 %vm5432_vm13, %v5867_v59 }
 0x3a4   :  { %1630 = vmatpush.msra.mxu3 %v1304_v39  ;;  %v3638_v39 = vor.u32 %v4049_v25, %v3637_v1  ;;  %2461 = vmatpush.bf16.msrb.mxu0 %v3382_v37  ;;  %v3589_v1 = vld [vmem:[#allocation3 + $0x200] sm:$0xf]  ;;  %v4037_v25 = vld [vmem:[#allocation3 + $0x20c] sm:$0xf0] }
 0x3a6   :  { %1631 = vmatpush.msra.mxu3 %v1300_v9  ;;  %2487 = vmatpush.bf16.msrb.mxu2 %v3638_v39  ;;  %v1260_v9 = vmax.f32 %v1020_v30, 0.0  ;;  %v3717_v39 = vld [vmem:[#allocation3 + $0x300] sm:$0xf]  ;;  %v4069_v30 = vld [vmem:[#allocation3 + $0x30c] sm:$0xf0] }
 0x3a7   :  { %v3718_v0 = vor.u32 %v4069_v30, %v3717_v39  ;;  %v4079_v39 = vld [vmem:[#allocation3 + $0x364] sm:$0xf]  ;;  %v3767_v30 = vld [vmem:[#allocation3 + $0x370] sm:$0xf0] }
 0x3a8   :  { %1632 = vmatpush.msra.mxu3 %v1296_v36  ;;  %v4093_v36 = vld [vmem:[#allocation3 + $0x3cc] sm:$0xf0]  ;;  %2462 = vmatpush.bf16.msrb.mxu0 %v3366_v28  ;;  %v3991_v28 = vld [vmem:[#allocation3 + $0xa4] sm:$0xf] }
 0x3a9   :  { %v3814_v55 = vor.u32 %v4093_v36, %v3813_v45  ;;  %v3575_v45 = vld [vmem:[#allocation3 + $0x1f0] sm:$0xf0]  ;;  %v4059_v36 = vld [vmem:[#allocation3 + $0x2c4] sm:$0xf] }
 0x3aa   :  { %1633 = vmatpush.msra.mxu3 %v1292_v43  ;;  %v4085_v43 = vld [vmem:[#allocation3 + $0x38c] sm:$0xf0] }
 0x3ab   :  { %v3782_v4 = vor.u32 %v4085_v43, %v3781_v33  ;;  %v3690_v33 = vor.u32 %v4059_v36, %v3687_v38  ;;  %v3495_v38 = vld [vmem:[#allocation3 + $0x150] sm:$0xf0] }
 0x3ac   :  { %1634 = vmatpush.msra.mxu3 %v1288_v49 }
 0x3ae   :  { %1635 = vmatpush.msra.mxu3 %v1284_v26  ;;  %v3493_v26 = vld [vmem:[#allocation3 + $0x140] sm:$0xf] }
 0x3af   :  { %v3494_v56 = vor.u32 %v4013_v24, %v3493_v26  ;;  %v3415_v26 = vld [vmem:[#allocation3 + $0xb0] sm:$0xf0]  ;;  %v4023_v24 = vld [vmem:[#allocation3 + $0x1a4] sm:$0xf] }
 0x3b0   :  { %1636 = vmatpush.msra.mxu3 %v1280_v32  ;;  %v3750_v32 = vor.u32 %v4077_v6, %v3749_v40  ;;  %v3418_v11 = vor.u32 %v3991_v28, %v3415_v26  ;;  %v4051_v40 = vld [vmem:[#allocation3 + $0x284] sm:$0xf]  ;;  %v3655_v6 = vld [vmem:[#allocation3 + $0x290] sm:$0xf0] }
 0x3b1   :  { %2475 = vmatpush.bf16.msrb.mxu1 %v3494_v56 }
 0x3b2   :  { %1637 = vmatpush.msra.mxu3 %v1276_v22  ;;  %v3349_v22 = vld [vmem:[#allocation3 + $0x20] sm:$0xf] }
 0x3b3   :  { %v3350_v12 = vor.u32 %v3977_v15, %v3349_v22  ;;  %v3399_v22 = vld [vmem:[#allocation3 + $0x90] sm:$0xf0] }
 0x3b4   :  { %1638 = vmatpush.msra.mxu3 %v1272_v10  ;;  %v3590_v10 = vor.u32 %v4037_v25, %v3589_v1  ;;  %v3402_v15 = vor.u32 %v3987_v53, %v3399_v22  ;;  %v4047_v1 = vld [vmem:[#allocation3 + $0x264] sm:$0xf]  ;;  %v3639_v25 = vld [vmem:[#allocation3 + $0x270] sm:$0xf0] }
 0x3b5   :  { %2463 = vmatpush.bf16.msrb.mxu0 %v3350_v12  ;;  %2476 = vmatpush.bf16.msrb.mxu1 %v3478_v20  ;;  %v3530_v12 = vor.u32 %v4019_v18, %v3527_v47  ;;  %v5544_v20 = vpop.f32.mrf.mxu0  ;;  %v3463_v53 = vld [vmem:[#allocation3 + $0x110] sm:$0xf0] }
 0x3b6   :  { %1639 = vmatpush.msra.mxu3 %v1268_v5  ;;  %v3706_v5 = vor.u32 %v4063_v58, %v3703_v51  ;;  %v3642_v51 = vor.u32 %v4047_v1, %v3639_v25 }
 0x3b8   :  { %1640 = vmatpush.msra.mxu3 %v1264_v21  ;;  %v4095_v21 = vld [vmem:[#allocation3 + $0x3e4] sm:$0xf] }
 0x3b9   :  { %v3834_v60 = vor.u32 %v4095_v21, %v3831_v46  ;;  %2477 = vmatpush.bf16.msrb.mxu1 %v3462_v17  ;;  %v3383_v21 = vld [vmem:[#allocation3 + $0x70] sm:$0xf0]  ;;  %v4015_v46 = vld [vmem:[#allocation3 + $0x164] sm:$0xf]  ;;  %v1467_v17 = vpop.f32.mrf.mxu2 }
 0x3ba   :  { %1641 = vmatpush.msra.mxu3 %v1260_v9  ;;  %v3333_v9 = vld [vmem:[#allocation3] sm:$0xf] }
 0x3bc   :  { %1642 = vmatpush.msra.mxu3 %v1256_v16  ;;  %v3973_v16 = vld [vmem:[#allocation3 + $0xc] sm:$0xf0] }
 0x3bd   :  { %v1507_v8 = vpop.f32.mrf.mxu0 }
 0x3be   :  { %1643 = vmatpush.msra.mxu3 %v1252_v41  ;;  %v3334_v41 = vor.u32 %v3973_v16, %v3333_v9 }
 0x3c0   :  { %1644 = vmatpush.msra.mxu3 %v1248_v29  ;;  %2464 = vmatpush.bf16.msrb.mxu0 %v3334_v41  ;;  %v3447_v29 = vld [vmem:[#allocation3 + $0xf0] sm:$0xf0]  ;;  %v4075_v41 = vld [vmem:[#allocation3 + $0x344] sm:$0xf] }
 0x3c2   :  { %1645 = vmatpush.msra.mxu3 %v1244_v2  ;;  %v4031_v2 = vld [vmem:[#allocation3 + $0x1e4] sm:$0xf] }
 0x3c3   :  { %3330 = vmatmul.msk.f32.vlgmr.msra.gmra.mxu3 %vm5432_vm13, %v5867_v59  ;;  %v4045_v59 = vld [vmem:[#allocation3 + $0x24c] sm:$0xf0]  ;;  %vm2796_vm13 = vcmask 1040384  }
 0x3c4   :  { %2496 = vmatpush.bf16.msrb.mxu3 %v3830_v42  ;;  %v3622_v49 = vor.u32 %v4045_v59, %v3621_v62  ;;  %v3450_v42 = vor.u32 %v3999_v19, %v3447_v29  ;;  %v4087_v62 = vld [vmem:[#allocation3 + $0x3a4] sm:$0xf]  ;;  %v3799_v59 = vld [vmem:[#allocation3 + $0x3b0] sm:$0xf0]  ;;  %v3626_v19 = vor.u32 %v4043_v23, %v3623_v34 }
 0x3c5   :  { %v3751_v29 = vld [vmem:[#allocation3 + $0x350] sm:$0xf0] }
 0x3c6   :  { %2488 = vmatpush.bf16.msrb.mxu2 %v3622_v49  ;;  %2509 = vmatpush.bf16.msra.mxu0 %v3450_v42  ;;  %v3802_v49 = vor.u32 %v4087_v62, %v3799_v59  ;;  %v3367_v42 = vld [vmem:[#allocation3 + $0x50] sm:$0xf0]  ;;  %v4035_v59 = vld [vmem:[#allocation3 + $0x204] sm:$0xf] }
 0x3c7   :  { %v3479_v62 = vld [vmem:[#allocation3 + $0x130] sm:$0xf0] }
 0x3c8   :  { %2497 = vmatpush.bf16.msrb.mxu3 %v3814_v55  ;;  %v3578_v55 = vor.u32 %v4031_v2, %v3575_v45  ;;  %v3979_v2 = vld [vmem:[#allocation3 + $0x44] sm:$0xf]  ;;  %v3754_v45 = vor.u32 %v4075_v41, %v3751_v29  ;;  %v3482_v28 = vor.u32 %v4007_v57, %v3479_v62  ;;  %v4098_v29 = vld [vmem:[#allocation3 + $0x3f4] sm:$0xf0] }
 0x3c9   :  { %v3370_v36 = vor.u32 %v3979_v2, %v3367_v42  ;;  %v4002_v2 = vld [vmem:[#allocation3 + $0xf4] sm:$0xf0]  ;;  %v3581_v42 = vld [vmem:[#allocation3 + $0x1e8] sm:$0xf] }
 0x3ca   :  { %2489 = vmatpush.bf16.msrb.mxu2 %v3606_v3  ;;  %2522 = vmatpush.bf16.msra.mxu1 %v3578_v55  ;;  %v4083_v3 = vld [vmem:[#allocation3 + $0x384] sm:$0xf]  ;;  %v3998_v62 = vld [vmem:[#allocation3 + $0xd4] sm:$0xf0] }
 0x3cb   :  { %2510 = vmatpush.bf16.msra.mxu0 %v3434_v35  ;;  %v4011_v55 = vld [vmem:[#allocation3 + $0x144] sm:$0xf] }
 0x3cc   :  { %2498 = vmatpush.bf16.msrb.mxu3 %v3798_v63  ;;  %v3815_v63 = vld [vmem:[#allocation3 + $0x3d0] sm:$0xf0] }
 0x3cd   :  { %v3818_v43 = vor.u32 %v4091_v31, %v3815_v63  ;;  %v4039_v31 = vld [vmem:[#allocation3 + $0x224] sm:$0xf]  ;;  %v3498_v63 = vor.u32 %v4011_v55, %v3495_v38  ;;  %v4062_v55 = vld [vmem:[#allocation3 + $0x2d4] sm:$0xf0]  ;;  %v3821_v38 = vld [vmem:[#allocation3 + $0x3c8] sm:$0xf] }
 0x3ce   :  { %2490 = vmatpush.bf16.msrb.mxu2 %v3590_v10  ;;  %v5548_v10 = vpop.f32.mrf.mxu1 }
 0x3cf   :  { %2511 = vmatpush.bf16.msra.mxu0 %v3418_v11  ;;  %v4067_v11 = vld [vmem:[#allocation3 + $0x304] sm:$0xf] }
 0x3d0   :  { %2499 = vmatpush.bf16.msrb.mxu3 %v3782_v4  ;;  %v4027_v4 = vld [vmem:[#allocation3 + $0x1c4] sm:$0xf] }
 0x3d1   :  { %v3562_v37 = vor.u32 %v4027_v4, %v3559_v50  ;;  %v3975_v50 = vld [vmem:[#allocation3 + $0x24] sm:$0xf] }
 0x3d2   :  { %2535 = vmatpush.bf16.msra.mxu2 %v3706_v5  ;;  %v3983_v5 = vld [vmem:[#allocation3 + $0x64] sm:$0xf] }
 0x3d3   :  { %2523 = vmatpush.bf16.msra.mxu1 %v3562_v37  ;;  %2512 = vmatpush.bf16.msra.mxu0 %v3402_v15  ;;  %v3386_v9 = vor.u32 %v3983_v5, %v3383_v21  ;;  %v1587_v15 = vpop.f32.mrf.mxu0 }
 0x3d4   :  { %2500 = vmatpush.bf16.msrb.mxu3 %v3766_v61  ;;  %v3543_v61 = vld [vmem:[#allocation3 + $0x1b0] sm:$0xf0] }
 0x3d5   :  { %v3546_v56 = vor.u32 %v4023_v24, %v3543_v61  ;;  %v3719_v61 = vld [vmem:[#allocation3 + $0x310] sm:$0xf0] }
 0x3d6   :  { %2536 = vmatpush.bf16.msra.mxu2 %v3690_v33  ;;  %v3607_v33 = vld [vmem:[#allocation3 + $0x230] sm:$0xf0]  ;;  %v1527_v37 = vpop.f32.mrf.mxu1 }
 0x3d7   :  { %2524 = vmatpush.bf16.msra.mxu1 %v3546_v56  ;;  %2513 = vmatpush.bf16.msra.mxu0 %v3386_v9  ;;  %v3610_v4 = vor.u32 %v4039_v31, %v3607_v33  ;;  %v3971_v56 = vld [vmem:[#allocation3 + $0x4] sm:$0xf] }
 0x3d8   :  { %2501 = vmatpush.bf16.msrb.mxu3 %v3750_v32  ;;  %v3658_v32 = vor.u32 %v4051_v40, %v3655_v6  ;;  %v1547_v40 = vpop.f32.mrf.mxu2  ;;  %v3722_v6 = vor.u32 %v4067_v11, %v3719_v61  ;;  %v4058_v11 = vld [vmem:[#allocation3 + $0x2b4] sm:$0xf0]  ;;  %v3805_v61 = vld [vmem:[#allocation3 + $0x3a8] sm:$0xf] }
 0x3da   :  { %2537 = vmatpush.bf16.msra.mxu2 %v3674_v13  ;;  %v3354_v13 = vor.u32 %v3975_v50, %v3351_v48 }
 0x3db   :  { %2525 = vmatpush.bf16.msra.mxu1 %v3530_v12  ;;  %2514 = vmatpush.bf16.msra.mxu0 %v3370_v36  ;;  %v1528_v12 = vadd.f32 %v1527_v37, %v1507_v8  ;;  %v3693_v36 = vld [vmem:[#allocation3 + $0x2c8] sm:$0xf] }
 0x3dc   :  { %2502 = vmatpush.bf16.msrb.mxu3 %v3734_v44  ;;  %v3786_v44 = vor.u32 %v4083_v3, %v3783_v54  ;;  %v3335_v3 = vld [vmem:[#allocation3 + $0x10] sm:$0xf0] }
 0x3dd   :  { %v3338_v54 = vor.u32 %v3971_v56, %v3335_v3  ;;  %v4090_v56 = vld [vmem:[#allocation3 + $0x3b4] sm:$0xf0]  ;;  %v3421_v3 = vld [vmem:[#allocation3 + $0xa8] sm:$0xf] }
 0x3de   :  { %2538 = vmatpush.bf16.msra.mxu2 %v3658_v32  ;;  %v4003_v32 = vld [vmem:[#allocation3 + $0x104] sm:$0xf]  ;;  %v1607_v47 = vpop.f32.mrf.mxu1 }
 0x3df   :  { %2515 = vmatpush.bf16.msra.mxu0 %v3354_v13  ;;  %v3466_v22 = vor.u32 %v4003_v32, %v3463_v53  ;;  %v1608_v25 = vadd.f32 %v1607_v47, %v1587_v15  ;;  %v3437_v13 = vld [vmem:[#allocation3 + $0xc8] sm:$0xf]  ;;  %v3994_v32 = vld [vmem:[#allocation3 + $0xb4] sm:$0xf0] }
 0x3e0   :  { %2503 = vmatpush.bf16.msrb.mxu3 %v3718_v0  ;;  %v3770_v0 = vor.u32 %v4079_v39, %v3767_v30  ;;  %v1368_v39 = vadd.f32 %v5540_v14, %v5538_v52  ;;  %v1548_v30 = vadd.f32 %v1547_v40, %v1528_v12  ;;  %v3709_v52 = vld [vmem:[#allocation3 + $0x2e8] sm:$0xf]  ;;  %v4066_v14 = vld [vmem:[#allocation3 + $0x2f4] sm:$0xf0]  ;;  %v3438_v40 = vor.u32 %v3998_v62, %v3437_v13 }
 0x3e1   :  { %v4026_v53 = vld [vmem:[#allocation3 + $0x1b4] sm:$0xf0]  ;;  %v3661_v15 = vld [vmem:[#allocation3 + $0x288] sm:$0xf] }
 0x3e2   :  { %2539 = vmatpush.bf16.msra.mxu2 %v3642_v51  ;;  %v1627_v51 = vpop.f32.mrf.mxu2  ;;  %v1388_v21 = vadd.f32 %v5542_v7, %v1368_v39  ;;  %v3453_v7 = vld [vmem:[#allocation3 + $0xe8] sm:$0xf]  ;;  %v4086_v12 = vld [vmem:[#allocation3 + $0x394] sm:$0xf0] }
 0x3e3   :  { %2516 = vmatpush.bf16.msra.mxu0 %v3338_v54  ;;  %v3454_v57 = vor.u32 %v4002_v2, %v3453_v7  ;;  %v3549_v54 = vld [vmem:[#allocation3 + $0x1a8] sm:$0xf]  ;;  %v3990_v39 = vld [vmem:[#allocation3 + $0x94] sm:$0xf0] }
 0x3e4   :  { %2548 = vmatpush.bf16.msra.mxu3 %v3834_v60  ;;  %v3511_v60 = vld [vmem:[#allocation3 + $0x170] sm:$0xf0]  ;;  %v3789_v47 = vld [vmem:[#allocation3 + $0x388] sm:$0xf]  ;;  %v4078_v2 = vld [vmem:[#allocation3 + $0x354] sm:$0xf0] }
 0x3e5   :  { %v3514_v16 = vor.u32 %v4015_v46, %v3511_v60  ;;  %v3757_v7 = vld [vmem:[#allocation3 + $0x348] sm:$0xf]  ;;  %v3978_v62 = vld [vmem:[#allocation3 + $0x34] sm:$0xf0] }
 0x3e6   :  { %v5546_v58 = vpop.f32.mrf.mxu3  ;;  %2540 = vmatpush.bf16.msra.mxu2 %v3626_v19  ;;  %v3837_v19 = vld [vmem:[#allocation3 + $0x3e8] sm:$0xf] }
 0x3e7   :  { %2526 = vmatpush.bf16.msra.mxu1 %v3514_v16  ;;  %v3357_v13 = vld [vmem:[#allocation3 + $0x28] sm:$0xf] }
 0x3e8   :  { %2549 = vmatpush.bf16.msra.mxu3 %v3818_v43  ;;  %v4071_v43 = vld [vmem:[#allocation3 + $0x324] sm:$0xf] }
 0x3e9   :  { %v3738_v35 = vor.u32 %v4071_v43, %v3735_v27  ;;  %v3838_v43 = vor.u32 %v4098_v29, %v3837_v19  ;;  %v3629_v19 = vld [vmem:[#allocation3 + $0x248] sm:$0xf]  ;;  %v4046_v29 = vld [vmem:[#allocation3 + $0x254] sm:$0xf0] }
 0x3ea   :  { %2541 = vmatpush.bf16.msra.mxu2 %v3610_v4 }
 0x3eb   :  { %2527 = vmatpush.bf16.msra.mxu1 %v3498_v63  ;;  %v3710_v63 = vor.u32 %v4066_v14, %v3709_v52 }
 0x3ec   :  { %2550 = vmatpush.bf16.msra.mxu3 %v3802_v49  ;;  %v3591_v49 = vld [vmem:[#allocation3 + $0x210] sm:$0xf0] }
 0x3ed   :  { %v3594_v24 = vor.u32 %v4035_v59, %v3591_v49  ;;  %v3565_v59 = vld [vmem:[#allocation3 + $0x1c8] sm:$0xf]  ;;  %v4030_v49 = vld [vmem:[#allocation3 + $0x1d4] sm:$0xf0] }
 0x3ef   :  { %2528 = vmatpush.bf16.msra.mxu1 %v3482_v28  ;;  %2542 = vmatpush.bf16.msra.mxu2 %v3594_v24  ;;  %v3694_v28 = vor.u32 %v4062_v55, %v3693_v36  ;;  %v3677_v24 = vld [vmem:[#allocation3 + $0x2a8] sm:$0xf]  ;;  %v3982_v55 = vld [vmem:[#allocation3 + $0x54] sm:$0xf0] }
 0x3f0   :  { %2551 = vmatpush.bf16.msra.mxu3 %v3786_v44  ;;  %v1448_v44 = vadd.f32 %v5548_v10, %v5544_v20  ;;  %v1408_v10 = vadd.f32 %v5546_v58, %v1388_v21  ;;  %v4094_v58 = vld [vmem:[#allocation3 + $0x3d4] sm:$0xf0]  ;;  %v3790_v21 = vor.u32 %v4086_v12, %v3789_v47  ;;  %v3373_v36 = vld [vmem:[#allocation3 + $0x48] sm:$0xf]  ;;  %v4000_v47 = vld [vmem:[#allocation3 + $0xec] sm:$0xf] }
 0x3f2   :  { %v1468_v1 = vadd.f32 %v1467_v17, %v1448_v44  ;;  %v3806_v44 = vor.u32 %v4090_v56, %v3805_v61  ;;  %v3725_v61 = vld [vmem:[#allocation3 + $0x308] sm:$0xf]  ;;  %v4070_v56 = vld [vmem:[#allocation3 + $0x314] sm:$0xf0] }
 0x3f3   :  { %2529 = vmatpush.bf16.msra.mxu1 %v3466_v22  ;;  %v3678_v22 = vor.u32 %v4058_v11, %v3677_v24  ;;  %v4038_v11 = vld [vmem:[#allocation3 + $0x214] sm:$0xf0] }
 0x3f4   :  { %2552 = vmatpush.bf16.msra.mxu3 %v3770_v0  ;;  %v1628_v0 = vadd.f32 %v1627_v51, %v1608_v25  ;;  %v3550_v25 = vor.u32 %v4026_v53, %v3549_v54  ;;  %v3405_v51 = vld [vmem:[#allocation3 + $0x88] sm:$0xf]  ;;  %v4096_v53 = vld [vmem:[#allocation3 + $0x3ec] sm:$0xf] }
 0x3f8   :  { %2553 = vmatpush.bf16.msra.mxu3 %v3754_v45  ;;  %v4034_v45 = vld [vmem:[#allocation3 + $0x1f4] sm:$0xf0] }
 0x3f9   :  { %v3582_v37 = vor.u32 %v4034_v45, %v3581_v42 }
 0x3fc   :  { %2554 = vmatpush.bf16.msra.mxu3 %v3738_v35 }
 0x400   :  { %2555 = vmatpush.bf16.msra.mxu3 %v3722_v6  ;;  %v3566_v6 = vor.u32 %v4030_v49, %v3565_v59  ;;  %v3485_v59 = vld [vmem:[#allocation3 + $0x128] sm:$0xf]  ;;  %v4010_v49 = vld [vmem:[#allocation3 + $0x134] sm:$0xf0] }
 0x401   :  { %v3486_v54 = vor.u32 %v4010_v49, %v3485_v59  ;;  %v4020_v59 = vld [vmem:[#allocation3 + $0x18c] sm:$0xf]  ;;  %v3535_v49 = vld [vmem:[#allocation3 + $0x198] sm:$0xf0] }
 0x406   :  { %v1487_v26 = vpop.f32.mrf.mxu3 }
 0x407   :  { %v1488_v5 = vadd.f32 %v1487_v26, %v1468_v1  ;;  %v3822_v26 = vor.u32 %v4094_v58, %v3821_v38  ;;  %v3422_v1 = vor.u32 %v3994_v32, %v3421_v3  ;;  %v3501_v38 = vld [vmem:[#allocation3 + $0x148] sm:$0xf]  ;;  %v4014_v58 = vld [vmem:[#allocation3 + $0x154] sm:$0xf0]  ;;  %v3358_v32 = vor.u32 %v3978_v62, %v3357_v13  ;;  %v3988_v13 = vld [vmem:[#allocation3 + $0x8c] sm:$0xf] }
 0x408   :  { %v3341_v3 = vld [vmem:[#allocation3 + $0x8] sm:$0xf]  ;;  %v3407_v62 = vld [vmem:[#allocation3 + $0x98] sm:$0xf0] }
 0x409   :  { %v1655_v60 = vrot.slane %v1488_v5, 6  ;;  %v4022_v5 = vld [vmem:[#allocation3 + $0x194] sm:$0xf0] }
 0x40b   :  { %v1658_v34 = vsel %vm364_vm0, %v1408_v10, %v1655_v60  ;;  %v3773_v60 = vld [vmem:[#allocation3 + $0x368] sm:$0xf]  ;;  %v3406_v10 = vor.u32 %v3990_v39, %v3405_v51  ;;  %v4032_v51 = vld [vmem:[#allocation3 + $0x1ec] sm:$0xf]  ;;  %v3583_v39 = vld [vmem:[#allocation3 + $0x1f8] sm:$0xf0] }
 0x426   :  { %v1567_v18 = vpop.f32.mrf.mxu3 }
 0x427   :  { %v1568_v46 = vadd.f32 %v1567_v18, %v1548_v30  ;;  %v4054_v18 = vld [vmem:[#allocation3 + $0x294] sm:$0xf0]  ;;  %v3533_v30 = vld [vmem:[#allocation3 + $0x188] sm:$0xf] }
 0x429   :  { %v1656_v16 = vrot.slane %v1568_v46, 4  ;;  %v3645_v46 = vld [vmem:[#allocation3 + $0x268] sm:$0xf] }
 0x446   :  { %v1647_v9 = vpop.f32.mrf.mxu3 }
 0x447   :  { %v1648_v20 = vadd.f32 %v1647_v9, %v1628_v0  ;;  %v3662_v0 = vor.u32 %v4054_v18, %v3661_v15  ;;  %v4050_v9 = vld [vmem:[#allocation3 + $0x274] sm:$0xf0]  ;;  %v3469_v15 = vld [vmem:[#allocation3 + $0x108] sm:$0xf] }
 0x448   :  { %v3646_v52 = vor.u32 %v4050_v9, %v3645_v46  ;;  %v4006_v18 = vld [vmem:[#allocation3 + $0x114] sm:$0xf0]  ;;  %v3695_v9 = vld [vmem:[#allocation3 + $0x2d8] sm:$0xf0] }
 0x449   :  { %v1657_v23 = vrot.slane %v1648_v20, 2  ;;  %v4082_v20 = vld [vmem:[#allocation3 + $0x374] sm:$0xf0]  ;;  %v3470_v46 = vor.u32 %v4006_v18, %v3469_v15  ;;  %v4044_v15 = vld [vmem:[#allocation3 + $0x24c] sm:$0xf] }
 0x44a   :  { %v3774_v14 = vor.u32 %v4082_v20, %v3773_v60  ;;  %v4092_v60 = vld [vmem:[#allocation3 + $0x3cc] sm:$0xf]  ;;  %v3823_v20 = vld [vmem:[#allocation3 + $0x3d8] sm:$0xf0] }
 0x44b   :  { %v1660_v41 = vsel %vm1659_vm14, %v1656_v16, %v1657_v23  ;;  %v3534_v16 = vor.u32 %v4022_v5, %v3533_v30  ;;  %v3389_v23 = vld [vmem:[#allocation3 + $0x68] sm:$0xf]  ;;  %v3631_v18 = vld [vmem:[#allocation3 + $0x258] sm:$0xf0]  ;;  %vm2798_vm14 = vcmask 1042434  }
 0x44c   :  { %v1662_v17 = vsel %vm1661_vm15, %v1658_v34, %v1660_v41  ;;  %v3986_v34 = vld [vmem:[#allocation3 + $0x74] sm:$0xf0]  ;;  %v3517_v41 = vld [vmem:[#allocation3 + $0x168] sm:$0xf] }
 0x44d   :  { %1676 = vst [vmem:[#allocation1] ss:$4 sm:$0xff] %v1662_v17  ;;  %v4018_v17 = vld [vmem:[#allocation3 + $0x174] sm:$0xf0]  ;;  %v3390_v42 = vor.u32 %v3986_v34, %v3389_v23  ;;  %v3996_v23 = vld [vmem:[#allocation3 + $0xcc] sm:$0xf] }
 0x44e   :  { %v3518_v45 = vor.u32 %v4018_v17, %v3517_v41  ;;  %v3439_v34 = vld [vmem:[#allocation3 + $0xd8] sm:$0xf0]  ;;  %v4028_v41 = vld [vmem:[#allocation3 + $0x1cc] sm:$0xf] }
 0x44f   :  { %v3567_v17 = vld [vmem:[#allocation3 + $0x1d8] sm:$0xf0] }
 0x454   :  { %v1679_v31 = vld.sshfl [vmem:[#allocation1 + $0x10] sm:$0xff pattern:$0x73625140]  ;;  %v1680_v33 = vld.sshfl [vmem:[#allocation1 + $0x18] sm:$0xff pattern:$0x73625140] }
 0x455   :  { %v5557_v27 = vpack.c.bf16 %v1679_v31, %v1679_v31  ;;  %v5559_v8 = vpack.c.bf16 %v1680_v33, %v1680_v33  ;;  %v1677_v4 = vld.sshfl [vmem:[#allocation1] sm:$0xff pattern:$0x73625140]  ;;  %v1678_v35 = vld.sshfl [vmem:[#allocation1 + $0x8] sm:$0xff pattern:$0x73625140]  ;;  %v3630_v31 = vor.u32 %v4046_v29, %v3629_v19 }
 0x456   :  { %v5561_v50 = vpack.c.bf16 %v1677_v4, %v1677_v4  ;;  %v5563_v48 = vpack.c.bf16 %v1678_v35, %v1678_v35  ;;  %v3613_v33 = vld [vmem:[#allocation3 + $0x228] sm:$0xf]  ;;  %v4074_v35 = vld [vmem:[#allocation3 + $0x334] sm:$0xf0]  ;;  %v4056_v19 = vld [vmem:[#allocation3 + $0x2ac] sm:$0xf] }
 0x457   :  { %2491 = vmatmul.bf16.vlgmr.msrb.gmra.mxu2 %v5557_v27  ;;  %2504 = vmatmul.bf16.vlgmr.msrb.gmra.mxu3 %v5559_v8  ;;  %v3741_v4 = vld [vmem:[#allocation3 + $0x328] sm:$0xf]  ;;  %v3679_v29 = vld [vmem:[#allocation3 + $0x2b8] sm:$0xf0] }
 0x458   :  { %2587 = vmatpush.bf16.msrb.mxu2 %v3710_v63  ;;  %2600 = vmatpush.bf16.msrb.mxu3 %v3838_v43  ;;  %v3758_v63 = vor.u32 %v4078_v2, %v3757_v7  ;;  %v4042_v43 = vld [vmem:[#allocation3 + $0x234] sm:$0xf0]  ;;  %v3742_v24 = vor.u32 %v4074_v35, %v3741_v4  ;;  %v4088_v7 = vld [vmem:[#allocation3 + $0x3ac] sm:$0xf]  ;;  %v3807_v2 = vld [vmem:[#allocation3 + $0x3b8] sm:$0xf0] }
 0x459   :  { %2465 = vmatmul.bf16.vlgmr.msrb.gmra.mxu0 %v5561_v50  ;;  %2478 = vmatmul.bf16.vlgmr.msrb.gmra.mxu1 %v5563_v48  ;;  %v4084_v4 = vld [vmem:[#allocation3 + $0x38c] sm:$0xf]  ;;  %v3791_v35 = vld [vmem:[#allocation3 + $0x398] sm:$0xf0] }
 0x45a   :  { %2561 = vmatpush.bf16.msrb.mxu0 %v3454_v57  ;;  %2574 = vmatpush.bf16.msrb.mxu1 %v3582_v37  ;;  %v3374_v57 = vor.u32 %v3982_v55, %v3373_v36  ;;  %v3502_v37 = vor.u32 %v4014_v58, %v3501_v38  ;;  %v3992_v36 = vld [vmem:[#allocation3 + $0xac] sm:$0xf]  ;;  %v3423_v55 = vld [vmem:[#allocation3 + $0xb8] sm:$0xf0] }
 0x45b   :  { %v4024_v38 = vld [vmem:[#allocation3 + $0x1ac] sm:$0xf]  ;;  %v3551_v58 = vld [vmem:[#allocation3 + $0x1b8] sm:$0xf0] }
 0x45c   :  { %2588 = vmatpush.bf16.msrb.mxu2 %v3694_v28  ;;  %2601 = vmatpush.bf16.msrb.mxu3 %v3822_v26  ;;  %v3597_v28 = vld [vmem:[#allocation3 + $0x208] sm:$0xf]  ;;  %v3614_v26 = vor.u32 %v4042_v43, %v3613_v33  ;;  %v4052_v33 = vld [vmem:[#allocation3 + $0x28c] sm:$0xf]  ;;  %v3663_v43 = vld [vmem:[#allocation3 + $0x298] sm:$0xf0] }
 0x45d   :  { %v3598_v12 = vor.u32 %v4038_v11, %v3597_v28  ;;  %v3666_v28 = vor.u32 %v4052_v33, %v3663_v43  ;;  %v3647_v11 = vld [vmem:[#allocation3 + $0x278] sm:$0xf0] }
 0x45e   :  { %2562 = vmatpush.bf16.msrb.mxu0 %v3438_v40  ;;  %2575 = vmatpush.bf16.msrb.mxu1 %v3566_v6  ;;  %v4064_v40 = vld [vmem:[#allocation3 + $0x2ec] sm:$0xf]  ;;  %v3711_v6 = vld [vmem:[#allocation3 + $0x2f8] sm:$0xf0] }
 0x45f   :  { %v3714_v30 = vor.u32 %v4064_v40, %v3711_v6  ;;  %v3410_v40 = vor.u32 %v3988_v13, %v3407_v62  ;;  %v3538_v6 = vor.u32 %v4020_v59, %v3535_v49 }
 0x460   :  { %2589 = vmatpush.bf16.msrb.mxu2 %v3678_v22  ;;  %2602 = vmatpush.bf16.msrb.mxu3 %v3806_v44  ;;  %v3839_v22 = vld [vmem:[#allocation3 + $0x3f8] sm:$0xf0]  ;;  %v3974_v44 = vld [vmem:[#allocation3 + $0x14] sm:$0xf0] }
 0x461   :  { %v3842_v5 = vor.u32 %v4096_v53, %v3839_v22  ;;  %v3519_v53 = vld [vmem:[#allocation3 + $0x178] sm:$0xf0] }
 0x462   :  { %2563 = vmatpush.bf16.msrb.mxu0 %v3422_v1  ;;  %2576 = vmatpush.bf16.msrb.mxu1 %v3550_v25  ;;  %v3726_v1 = vor.u32 %v4070_v56, %v3725_v61  ;;  %v3455_v25 = vld [vmem:[#allocation3 + $0xf8] sm:$0xf0]  ;;  %v4080_v61 = vld [vmem:[#allocation3 + $0x36c] sm:$0xf] }
 0x463   :  { %v3775_v56 = vld [vmem:[#allocation3 + $0x378] sm:$0xf0] }
 0x464   :  { %2590 = vmatpush.bf16.msrb.mxu2 %v3662_v0  ;;  %2603 = vmatpush.bf16.msrb.mxu3 %v3790_v21  ;;  %v4060_v0 = vld [vmem:[#allocation3 + $0x2cc] sm:$0xf]  ;;  %v3342_v21 = vor.u32 %v3974_v44, %v3341_v3  ;;  %v3778_v44 = vor.u32 %v4080_v61, %v3775_v56  ;;  %v4264_v61 = vmov 2.0  }
 0x465   :  { %v3984_v3 = vld [vmem:[#allocation3 + $0x6c] sm:$0xf]  ;;  %4145 = vrcp.f32 %v4264_v61 }
 0x466   :  { %2564 = vmatpush.bf16.msrb.mxu0 %v3406_v10  ;;  %2577 = vmatpush.bf16.msrb.mxu1 %v3534_v16  ;;  %v3458_v10 = vor.u32 %v4000_v47, %v3455_v25  ;;  %v3586_v16 = vor.u32 %v4032_v51, %v3583_v39  ;;  %v4076_v47 = vld [vmem:[#allocation3 + $0x34c] sm:$0xf]  ;;  %v3375_v39 = vld [vmem:[#allocation3 + $0x58] sm:$0xf0] }
 0x467   :  { %2543 = vmatmul.bf16.vlgmr.msra.gmra.mxu2 %v5557_v27  ;;  %2556 = vmatmul.bf16.vlgmr.msra.gmra.mxu3 %v5559_v8  ;;  %v3980_v51 = vld [vmem:[#allocation3 + $0x4c] sm:$0xf] }
 0x468   :  { %2591 = vmatpush.bf16.msrb.mxu2 %v3646_v52  ;;  %2604 = vmatpush.bf16.msrb.mxu3 %v3774_v14  ;;  %v3698_v52 = vor.u32 %v4060_v0, %v3695_v9  ;;  %v3826_v14 = vor.u32 %v4092_v60, %v3823_v20  ;;  %v3634_v0 = vor.u32 %v4044_v15, %v3631_v18  ;;  %v3615_v9 = vld [vmem:[#allocation3 + $0x238] sm:$0xf0]  ;;  %v4072_v60 = vld [vmem:[#allocation3 + $0x32c] sm:$0xf] }
 0x469   :  { %2517 = vmatmul.bf16.vlgmr.msra.gmra.mxu0 %v5561_v50  ;;  %2530 = vmatmul.bf16.vlgmr.msra.gmra.mxu1 %v5563_v48  ;;  %v3743_v20 = vld [vmem:[#allocation3 + $0x338] sm:$0xf0] }
 0x46a   :  { %2565 = vmatpush.bf16.msrb.mxu0 %v3390_v42  ;;  %2578 = vmatpush.bf16.msrb.mxu1 %v3518_v45  ;;  %v3442_v42 = vor.u32 %v3996_v23, %v3439_v34  ;;  %v3570_v45 = vor.u32 %v4028_v41, %v3567_v17  ;;  %v3976_v23 = vld [vmem:[#allocation3 + $0x2c] sm:$0xf]  ;;  %v3359_v34 = vld [vmem:[#allocation3 + $0x38] sm:$0xf0] }
 0x46b   :  { %v4008_v41 = vld [vmem:[#allocation3 + $0x12c] sm:$0xf]  ;;  %v3487_v17 = vld [vmem:[#allocation3 + $0x138] sm:$0xf0] }
 0x46c   :  { %2592 = vmatpush.bf16.msrb.mxu2 %v3630_v31  ;;  %2605 = vmatpush.bf16.msrb.mxu3 %v3758_v63  ;;  %v3682_v31 = vor.u32 %v4056_v19, %v3679_v29  ;;  %v3810_v63 = vor.u32 %v4088_v7, %v3807_v2  ;;  %v4036_v19 = vld [vmem:[#allocation3 + $0x20c] sm:$0xf]  ;;  %v3599_v29 = vld [vmem:[#allocation3 + $0x218] sm:$0xf0] }
 0x46d   :  { %v4068_v7 = vld [vmem:[#allocation3 + $0x30c] sm:$0xf]  ;;  %v3727_v2 = vld [vmem:[#allocation3 + $0x318] sm:$0xf0] }
 0x46e   :  { %2566 = vmatpush.bf16.msrb.mxu0 %v3374_v57  ;;  %2579 = vmatpush.bf16.msrb.mxu1 %v3502_v37  ;;  %v3426_v57 = vor.u32 %v3992_v36, %v3423_v55  ;;  %v3554_v37 = vor.u32 %v4024_v38, %v3551_v58  ;;  %v3972_v36 = vld [vmem:[#allocation3 + $0xc] sm:$0xf]  ;;  %v3343_v55 = vld [vmem:[#allocation3 + $0x18] sm:$0xf0] }
 0x46f   :  { %v4004_v38 = vld [vmem:[#allocation3 + $0x10c] sm:$0xf]  ;;  %v3471_v58 = vld [vmem:[#allocation3 + $0x118] sm:$0xf0]  ;;  %v3346_v33 = vor.u32 %v3972_v36, %v3343_v55 }
 0x470   :  { %2593 = vmatpush.bf16.msrb.mxu2 %v3614_v26  ;;  %2606 = vmatpush.bf16.msrb.mxu3 %v3742_v24  ;;  %v3794_v26 = vor.u32 %v4084_v4, %v3791_v35  ;;  %v4048_v24 = vld [vmem:[#allocation3 + $0x26c] sm:$0xf]  ;;  %v3474_v43 = vor.u32 %v4004_v38, %v3471_v58 }
 0x471   :  { %v3650_v22 = vor.u32 %v4048_v24, %v3647_v11 }
 0x472   :  { %2567 = vmatpush.bf16.msrb.mxu0 %v3358_v32  ;;  %2580 = vmatpush.bf16.msrb.mxu1 %v3486_v54  ;;  %v3391_v32 = vld [vmem:[#allocation3 + $0x78] sm:$0xf0]  ;;  %v4016_v54 = vld [vmem:[#allocation3 + $0x16c] sm:$0xf] }
 0x473   :  { %v3522_v25 = vor.u32 %v4016_v54, %v3519_v53 }
 0x474   :  { %2594 = vmatpush.bf16.msrb.mxu2 %v3598_v12  ;;  %2607 = vmatpush.bf16.msrb.mxu3 %v3726_v1  ;;  %v3759_v12 = vld [vmem:[#allocation3 + $0x358] sm:$0xf0]  ;;  %v3394_v1 = vor.u32 %v3984_v3, %v3391_v32 }
 0x476   :  { %2568 = vmatpush.bf16.msrb.mxu0 %v3342_v21  ;;  %2581 = vmatpush.bf16.msrb.mxu1 %v3470_v46  ;;  %v3762_v21 = vor.u32 %v4076_v47, %v3759_v12  ;;  %v4040_v46 = vld [vmem:[#allocation3 + $0x22c] sm:$0xf] }
 0x477   :  { %2595 = vmatmul.bf16.vlgmr.msrb.gmra.mxu2 %v5557_v27  ;;  %2608 = vmatmul.bf16.vlgmr.msrb.gmra.mxu3 %v5559_v8 }
 0x478   :  { %2639 = vmatpush.bf16.msra.mxu2 %v3714_v30  ;;  %2652 = vmatpush.bf16.msra.mxu3 %v3842_v5  ;;  %v4012_v30 = vld [vmem:[#allocation3 + $0x14c] sm:$0xf]  ;;  %v3503_v5 = vld [vmem:[#allocation3 + $0x158] sm:$0xf0] }
 0x479   :  { %2569 = vmatmul.bf16.vlgmr.msrb.gmra.mxu0 %v5561_v50  ;;  %2582 = vmatmul.bf16.vlgmr.msrb.gmra.mxu1 %v5563_v48 }
 0x47a   :  { %2613 = vmatpush.bf16.msra.mxu0 %v3458_v10  ;;  %2626 = vmatpush.bf16.msra.mxu1 %v3586_v16  ;;  %v3378_v10 = vor.u32 %v3980_v51, %v3375_v39  ;;  %v3506_v16 = vor.u32 %v4012_v30, %v3503_v5 }
 0x47c   :  { %2640 = vmatpush.bf16.msra.mxu2 %v3698_v52  ;;  %2653 = vmatpush.bf16.msra.mxu3 %v3826_v14  ;;  %v3618_v52 = vor.u32 %v4040_v46, %v3615_v9  ;;  %v3746_v14 = vor.u32 %v4072_v60, %v3743_v20 }
 0x47e   :  { %2614 = vmatpush.bf16.msra.mxu0 %v3442_v42  ;;  %2627 = vmatpush.bf16.msra.mxu1 %v3570_v45  ;;  %v3362_v42 = vor.u32 %v3976_v23, %v3359_v34  ;;  %v3490_v45 = vor.u32 %v4008_v41, %v3487_v17 }
 0x480   :  { %2641 = vmatpush.bf16.msra.mxu2 %v3682_v31  ;;  %2654 = vmatpush.bf16.msra.mxu3 %v3810_v63  ;;  %v3602_v31 = vor.u32 %v4036_v19, %v3599_v29  ;;  %v3730_v63 = vor.u32 %v4068_v7, %v3727_v2 }
 0x482   :  { %2615 = vmatpush.bf16.msra.mxu0 %v3426_v57  ;;  %2628 = vmatpush.bf16.msra.mxu1 %v3554_v37 }
 0x484   :  { %2642 = vmatpush.bf16.msra.mxu2 %v3666_v28  ;;  %2655 = vmatpush.bf16.msra.mxu3 %v3794_v26 }
 0x486   :  { %2616 = vmatpush.bf16.msra.mxu0 %v3410_v40  ;;  %2629 = vmatpush.bf16.msra.mxu1 %v3538_v6  ;;  %v4146_v6 = vpop.eup %4145 }
 0x487   :  { %vm2698_vm1 = vweird.f32 %v4146_v6 }
 0x488   :  { %2643 = vmatpush.bf16.msra.mxu2 %v3650_v22  ;;  %2656 = vmatpush.bf16.msra.mxu3 %v3778_v44  ;;  %v2694_v44 = vmul.f32 2.0, %v4146_v6 }
 0x48a   :  { %2617 = vmatpush.bf16.msra.mxu0 %v3394_v1  ;;  %2630 = vmatpush.bf16.msra.mxu1 %v3522_v25  ;;  %v2695_v25 = vsub.f32 1.0, %v2694_v44 }
 0x48c   :  { %2644 = vmatpush.bf16.msra.mxu2 %v3634_v0  ;;  %2657 = vmatpush.bf16.msra.mxu3 %v3762_v21  ;;  %v2696_v21 = vmul.f32 %v4146_v6, %v2695_v25 }
 0x48e   :  { %2618 = vmatpush.bf16.msra.mxu0 %v3378_v10  ;;  %2631 = vmatpush.bf16.msra.mxu1 %v3506_v16  ;;  %v2697_v16 = vadd.f32 %v4146_v6, %v2696_v21 }
 0x490   :  { %2645 = vmatpush.bf16.msra.mxu2 %v3618_v52  ;;  %2658 = vmatpush.bf16.msra.mxu3 %v3746_v14  ;;  %v5591_v19 = vsel %vm2698_vm1, %v4146_v6, %v2697_v16 }
 0x492   :  { %2619 = vmatpush.bf16.msra.mxu0 %v3362_v42  ;;  %2632 = vmatpush.bf16.msra.mxu1 %v3490_v45 }
 0x494   :  { %2646 = vmatpush.bf16.msra.mxu2 %v3602_v31  ;;  %2659 = vmatpush.bf16.msra.mxu3 %v3730_v63 }
 0x496   :  { %2620 = vmatpush.bf16.msra.mxu0 %v3346_v33  ;;  %2633 = vmatpush.bf16.msra.mxu1 %v3474_v43 }
 0x497   :  { %2647 = vmatmul.bf16.vlgmr.msra.gmra.mxu2 %v5557_v27  ;;  %2660 = vmatmul.bf16.vlgmr.msra.gmra.mxu3 %v5559_v8 }
 0x499   :  { %2621 = vmatmul.bf16.vlgmr.msra.gmra.mxu0 %v5561_v50  ;;  %2634 = vmatmul.bf16.vlgmr.msra.gmra.mxu1 %v5563_v48 }
 0x4d6   :  { %v2466_v4 = vpop.f32.mrf.mxu0  ;;  %v2479_v35 = vpop.f32.mrf.mxu1 }
 0x4d7   :  { %v2480_v57 = vadd.f32 %v2479_v35, %v2466_v4 }
 0x4da   :  { %v2492_v37 = vpop.f32.mrf.mxu2  ;;  %v2505_v13 = vpop.f32.mrf.mxu3 }
 0x4db   :  { %v2493_v62 = vadd.f32 %v2492_v37, %v2480_v57 }
 0x4dd   :  { %v5581_v59 = vadd.f32 %v2505_v13, %v2493_v62 }
 0x4de   :  { %v2468_v49 = vpop.f32.mrf.mxu0  ;;  %v2481_v28 = vpop.f32.mrf.mxu1 }
 0x4df   :  { %v2665_v48 = vsel %vm364_vm0, %v5581_v59, 0.0 }
 0x4e0   :  { %v2666_v32 = vrot.slane %v2665_v48, 4 }
 0x4e2   :  { %v2494_v26 = vpop.f32.mrf.mxu2  ;;  %v2507_v24 = vpop.f32.mrf.mxu3  ;;  %v2667_v18 = vadd.f32 %v2666_v32, %v2665_v48 }
 0x4e4   :  { %v2668_v39 = vrot.slane %v2667_v18, 2 }
 0x4e6   :  { %v2518_v11 = vpop.f32.mrf.mxu0  ;;  %v2531_v27 = vpop.f32.mrf.mxu1  ;;  %v2669_v9 = vadd.f32 %v2668_v39, %v2667_v18 }
 0x4e7   :  { %v2532_v8 = vadd.f32 %v2531_v27, %v2518_v11 }
 0x4e8   :  { %v2670_v41 = vrot.slane %v2669_v9, 1 }
 0x4ea   :  { %v2544_v50 = vpop.f32.mrf.mxu2  ;;  %v2557_v56 = vpop.f32.mrf.mxu3  ;;  %v2671_v42 = vadd.f32 %v2670_v41, %v2669_v9 }
 0x4eb   :  { %v2545_v40 = vadd.f32 %v2544_v50, %v2532_v8 }
 0x4ec   :  { %v5601_v31 = vmul.f32 %v5591_v19, %v2671_v42  ;;  %v4106_v42 = vld [vmem:[%s5785_s6 + $0x38] sm:$0xff] }
 0x4ed   :  { %v5585_v3 = vadd.f32 %v2557_v56, %v2545_v40  ;;  %3114 = vmatpush.bf16.msrb.mxu0 %v4106_v42 }
 0x4ee   :  { %v2520_v54 = vpop.f32.mrf.mxu0  ;;  %v2533_v53 = vpop.f32.mrf.mxu1  ;;  %v2704_v4 = vsub.f32 %v5581_v59, %v5601_v31 }
 0x4ef   :  { %v2672_v22 = vsel %vm364_vm0, %v5585_v3, 0.0 }
 0x4f0   :  { %v2673_v15 = vrot.slane %v2672_v22, 4  ;;  %v2708_v13 = vmul.f32 %v2704_v4, %v2704_v4  ;;  %v4105_v4 = vld [vmem:[%s5785_s6 + $0x30] sm:$0xff] }
 0x4f1   :  { %3115 = vmatpush.bf16.msrb.mxu0 %v4105_v4 }
 0x4f2   :  { %v2674_v47 = vadd.f32 %v2673_v15, %v2672_v22  ;;  %v2546_v12 = vpop.f32.mrf.mxu2  ;;  %v2559_v1 = vpop.f32.mrf.mxu3  ;;  %v2712_v26 = vsel %vm364_vm0, %v2708_v13, 0.0 }
 0x4f3   :  { %v2713_v50 = vrot.slane %v2712_v26, 4 }
 0x4f4   :  { %v2675_v51 = vrot.slane %v2674_v47, 2 }
 0x4f5   :  { %v2714_v53 = vadd.f32 %v2713_v50, %v2712_v26  ;;  %v4104_v26 = vld [vmem:[%s5785_s6 + $0x28] sm:$0xff] }
 0x4f6   :  { %v2676_v30 = vadd.f32 %v2675_v51, %v2674_v47  ;;  %v2570_v5 = vpop.f32.mrf.mxu0  ;;  %v2583_v0 = vpop.f32.mrf.mxu1  ;;  %3116 = vmatpush.bf16.msrb.mxu0 %v4104_v26 }
 0x4f7   :  { %v2584_v60 = vadd.f32 %v2583_v0, %v2570_v5  ;;  %v2715_v1 = vrot.slane %v2714_v53, 2 }
 0x4f8   :  { %v2677_v46 = vrot.slane %v2676_v30, 1 }
 0x4f9   :  { %v2716_v21 = vadd.f32 %v2715_v1, %v2714_v53  ;;  %v4118_v1 = vld [vmem:[%s5785_s6 + $0x98] sm:$0xff] }
 0x4fa   :  { %v2596_v20 = vpop.f32.mrf.mxu2  ;;  %v2609_v10 = vpop.f32.mrf.mxu3  ;;  %v2678_v34 = vadd.f32 %v2677_v46, %v2676_v30 }
 0x4fb   :  { %v2597_v23 = vadd.f32 %v2596_v20, %v2584_v60 }
 0x4fc   :  { %v5596_v7 = vmul.f32 %v5591_v19, %v2678_v34 }
 0x4fd   :  { %v5589_v17 = vadd.f32 %v2609_v10, %v2597_v23  ;;  %v2717_v10 = vrot.slane %v2716_v21, 1 }
 0x4fe   :  { %v2572_v52 = vpop.f32.mrf.mxu0  ;;  %v2585_v14 = vpop.f32.mrf.mxu1  ;;  %v2705_v38 = vsub.f32 %v5585_v3, %v5596_v7 }
 0x4ff   :  { %v2679_v29 = vsel %vm364_vm0, %v5589_v17, 0.0  ;;  %v2718_v52 = vadd.f32 %v2717_v10, %v2716_v21  ;;  %v4109_v21 = vld [vmem:[%s5785_s6 + $0x50] sm:$0xff] }
 0x500   :  { %v2680_v2 = vrot.slane %v2679_v29, 4  ;;  %v2709_v33 = vmul.f32 %v2705_v38, %v2705_v38  ;;  %v4130_v38 = vld [vmem:[%s5785_s6 + $0xf8] sm:$0xff] }
 0x501   :  { %3153 = vmatpush.bf16.msrb.mxu3 %v4130_v38  ;;  %v4107_v38 = vld [vmem:[%s5785_s6 + $0x40] sm:$0xff] }
 0x502   :  { %v2681_v45 = vadd.f32 %v2680_v2, %v2679_v29  ;;  %v2598_v36 = vpop.f32.mrf.mxu2  ;;  %v2611_v55 = vpop.f32.mrf.mxu3  ;;  %v2719_v57 = vsel %vm364_vm0, %v2709_v33, 0.0 }
 0x503   :  { %v2720_v49 = vrot.slane %v2719_v57, 4  ;;  %v4122_v36 = vld [vmem:[%s5785_s6 + $0xb8] sm:$0xff] }
 0x504   :  { %v2682_v58 = vrot.slane %v2681_v45, 2  ;;  %3140 = vmatpush.bf16.msrb.mxu2 %v4122_v36  ;;  %v4099_v36 = vld [vmem:[%s5785_s6] sm:$0xff] }
 0x505   :  { %v2721_v61 = vadd.f32 %v2720_v49, %v2719_v57  ;;  %v4121_v57 = vld [vmem:[%s5785_s6 + $0xb0] sm:$0xff] }
 0x506   :  { %v2683_v63 = vadd.f32 %v2682_v58, %v2681_v45  ;;  %v4114_v45 = vld [vmem:[%s5785_s6 + $0x78] sm:$0xff]  ;;  %v2740_v58 = vmul.f32 %v2718_v52, %v5591_v19 }
 0x507   :  { %v2722_v32 = vrot.slane %v2721_v61, 2  ;;  %3127 = vmatpush.bf16.msrb.mxu1 %v4114_v45 }
 0x508   :  { %v2684_v43 = vrot.slane %v2683_v63, 1  ;;  %v5655_v49 = vadd.f32 1e-05, %v2740_v58  ;;  %3141 = vmatpush.bf16.msrb.mxu2 %v4121_v57  ;;  %v4115_v58 = vld [vmem:[%s5785_s6 + $0x80] sm:$0xff] }
 0x509   :  { %v2723_v47 = vadd.f32 %v2722_v32, %v2721_v61  ;;  %v4128_v61 = vld [vmem:[%s5785_s6 + $0xe8] sm:$0xff] }
 0x50a   :  { %v2685_v35 = vadd.f32 %v2684_v43, %v2683_v63  ;;  %vm2755_vm12 = vweird.f32 %v5655_v49 }
 0x50b   :  { %v2724_v0 = vrot.slane %v2723_v47, 1 }
 0x50c   :  { %v5607_v37 = vmul.f32 %v5591_v19, %v2685_v35  ;;  %v4113_v35 = vld [vmem:[%s5785_s6 + $0x70] sm:$0xff] }
 0x50d   :  { %v2725_v20 = vadd.f32 %v2724_v0, %v2723_v47  ;;  %3128 = vmatpush.bf16.msrb.mxu1 %v4113_v35  ;;  %v4102_v47 = vld [vmem:[%s5785_s6 + $0x18] sm:$0xff] }
 0x50e   :  { %v2706_v62 = vsub.f32 %v5589_v17, %v5607_v37 }
 0x50f   :  { %v2741_v41 = vmul.f32 %v2725_v20, %v5591_v19 }
 0x510   :  { %v2710_v28 = vmul.f32 %v2706_v62, %v2706_v62  ;;  %v4129_v62 = vld [vmem:[%s5785_s6 + $0xf0] sm:$0xff] }
 0x511   :  { %v5633_v55 = vadd.f32 1e-05, %v2741_v41  ;;  %3154 = vmatpush.bf16.msrb.mxu3 %v4129_v62  ;;  %v4124_v41 = vld [vmem:[%s5785_s6 + $0xc8] sm:$0xff] }
 0x512   :  { %v2726_v24 = vsel %vm364_vm0, %v2710_v28, 0.0 }
 0x513   :  { %v2727_v8 = vrot.slane %v2726_v24, 4  ;;  %4147 = vrsqrt.f32 %v5633_v55  ;;  %vm2765_vm3 = vweird.f32 %v5633_v55 }
 0x515   :  { %v2728_v56 = vadd.f32 %v2727_v8, %v2726_v24  ;;  %v4112_v24 = vld [vmem:[%s5785_s6 + $0x68] sm:$0xff]  ;;  %3155 = vmatpush.bf16.msrb.mxu3 %v4128_v61 }
 0x516   :  { %v2622_v11 = vpop.f32.mrf.mxu0  ;;  %v2635_v27 = vpop.f32.mrf.mxu1  ;;  %3129 = vmatpush.bf16.msrb.mxu1 %v4112_v24 }
 0x517   :  { %v2636_v48 = vadd.f32 %v2635_v27, %v2622_v11  ;;  %v2729_v22 = vrot.slane %v2728_v56, 2  ;;  %v4120_v11 = vld [vmem:[%s5785_s6 + $0xa8] sm:$0xff] }
 0x518   :  { %3142 = vmatpush.bf16.msrb.mxu2 %v4120_v11 }
 0x519   :  { %v2730_v51 = vadd.f32 %v2729_v22, %v2728_v56  ;;  %v5671_v8 = vpop.eup %4147  ;;  %v4103_v56 = vld [vmem:[%s5785_s6 + $0x20] sm:$0xff] }
 0x51a   :  { %v2648_v40 = vpop.f32.mrf.mxu2  ;;  %v2661_v6 = vpop.f32.mrf.mxu3  ;;  %v2760_v53 = vmul.f32 %v5671_v8, %v5633_v55  ;;  %3117 = vmatpush.bf16.msrb.mxu0 %v4103_v56  ;;  %vm2766_vm2 = vweird.f32 %v5671_v8 }
 0x51b   :  { %v2649_v54 = vadd.f32 %v2648_v40, %v2636_v48  ;;  %v2731_v9 = vrot.slane %v2730_v51, 1  ;;  %v4111_v48 = vld [vmem:[%s5785_s6 + $0x60] sm:$0xff]  ;;  %vm2767_vm5 = vmor %vm2765_vm3, %vm2766_vm2 }
 0x51c   :  { %v4119_v40 = vld [vmem:[%s5785_s6 + $0xa0] sm:$0xff]  ;;  %3130 = vmatpush.bf16.msrb.mxu1 %v4111_v48 }
 0x51d   :  { %v5613_v44 = vadd.f32 %v2661_v6, %v2649_v54  ;;  %v2732_v23 = vadd.f32 %v2731_v9, %v2730_v51  ;;  %v4127_v54 = vld [vmem:[%s5785_s6 + $0xe0] sm:$0xff]  ;;  %3143 = vmatpush.bf16.msrb.mxu2 %v4119_v40  ;;  %v4126_v51 = vld [vmem:[%s5785_s6 + $0xd8] sm:$0xff]  ;;  %v4125_v9 = vld [vmem:[%s5785_s6 + $0xd0] sm:$0xff] }
 0x51e   :  { %v2624_v15 = vpop.f32.mrf.mxu0  ;;  %v2637_v18 = vpop.f32.mrf.mxu1  ;;  %3156 = vmatpush.bf16.msrb.mxu3 %v4127_v54  ;;  %3118 = vmatpush.bf16.msrb.mxu0 %v4102_v47 }
 0x51f   :  { %v2686_v12 = vsel %vm364_vm0, %v5613_v44, 0.0  ;;  %v2742_v29 = vmul.f32 %v2732_v23, %v5591_v19  ;;  %v4108_v23 = vld [vmem:[%s5785_s6 + $0x48] sm:$0xff] }
 0x520   :  { %v2687_v25 = vrot.slane %v2686_v12, 4 }
 0x521   :  { %v5639_v33 = vadd.f32 1e-05, %v2742_v29  ;;  %3144 = vmatpush.bf16.msrb.mxu2 %v4118_v1 }
 0x522   :  { %v2688_v39 = vadd.f32 %v2687_v25, %v2686_v12  ;;  %v2650_v30 = vpop.f32.mrf.mxu2  ;;  %v2663_v5 = vpop.f32.mrf.mxu3  ;;  %v4110_v12 = vld [vmem:[%s5785_s6 + $0x58] sm:$0xff]  ;;  %3157 = vmatpush.bf16.msrb.mxu3 %v4126_v51  ;;  %v2803_v51 = vld [vmem:[#allocation8] sm:$0xf] }
 0x523   :  { %4149 = vrsqrt.f32 %v5639_v33  ;;  %3131 = vmatpush.bf16.msrb.mxu1 %v4110_v12  ;;  %vm2775_vm6 = vweird.f32 %v5639_v33 }
 0x524   :  { %v2689_v46 = vrot.slane %v2688_v39, 2  ;;  %4151 = vrsqrt.f32 %v5655_v49 }
 0x526   :  { %v2690_v60 = vadd.f32 %v2689_v46, %v2688_v39  ;;  %v2761_v39 = vmul.f32 %v5671_v8, %v2760_v53  ;;  %v4117_v46 = vld [vmem:[%s5785_s6 + $0x90] sm:$0xff]  ;;  %3158 = vmatpush.bf16.msrb.mxu3 %v4125_v9 }
 0x527   :  { %3132 = vmatpush.bf16.msrb.mxu1 %v4109_v21  ;;  %3145 = vmatpush.bf16.msrb.mxu2 %v4117_v46 }
 0x528   :  { %v2691_v16 = vrot.slane %v2690_v60, 1 }
 0x529   :  { %v5682_v6 = vpop.eup %4149 }
 0x52a   :  { %v2692_v34 = vadd.f32 %v2691_v16, %v2690_v60  ;;  %v5689_v15 = vpop.eup %4151  ;;  %v2770_v18 = vmul.f32 %v5682_v6, %v5639_v33  ;;  %v2762_v60 = vmul.f32 0.5, %v2761_v39  ;;  %v4100_v16 = vld [vmem:[%s5785_s6 + $0x8] sm:$0xff]  ;;  %3159 = vmatpush.bf16.msrb.mxu3 %v4124_v41  ;;  %vm2776_vm4 = vweird.f32 %v5682_v6 }
 0x52b   :  { %v2750_v30 = vmul.f32 %v5689_v15, %v5655_v49  ;;  %3133 = vmatpush.bf16.msrb.mxu1 %v4108_v23  ;;  %vm2756_vm8 = vweird.f32 %v5689_v15  ;;  %vm2777_vm9 = vmor %vm2775_vm6, %vm2776_vm4 }
 0x52c   :  { %v5619_v14 = vmul.f32 %v5591_v19, %v2692_v34  ;;  %v2771_v0 = vmul.f32 %v5682_v6, %v2770_v18  ;;  %v4116_v34 = vld [vmem:[%s5785_s6 + $0x88] sm:$0xff]  ;;  %v2763_v52 = vsub.f32 1.5, %v2762_v60  ;;  %vm2757_vm15 = vmor %vm2755_vm12, %vm2756_vm8 }
 0x52d   :  { %v2751_v20 = vmul.f32 %v5689_v15, %v2750_v30  ;;  %3146 = vmatpush.bf16.msrb.mxu2 %v4116_v34 }
 0x52e   :  { %v2707_v2 = vsub.f32 %v5613_v44, %v5619_v14  ;;  %v2772_v10 = vmul.f32 0.5, %v2771_v0 }
 0x52f   :  { %3134 = vmatpush.bf16.msrb.mxu1 %v4107_v38 }
 0x530   :  { %v2711_v63 = vmul.f32 %v2707_v2, %v2707_v2  ;;  %v2752_v2 = vmul.f32 0.5, %v2751_v20  ;;  %v2773_v42 = vsub.f32 1.5, %v2772_v10 }
 0x531   :  { %3147 = vmatpush.bf16.msrb.mxu2 %v4115_v58 }
 0x532   :  { %v2733_v43 = vsel %vm364_vm0, %v2711_v63, 0.0  ;;  %v4123_v63 = vld [vmem:[%s5785_s6 + $0xc0] sm:$0xff]  ;;  %v2753_v35 = vsub.f32 1.5, %v2752_v2  ;;  %v2774_v57 = vmul.f32 %v5682_v6, %v2773_v42 }
 0x533   :  { %v2734_v13 = vrot.slane %v2733_v43, 4  ;;  %3160 = vmatpush.bf16.msrb.mxu3 %v4123_v63 }
 0x534   :  { %v2754_v26 = vmul.f32 %v5689_v15, %v2753_v35  ;;  %v2778_v24 = vsel %vm2777_vm9, %v5682_v6, %v2774_v57 }
 0x535   :  { %v2735_v28 = vadd.f32 %v2734_v13, %v2733_v43  ;;  %v2764_v43 = vmul.f32 %v5671_v8, %v2763_v52  ;;  %v2794_v33 = vrot.slane %v2778_v24, 6 }
 0x537   :  { %v2736_v27 = vrot.slane %v2735_v28, 2  ;;  %v2768_v62 = vsel %vm2767_vm5, %v5671_v8, %v2764_v43  ;;  %v2744_v8 = vld [vmem:[#allocation6] sm:$0xf] }
 0x538   :  { %v2793_v11 = vrot.slane %v2768_v62, 7 }
 0x539   :  { %v2737_v50 = vadd.f32 %v2736_v27, %v2735_v28 }
 0x53b   :  { %v2738_v32 = vrot.slane %v2737_v50, 1 }
 0x53d   :  { %v2739_v22 = vadd.f32 %v2738_v32, %v2737_v50  ;;  %v2758_v50 = vsel %vm2757_vm15, %v5689_v15, %v2754_v26 }
 0x53e   :  { %v2797_v56 = vsel %vm2796_vm13, %v2758_v50, %v2793_v11 }
 0x53f   :  { %v2743_v25 = vmul.f32 %v2739_v22, %v5591_v19  ;;  %v4101_v19 = vld [vmem:[%s5785_s6 + $0x10] sm:$0xff] }
 0x540   :  { %3119 = vmatpush.bf16.msrb.mxu0 %v4101_v19 }
 0x541   :  { %v2748_v5 = vadd.f32 1e-05, %v2743_v25 }
 0x543   :  { %4153 = vrsqrt.f32 %v2748_v5  ;;  %vm2785_vm10 = vweird.f32 %v2748_v5 }
 0x544   :  { %3120 = vmatpush.bf16.msrb.mxu0 %v4100_v16 }
 0x548   :  { %3121 = vmatpush.bf16.msrb.mxu0 %v4099_v36 }
 0x549   :  { %v4154_v29 = vpop.eup %4153 }
 0x54a   :  { %v2780_v45 = vmul.f32 %v4154_v29, %v2748_v5  ;;  %vm2786_vm7 = vweird.f32 %v4154_v29 }
 0x54b   :  { %vm2787_vm11 = vmor %vm2785_vm10, %vm2786_vm7 }
 0x54c   :  { %v2781_v4 = vmul.f32 %v4154_v29, %v2780_v45 }
 0x54e   :  { %v2782_v13 = vmul.f32 0.5, %v2781_v4 }
 0x550   :  { %v2783_v28 = vsub.f32 1.5, %v2782_v13 }
 0x552   :  { %v2784_v55 = vmul.f32 %v4154_v29, %v2783_v28 }
 0x554   :  { %v2788_v27 = vsel %vm2787_vm11, %v4154_v29, %v2784_v55 }
 0x555   :  { %v2795_v61 = vrot.slane %v2788_v27, 5 }
 0x557   :  { %v2799_v48 = vsel %vm2798_vm14, %v2794_v33, %v2795_v61 }
 0x558   :  { %v2800_v40 = vsel %vm364_vm0, %v2797_v56, %v2799_v48 }
 0x559   :  { %v2802_v6 = vmul.f32 %v2800_v40, %v2744_v8 }
 0x55b   :  { %v2805_v32 = vperm.slane %v2802_v6, 0  ;;  %v2806_v54 = vperm.slane %v2802_v6, 1  ;;  %v2807_v53 = vperm.slane %v2802_v6, 2  ;;  %v2808_v49 = vperm.slane %v2802_v6, 3 }
 0x55d   :  { %v2814_v22 = vmul.f32 %v2806_v54, %v5596_v7  ;;  %v2815_v18 = vmul.f32 %v2807_v53, %v5607_v37  ;;  %v2816_v47 = vmul.f32 %v2808_v49, %v5619_v14  ;;  %v2813_v12 = vmul.f32 %v2805_v32, %v5601_v31 }
 0x55e   :  { %v2832_v19 = vmul.f32 %v2808_v49, %v5613_v44  ;;  %v2829_v7 = vmul.f32 %v2805_v32, %v5581_v59  ;;  %v2830_v37 = vmul.f32 %v2806_v54, %v5585_v3  ;;  %v2831_v14 = vmul.f32 %v2807_v53, %v5589_v17  ;;  %v4144_v3 = vld [vmem:[%s5786_s7] ss:$0 sm:$0xff] }
 0x55f   :  { %v2821_v15 = vrot.slane %v2814_v22, 7  ;;  %v2822_v1 = vrot.slane %v2815_v18, 6  ;;  %v2823_v25 = vrot.slane %v2816_v47, 5 }
 0x561   :  { %v2824_v39 = vsel %vm2796_vm13, %v2813_v12, %v2821_v15  ;;  %v2825_v30 = vsel %vm2798_vm14, %v2822_v1, %v2823_v25 }
 0x562   :  { %v2826_v5 = vsel %vm364_vm0, %v2824_v39, %v2825_v30 }
 0x563   :  { %v2828_v0 = vsub.f32 %v2803_v51, %v2826_v5 }
 0x565   :  { %v2837_v31 = vperm.slane %v2828_v0, 3  ;;  %v2834_v21 = vperm.slane %v2828_v0, 0  ;;  %v2835_v46 = vperm.slane %v2828_v0, 1  ;;  %v2836_v9 = vperm.slane %v2828_v0, 2 }
 0x567   :  { %v2845_v60 = vadd.f32 %v2837_v31, %v2832_v19  ;;  %v2842_v20 = vadd.f32 %v2834_v21, %v2829_v7  ;;  %v2843_v10 = vadd.f32 %v2835_v46, %v2830_v37  ;;  %v2844_v16 = vadd.f32 %v2836_v9, %v2831_v14 }
 0x569   :  { %v2849_v23 = vmax.f32 %v2845_v60, 0.0  ;;  %v2846_v34 = vmax.f32 %v2842_v20, 0.0  ;;  %v2847_v41 = vmax.f32 %v2843_v10, 0.0  ;;  %v2848_v52 = vmax.f32 %v2844_v16, 0.0 }
 0x56b   :  { %v2853_v29 = vpack.c.bf16 %v2849_v23, %v2849_v23  ;;  %v2850_v44 = vpack.c.bf16 %v2846_v34, %v2846_v34  ;;  %v2851_v2 = vpack.c.bf16 %v2847_v41, %v2847_v41  ;;  %v2852_v59 = vpack.c.bf16 %v2848_v52, %v2848_v52 }
 0x56d   :  { %3122 = vmatmul.bf16.vlgmr.msrb.gmra.mxu0 %v2850_v44  ;;  %3135 = vmatmul.bf16.vlgmr.msrb.gmra.mxu1 %v2851_v2 }
 0x56e   :  { %3148 = vmatmul.bf16.vlgmr.msrb.gmra.mxu2 %v2852_v59  ;;  %3161 = vmatmul.bf16.vlgmr.msrb.gmra.mxu3 %v2853_v29 }
 0x5ea   :  { %v3123_v17 = vpop.f32.mrf.mxu0  ;;  %v3136_v42 = vpop.f32.mrf.mxu1 }
 0x5eb   :  { %v3124_v45 = vadd.f32 %v4144_v3, %v3123_v17 }
 0x5ed   :  { %v3137_v36 = vadd.f32 %v3136_v42, %v3124_v45 }
 0x5f1   :  { %v3149_v38 = vpop.f32.mrf.mxu2  ;;  %v3162_v58 = vpop.f32.mrf.mxu3 }
 0x5f2   :  { %v3150_v63 = vadd.f32 %v3149_v38, %v3137_v36  ;;  %v3125_v43 = vpop.f32.mrf.mxu0  ;;  %v3138_v4 = vpop.f32.mrf.mxu1 }
 0x5f4   :  { %v3163_v35 = vadd.f32 %v3162_v58, %v3150_v63 }
 0x5f6   :  { %3166 = vst [vmem:[#allocation9] sm:$0x3] %v3163_v35 }
 0x5f7   :  { %3177 = dma.vmem_to_hbm [thread:$0]  %s3173_s12, 32, %s3175_s15, [#allocation5]  }
 0x5f9   :  { %v3151_v57 = vpop.f32.mrf.mxu2  ;;  %v3164_v13 = vpop.f32.mrf.mxu3 }
 0x5fa   :  { %4256 = dma.done.wait [#allocation5], 32  }
 0x5fb   :  { %4257 = vsyncadd [#allocation5], 4294967264 }
 0x5fc   :  { %3182 = vsyncpa [#allocation4], 1 }
 0x5fd   :  { %3183 = vsyncpa [#allocation7], 1 }
 0x5fe   :  { %3184 = vsyncpa [#allocation5], 1 }

</bundles_post_ra>
